<compile_context>
chip_gen: v6e
topology: v6e:2x2x1
jax: 0.10.0
libtpu: 0.0.40
codegen_flags: <defaults>
</compile_context>

<pallas_src>
import functools

import jax
import jax.numpy as jnp
from jax.experimental import pallas as pl
from jax.experimental.pallas import tpu as pltpu

# Module hyperparameters (PyTorch defaults: channels=2, ksize=5, stride=2).
CH = 2
KSIZE = 5
STRIDE = 2
PAD = KSIZE // 2
S2 = STRIDE * STRIDE                 # 4 sub-pixels
OUTC = 3 * S2 * CH                   # 24 conv output channels
STRIP = 8                            # output rows per inner strip
KROWS = 2 * STRIP                    # input rows read per strip (12 used, 16 for alignment)
KDIM = KSIZE * KROWS                 # matmul contraction dim: 5 column taps x 16 rows = 80
MDIM = OUTC * STRIP                  # matmul M dim: 24 channels x 8 strip rows = 192

LANE = 128
TILE_PIXEL_BUDGET = 128 * 1024       # base pixels per grid step


def _round_up(a, b):
    return (a + b - 1) // b * b


def _cdiv(a, b):
    return (a + b - 1) // b


def _edgesr_kernel(x_ref, halo_ref, wmat_ref, wc_ref, b_ref, o_ref,
                   *, tile_h, w_out):
    # x_ref   : (1, tile_h, w_in)  f32  padded input rows of this row tile
    # halo_ref: (1, 8, w_in)       f32  next 8 padded rows (bottom halo)
    # wmat_ref: (192, 80)          bf16 conv taps (centre tap zeroed), laid out
    #                                   wmat[c*8 + r, dj*16 + i] = W[c, i - r, dj]
    # wc_ref  : (24,)              f32  centre-tap weights (SMEM scalars)
    # b_ref   : (24,)              f32  conv bias          (SMEM scalars)
    # o_ref   : (1, 4, tile_h, w_out) f32  per-sub-pixel blended output planes
    n_strips = tile_h // STRIP
    wmat = wmat_ref[...]                                   # loop-invariant, VMEM

    def do_strip(r0, xs16):
        # xs16: [16, w_in] f32 = padded rows r0 .. r0+15 of this tile's window.
        xs_bf = xs16.astype(jnp.bfloat16)
        # rhs row dj*16 + i  ==  x[padded row r0+i, col w + dj].  Pieces are
        # 16-row (bf16-tile aligned) blocks; the 5 column taps are static
        # lane-shifted slices -- the only relayout work in the conv.
        rhs = jnp.concatenate(
            [xs_bf[:, dj:dj + w_out] for dj in range(KSIZE)], axis=0)  # [80, w_out]
        # All 24 channels x 8 strip rows in a single MXU matmul, f32 accumulate.
        conv = jnp.dot(wmat, rhs, preferred_element_type=jnp.float32)  # [192, w_out]
        # Centre tap + bias in f32 on the VPU (keeps accuracy ~f32 even with
        # bf16 MXU operands, since the centre tap dominates in this module).
        xcen = xs16[PAD:PAD + STRIP, PAD:PAD + w_out]                  # [8, w_out]

        def plane(c):
            return conv[STRIP * c:STRIP * (c + 1), :] + (wc_ref[c] * xcen + b_ref[c])

        for sub in range(S2):
            q0 = plane((0 * CH + 0) * S2 + sub)
            q1 = plane((0 * CH + 1) * S2 + sub)
            v0 = plane((1 * CH + 0) * S2 + sub)
            v1 = plane((1 * CH + 1) * S2 + sub)
            k0 = plane((2 * CH + 0) * S2 + sub)
            k1 = plane((2 * CH + 1) * S2 + sub)
            # 2-way max-stabilised softmax over the CH channels; exp/reciprocal
            # land on the otherwise idle EUP slot.
            l0 = q0 * k0
            l1 = q1 * k1
            m = jnp.maximum(l0, l1)
            e0 = jnp.exp(l0 - m)
            e1 = jnp.exp(l1 - m)
            blended = (e0 * v0 + e1 * v1) * pl.reciprocal(e0 + e1, approx=True)
            o_ref[0, sub, pl.ds(r0, STRIP), :] = blended

    # All strips except the last read their 16 input rows from the main block.
    if n_strips > 1:
        @pl.loop(0, n_strips - 1)
        def _(s):
            r0 = pl.multiple_of(s * STRIP, STRIP)
            do_strip(r0, x_ref[0, pl.ds(r0, KROWS), :])

    # Last strip: 8 rows from the main block + the 8-row bottom halo block.
    tail = jnp.concatenate(
        [x_ref[0, tile_h - STRIP:tile_h, :], halo_ref[0]], axis=0)
    do_strip(tile_h - STRIP, tail)


def edgesr_tr_forward(x, weight, bias):
    """x: (N, 1, H, W).  weight: (24, 1, 5, 5).  bias: (24,).
    Returns (N, 1, 2H, 2W) float32 (edgeSR_TR forward)."""
    N, c_in, H, W = x.shape
    assert c_in == 1

    # Lane-dense output width; the input window carries one extra 128-lane
    # chunk so the 5 column-tap slices never run off the end.
    w_out = _round_up(W, LANE)
    w_in = w_out + LANE

    # Row tile: multiple of 8, sized for ~TILE_PIXEL_BUDGET base pixels per grid
    # step, capped so single-image calls still yield >= 2 grid steps (megacore).
    tile_h = _round_up(H, STRIP)
    budget_rows = max(STRIP, (TILE_PIXEL_BUDGET // w_out) // STRIP * STRIP)
    tile_h = min(tile_h, budget_rows)
    if N == 1 and H > STRIP:
        tile_h = min(tile_h, max(STRIP, _round_up(_cdiv(H, 2), STRIP)))
    T = _cdiv(H, tile_h)
    h_out = T * tile_h
    h_tot = h_out + STRIP            # + 8 bottom-halo rows (zeros past the image)

    # One zero-padded copy of the input (Conv2d padding=2 semantics).  The old
    # overlapping-window HBM materialisation is gone: row tiles read this array
    # directly and the bottom halo comes from a second BlockSpec on it.
    # TODO(synk): the pad copy could also be removed with a pl.ANY input and a
    # manual halo DMA.
    x2 = x[:, 0].astype(jnp.float32)
    xpad = jnp.pad(x2, ((0, 0), (PAD, h_tot - H - PAD), (PAD, w_in - W - PAD)))

    # Conv taps as an MXU weight matrix: wmat[c*8 + r, dj*16 + i] = W[c, i-r, dj]
    # (zero outside 0 <= i-r <= 4).  Centre tap is applied in f32 in-kernel, so
    # it is zeroed here.
    w3 = weight.reshape(OUTC, KSIZE, KSIZE).astype(jnp.float32)
    wc = w3[:, PAD, PAD]
    w_nc = w3.at[:, PAD, PAD].set(0.0)
    wmat = jnp.zeros((OUTC, STRIP, KSIZE, KROWS), jnp.float32)
    for r in range(STRIP):
        wmat = wmat.at[:, r, :, r:r + KSIZE].set(jnp.transpose(w_nc, (0, 2, 1)))
    wmat = wmat.reshape(MDIM, KDIM).astype(jnp.bfloat16)

    kernel = functools.partial(_edgesr_kernel, tile_h=tile_h, w_out=w_out)

    out = pl.pallas_call(
        kernel,
        out_shape=jax.ShapeDtypeStruct((N, S2, h_out, w_out), jnp.float32),
        grid_spec=pltpu.PrefetchScalarGridSpec(
            num_scalar_prefetch=0,
            grid=(N, T),
            in_specs=[
                # main row tile (tile_h padded rows)
                pl.BlockSpec((1, tile_h, w_in), lambda n, t: (n, t, 0)),
                # 8-row bottom halo of the same array
                pl.BlockSpec((1, STRIP, w_in),
                             lambda n, t: (n, (t + 1) * (tile_h // STRIP), 0)),
                # MXU weight matrix, fully VMEM-resident
                pl.BlockSpec((MDIM, KDIM), lambda n, t: (0, 0)),
                # centre-tap weights + bias as SMEM scalars
                pl.BlockSpec(memory_space=pltpu.MemorySpace.SMEM),
                pl.BlockSpec(memory_space=pltpu.MemorySpace.SMEM),
            ],
            out_specs=pl.BlockSpec((1, S2, tile_h, w_out),
                                   lambda n, t: (n, 0, t, 0)),
        ),
        compiler_params=pltpu.CompilerParams(
            dimension_semantics=("parallel", "parallel"),
            vmem_limit_bytes=32 * 1024 * 1024,
        ),
    )(xpad, xpad, wmat, wc, bias.astype(jnp.float32))

    # PixelShuffle placement: sub = i*STRIDE + j -> (h*STRIDE + i, w*STRIDE + j).
    # TODO(synk): this depth-to-space is one output-sized XLA pass; it could be
    # folded into the kernel store with (sublane, lane)-strided writes.
    out = out[:, :, :H, :W]
    out = out.reshape(N, STRIDE, STRIDE, H, W)
    out = out.transpose(0, 3, 1, 4, 2).reshape(N, 1, H * STRIDE, W * STRIDE)
    return out


if __name__ == "__main__":
    key = jax.random.PRNGKey(0)
    kx, kw, kb = jax.random.split(key, 3)

    # Deterministic parameters mirroring the module's __init__:
    # xavier_normal_(gain=1.0) on (24, 1, 5, 5), then centre tap set to 1.0;
    # bias ~ U(-1/sqrt(fan_in), 1/sqrt(fan_in)) like PyTorch Conv2d default.
    fan_in = 1 * KSIZE * KSIZE
    fan_out = OUTC * KSIZE * KSIZE
    std = (2.0 / (fan_in + fan_out)) ** 0.5
    weight = std * jax.random.normal(kw, (OUTC, 1, KSIZE, KSIZE), jnp.float32)
    weight = weight.at[:, :, PAD, PAD].set(1.0)
    bound = 1.0 / (fan_in ** 0.5)
    bias = jax.random.uniform(kb, (OUTC,), jnp.float32, -bound, bound)

    # Small input consistent with the module: N=2, C=1, H=W=16.
    x = jax.random.normal(kx, (2, 1, 16, 16), jnp.float32)

    forward = jax.jit(edgesr_tr_forward)
    out = forward(x, weight, bias)
    jax.block_until_ready(out)
    assert out.shape == (2, 1, 16 * STRIDE, 16 * STRIDE)
    print("KERNEL_OK")
</pallas_src>

<mosaic_0001>
module attributes {stable_mosaic.version = 11 : i64} {
  func.func @_edgesr_kernel(%arg0: i32, %arg1: i32, %arg2: memref<1x16x256xf32, #tpu.memory_space<vmem>>, %arg3: memref<1x8x256xf32, #tpu.memory_space<vmem>>, %arg4: memref<192x80xbf16, #tpu.memory_space<vmem>>, %arg5: memref<24xf32, #tpu.memory_space<smem>>, %arg6: memref<24xf32, #tpu.memory_space<smem>>, %arg7: memref<1x4x16x128xf32, #tpu.memory_space<vmem>>) attributes {dimension_semantics = [#tpu.dimension_semantics<parallel>, #tpu.dimension_semantics<parallel>], iteration_bounds = array<i64: 2, 1>, scalar_prefetch = 0 : i64, scratch_operands = 0 : i64, tpu.core_type = #tpu.core_type<tc>, window_params = [{transform_indices = @transform_0, window_bounds = array<i64: 1, 16, 256>}, {transform_indices = @transform_1, window_bounds = array<i64: 1, 8, 256>}, {pipeline_mode = #tpu.pipeline_mode<synchronous>, transform_indices = @transform_2, window_bounds = array<i64: 192, 80>}, {transform_indices = @transform_3, window_bounds = array<i64: 24>}, {transform_indices = @transform_4, window_bounds = array<i64: 24>}, {transform_indices = @transform_5, window_bounds = array<i64: 1, 4, 16, 128>}]} {
    %c0 = arith.constant 0 : index
    %c0_0 = arith.constant 0 : index
    %0 = vector.load %arg4[%c0, %c0_0] : memref<192x80xbf16, #tpu.memory_space<vmem>>, vector<192x80xbf16>
    %c0_i32 = arith.constant 0 : i32
    %c1_i32 = arith.constant 1 : i32
    %1 = arith.muli %c0_i32, %c1_i32 : i32
    %c0_i32_1 = arith.constant 0 : i32
    %2 = arith.addi %c0_i32_1, %1 : i32
    %c8_i32 = arith.constant 8 : i32
    %3 = arith.muli %2, %c8_i32 : i32
    %4 = tpu.assume_multiple %3, 8 : i32
    %c0_2 = arith.constant 0 : index
    %5 = arith.index_cast %4 : i32 to index
    %c0_3 = arith.constant 0 : index
    %6 = vector.load %arg2[%c0_2, %5, %c0_3] : memref<1x16x256xf32, #tpu.memory_space<vmem>>, vector<1x16x256xf32>
    %7 = vector.shape_cast %6 : vector<1x16x256xf32> to vector<16x256xf32>
    %8 = arith.truncf %7 : vector<16x256xf32> to vector<16x256xbf16>
    %9 = vector.extract_strided_slice %8 {offsets = [0, 0], sizes = [16, 128], strides = [1, 1]} : vector<16x256xbf16> to vector<16x128xbf16>
    %10 = vector.extract_strided_slice %8 {offsets = [0, 1], sizes = [16, 128], strides = [1, 1]} : vector<16x256xbf16> to vector<16x128xbf16>
    %11 = vector.extract_strided_slice %8 {offsets = [0, 2], sizes = [16, 128], strides = [1, 1]} : vector<16x256xbf16> to vector<16x128xbf16>
    %12 = vector.extract_strided_slice %8 {offsets = [0, 3], sizes = [16, 128], strides = [1, 1]} : vector<16x256xbf16> to vector<16x128xbf16>
    %13 = vector.extract_strided_slice %8 {offsets = [0, 4], sizes = [16, 128], strides = [1, 1]} : vector<16x256xbf16> to vector<16x128xbf16>
    %14 = tpu.concatenate %9, %10, %11, %12, %13 in 0 : vector<16x128xbf16>, vector<16x128xbf16>, vector<16x128xbf16>, vector<16x128xbf16>, vector<16x128xbf16> -> vector<80x128xbf16>
    %cst = arith.constant dense<0.000000e+00> : vector<192x128xf32>
    %15 = tpu.matmul %0, %14, %cst {dimension_numbers = #tpu.dot_dimension_numbers<[1], [0], [0], [1], [0, 0, 1, 1], [], []>} : vector<192x80xbf16>, vector<80x128xbf16>, vector<192x128xf32> -> vector<192x128xf32>
    %16 = vector.extract_strided_slice %7 {offsets = [2, 2], sizes = [8, 128], strides = [1, 1]} : vector<16x256xf32> to vector<8x128xf32>
    %17 = vector.extract_strided_slice %15 {offsets = [0, 0], sizes = [8, 128], strides = [1, 1]} : vector<192x128xf32> to vector<8x128xf32>
    %c0_4 = arith.constant 0 : index
    %18 = memref.load %arg5[%c0_4] : memref<24xf32, #tpu.memory_space<smem>>
    %19 = vector.broadcast %18 : f32 to vector<8x128xf32>
    %20 = arith.mulf %19, %16 : vector<8x128xf32>
    %c0_5 = arith.constant 0 : index
    %21 = memref.load %arg6[%c0_5] : memref<24xf32, #tpu.memory_space<smem>>
    %22 = vector.broadcast %21 : f32 to vector<8x128xf32>
    %23 = arith.addf %20, %22 : vector<8x128xf32>
    %24 = arith.addf %17, %23 : vector<8x128xf32>
    %25 = vector.extract_strided_slice %15 {offsets = [32, 0], sizes = [8, 128], strides = [1, 1]} : vector<192x128xf32> to vector<8x128xf32>
    %c4 = arith.constant 4 : index
    %26 = memref.load %arg5[%c4] : memref<24xf32, #tpu.memory_space<smem>>
    %27 = vector.broadcast %26 : f32 to vector<8x128xf32>
    %28 = arith.mulf %27, %16 : vector<8x128xf32>
    %c4_6 = arith.constant 4 : index
    %29 = memref.load %arg6[%c4_6] : memref<24xf32, #tpu.memory_space<smem>>
    %30 = vector.broadcast %29 : f32 to vector<8x128xf32>
    %31 = arith.addf %28, %30 : vector<8x128xf32>
    %32 = arith.addf %25, %31 : vector<8x128xf32>
    %33 = vector.extract_strided_slice %15 {offsets = [64, 0], sizes = [8, 128], strides = [1, 1]} : vector<192x128xf32> to vector<8x128xf32>
    %c8 = arith.constant 8 : index
    %34 = memref.load %arg5[%c8] : memref<24xf32, #tpu.memory_space<smem>>
    %35 = vector.broadcast %34 : f32 to vector<8x128xf32>
    %36 = arith.mulf %35, %16 : vector<8x128xf32>
    %c8_7 = arith.constant 8 : index
    %37 = memref.load %arg6[%c8_7] : memref<24xf32, #tpu.memory_space<smem>>
    %38 = vector.broadcast %37 : f32 to vector<8x128xf32>
    %39 = arith.addf %36, %38 : vector<8x128xf32>
    %40 = arith.addf %33, %39 : vector<8x128xf32>
    %41 = vector.extract_strided_slice %15 {offsets = [96, 0], sizes = [8, 128], strides = [1, 1]} : vector<192x128xf32> to vector<8x128xf32>
    %c12 = arith.constant 12 : index
    %42 = memref.load %arg5[%c12] : memref<24xf32, #tpu.memory_space<smem>>
    %43 = vector.broadcast %42 : f32 to vector<8x128xf32>
    %44 = arith.mulf %43, %16 : vector<8x128xf32>
    %c12_8 = arith.constant 12 : index
    %45 = memref.load %arg6[%c12_8] : memref<24xf32, #tpu.memory_space<smem>>
    %46 = vector.broadcast %45 : f32 to vector<8x128xf32>
    %47 = arith.addf %44, %46 : vector<8x128xf32>
    %48 = arith.addf %41, %47 : vector<8x128xf32>
    %49 = vector.extract_strided_slice %15 {offsets = [128, 0], sizes = [8, 128], strides = [1, 1]} : vector<192x128xf32> to vector<8x128xf32>
    %c16 = arith.constant 16 : index
    %50 = memref.load %arg5[%c16] : memref<24xf32, #tpu.memory_space<smem>>
    %51 = vector.broadcast %50 : f32 to vector<8x128xf32>
    %52 = arith.mulf %51, %16 : vector<8x128xf32>
    %c16_9 = arith.constant 16 : index
    %53 = memref.load %arg6[%c16_9] : memref<24xf32, #tpu.memory_space<smem>>
    %54 = vector.broadcast %53 : f32 to vector<8x128xf32>
    %55 = arith.addf %52, %54 : vector<8x128xf32>
    %56 = arith.addf %49, %55 : vector<8x128xf32>
    %57 = vector.extract_strided_slice %15 {offsets = [160, 0], sizes = [8, 128], strides = [1, 1]} : vector<192x128xf32> to vector<8x128xf32>
    %c20 = arith.constant 20 : index
    %58 = memref.load %arg5[%c20] : memref<24xf32, #tpu.memory_space<smem>>
    %59 = vector.broadcast %58 : f32 to vector<8x128xf32>
    %60 = arith.mulf %59, %16 : vector<8x128xf32>
    %c20_10 = arith.constant 20 : index
    %61 = memref.load %arg6[%c20_10] : memref<24xf32, #tpu.memory_space<smem>>
    %62 = vector.broadcast %61 : f32 to vector<8x128xf32>
    %63 = arith.addf %60, %62 : vector<8x128xf32>
    %64 = arith.addf %57, %63 : vector<8x128xf32>
    %65 = arith.mulf %24, %56 : vector<8x128xf32>
    %66 = arith.mulf %32, %64 : vector<8x128xf32>
    %67 = arith.maximumf %65, %66 : vector<8x128xf32>
    %68 = arith.subf %65, %67 : vector<8x128xf32>
    %69 = math.exp %68 : vector<8x128xf32>
    %70 = arith.subf %66, %67 : vector<8x128xf32>
    %71 = math.exp %70 : vector<8x128xf32>
    %72 = arith.mulf %69, %40 : vector<8x128xf32>
    %73 = arith.mulf %71, %48 : vector<8x128xf32>
    %74 = arith.addf %72, %73 : vector<8x128xf32>
    %75 = arith.addf %69, %71 : vector<8x128xf32>
    %76 = tpu.reciprocal %75 {approx = true} : vector<8x128xf32> -> vector<8x128xf32>
    %77 = arith.mulf %74, %76 : vector<8x128xf32>
    %c0_11 = arith.constant 0 : index
    %c0_12 = arith.constant 0 : index
    %78 = arith.index_cast %4 : i32 to index
    %c0_13 = arith.constant 0 : index
    %79 = vector.load %arg7[%c0_11, %c0_12, %78, %c0_13] : memref<1x4x16x128xf32, #tpu.memory_space<vmem>>, vector<1x1x8x128xf32>
    %80 = vector.shape_cast %79 : vector<1x1x8x128xf32> to vector<8x128xf32>
    %81 = vector.shape_cast %77 : vector<8x128xf32> to vector<1x1x8x128xf32>
    tpu.vector_store %arg7[%c0_11, %c0_12, %78, %c0_13], %81 {strides = array<i32>} : memref<1x4x16x128xf32, #tpu.memory_space<vmem>>, vector<1x1x8x128xf32>,
    %82 = vector.extract_strided_slice %15 {offsets = [8, 0], sizes = [8, 128], strides = [1, 1]} : vector<192x128xf32> to vector<8x128xf32>
    %c1 = arith.constant 1 : index
    %83 = memref.load %arg5[%c1] : memref<24xf32, #tpu.memory_space<smem>>
    %84 = vector.broadcast %83 : f32 to vector<8x128xf32>
    %85 = arith.mulf %84, %16 : vector<8x128xf32>
    %c1_14 = arith.constant 1 : index
    %86 = memref.load %arg6[%c1_14] : memref<24xf32, #tpu.memory_space<smem>>
    %87 = vector.broadcast %86 : f32 to vector<8x128xf32>
    %88 = arith.addf %85, %87 : vector<8x128xf32>
    %89 = arith.addf %82, %88 : vector<8x128xf32>
    %90 = vector.extract_strided_slice %15 {offsets = [40, 0], sizes = [8, 128], strides = [1, 1]} : vector<192x128xf32> to vector<8x128xf32>
    %c5 = arith.constant 5 : index
    %91 = memref.load %arg5[%c5] : memref<24xf32, #tpu.memory_space<smem>>
    %92 = vector.broadcast %91 : f32 to vector<8x128xf32>
    %93 = arith.mulf %92, %16 : vector<8x128xf32>
    %c5_15 = arith.constant 5 : index
    %94 = memref.load %arg6[%c5_15] : memref<24xf32, #tpu.memory_space<smem>>
    %95 = vector.broadcast %94 : f32 to vector<8x128xf32>
    %96 = arith.addf %93, %95 : vector<8x128xf32>
    %97 = arith.addf %90, %96 : vector<8x128xf32>
    %98 = vector.extract_strided_slice %15 {offsets = [72, 0], sizes = [8, 128], strides = [1, 1]} : vector<192x128xf32> to vector<8x128xf32>
    %c9 = arith.constant 9 : index
    %99 = memref.load %arg5[%c9] : memref<24xf32, #tpu.memory_space<smem>>
    %100 = vector.broadcast %99 : f32 to vector<8x128xf32>
    %101 = arith.mulf %100, %16 : vector<8x128xf32>
    %c9_16 = arith.constant 9 : index
    %102 = memref.load %arg6[%c9_16] : memref<24xf32, #tpu.memory_space<smem>>
    %103 = vector.broadcast %102 : f32 to vector<8x128xf32>
    %104 = arith.addf %101, %103 : vector<8x128xf32>
    %105 = arith.addf %98, %104 : vector<8x128xf32>
    %106 = vector.extract_strided_slice %15 {offsets = [104, 0], sizes = [8, 128], strides = [1, 1]} : vector<192x128xf32> to vector<8x128xf32>
    %c13 = arith.constant 13 : index
    %107 = memref.load %arg5[%c13] : memref<24xf32, #tpu.memory_space<smem>>
    %108 = vector.broadcast %107 : f32 to vector<8x128xf32>
    %109 = arith.mulf %108, %16 : vector<8x128xf32>
    %c13_17 = arith.constant 13 : index
    %110 = memref.load %arg6[%c13_17] : memref<24xf32, #tpu.memory_space<smem>>
    %111 = vector.broadcast %110 : f32 to vector<8x128xf32>
    %112 = arith.addf %109, %111 : vector<8x128xf32>
    %113 = arith.addf %106, %112 : vector<8x128xf32>
    %114 = vector.extract_strided_slice %15 {offsets = [136, 0], sizes = [8, 128], strides = [1, 1]} : vector<192x128xf32> to vector<8x128xf32>
    %c17 = arith.constant 17 : index
    %115 = memref.load %arg5[%c17] : memref<24xf32, #tpu.memory_space<smem>>
    %116 = vector.broadcast %115 : f32 to vector<8x128xf32>
    %117 = arith.mulf %116, %16 : vector<8x128xf32>
    %c17_18 = arith.constant 17 : index
    %118 = memref.load %arg6[%c17_18] : memref<24xf32, #tpu.memory_space<smem>>
    %119 = vector.broadcast %118 : f32 to vector<8x128xf32>
    %120 = arith.addf %117, %119 : vector<8x128xf32>
    %121 = arith.addf %114, %120 : vector<8x128xf32>
    %122 = vector.extract_strided_slice %15 {offsets = [168, 0], sizes = [8, 128], strides = [1, 1]} : vector<192x128xf32> to vector<8x128xf32>
    %c21 = arith.constant 21 : index
    %123 = memref.load %arg5[%c21] : memref<24xf32, #tpu.memory_space<smem>>
    %124 = vector.broadcast %123 : f32 to vector<8x128xf32>
    %125 = arith.mulf %124, %16 : vector<8x128xf32>
    %c21_19 = arith.constant 21 : index
    %126 = memref.load %arg6[%c21_19] : memref<24xf32, #tpu.memory_space<smem>>
    %127 = vector.broadcast %126 : f32 to vector<8x128xf32>
    %128 = arith.addf %125, %127 : vector<8x128xf32>
    %129 = arith.addf %122, %128 : vector<8x128xf32>
    %130 = arith.mulf %89, %121 : vector<8x128xf32>
    %131 = arith.mulf %97, %129 : vector<8x128xf32>
    %132 = arith.maximumf %130, %131 : vector<8x128xf32>
    %133 = arith.subf %130, %132 : vector<8x128xf32>
    %134 = math.exp %133 : vector<8x128xf32>
    %135 = arith.subf %131, %132 : vector<8x128xf32>
    %136 = math.exp %135 : vector<8x128xf32>
    %137 = arith.mulf %134, %105 : vector<8x128xf32>
    %138 = arith.mulf %136, %113 : vector<8x128xf32>
    %139 = arith.addf %137, %138 : vector<8x128xf32>
    %140 = arith.addf %134, %136 : vector<8x128xf32>
    %141 = tpu.reciprocal %140 {approx = true} : vector<8x128xf32> -> vector<8x128xf32>
    %142 = arith.mulf %139, %141 : vector<8x128xf32>
    %c0_20 = arith.constant 0 : index
    %c1_21 = arith.constant 1 : index
    %143 = arith.index_cast %4 : i32 to index
    %c0_22 = arith.constant 0 : index
    %144 = vector.load %arg7[%c0_20, %c1_21, %143, %c0_22] : memref<1x4x16x128xf32, #tpu.memory_space<vmem>>, vector<1x1x8x128xf32>
    %145 = vector.shape_cast %144 : vector<1x1x8x128xf32> to vector<8x128xf32>
    %146 = vector.shape_cast %142 : vector<8x128xf32> to vector<1x1x8x128xf32>
    tpu.vector_store %arg7[%c0_20, %c1_21, %143, %c0_22], %146 {strides = array<i32>} : memref<1x4x16x128xf32, #tpu.memory_space<vmem>>, vector<1x1x8x128xf32>,
    %147 = vector.extract_strided_slice %15 {offsets = [16, 0], sizes = [8, 128], strides = [1, 1]} : vector<192x128xf32> to vector<8x128xf32>
    %c2 = arith.constant 2 : index
    %148 = memref.load %arg5[%c2] : memref<24xf32, #tpu.memory_space<smem>>
    %149 = vector.broadcast %148 : f32 to vector<8x128xf32>
    %150 = arith.mulf %149, %16 : vector<8x128xf32>
    %c2_23 = arith.constant 2 : index
    %151 = memref.load %arg6[%c2_23] : memref<24xf32, #tpu.memory_space<smem>>
    %152 = vector.broadcast %151 : f32 to vector<8x128xf32>
    %153 = arith.addf %150, %152 : vector<8x128xf32>
    %154 = arith.addf %147, %153 : vector<8x128xf32>
    %155 = vector.extract_strided_slice %15 {offsets = [48, 0], sizes = [8, 128], strides = [1, 1]} : vector<192x128xf32> to vector<8x128xf32>
    %c6 = arith.constant 6 : index
    %156 = memref.load %arg5[%c6] : memref<24xf32, #tpu.memory_space<smem>>
    %157 = vector.broadcast %156 : f32 to vector<8x128xf32>
    %158 = arith.mulf %157, %16 : vector<8x128xf32>
    %c6_24 = arith.constant 6 : index
    %159 = memref.load %arg6[%c6_24] : memref<24xf32, #tpu.memory_space<smem>>
    %160 = vector.broadcast %159 : f32 to vector<8x128xf32>
    %161 = arith.addf %158, %160 : vector<8x128xf32>
    %162 = arith.addf %155, %161 : vector<8x128xf32>
    %163 = vector.extract_strided_slice %15 {offsets = [80, 0], sizes = [8, 128], strides = [1, 1]} : vector<192x128xf32> to vector<8x128xf32>
    %c10 = arith.constant 10 : index
    %164 = memref.load %arg5[%c10] : memref<24xf32, #tpu.memory_space<smem>>
    %165 = vector.broadcast %164 : f32 to vector<8x128xf32>
    %166 = arith.mulf %165, %16 : vector<8x128xf32>
    %c10_25 = arith.constant 10 : index
    %167 = memref.load %arg6[%c10_25] : memref<24xf32, #tpu.memory_space<smem>>
    %168 = vector.broadcast %167 : f32 to vector<8x128xf32>
    %169 = arith.addf %166, %168 : vector<8x128xf32>
    %170 = arith.addf %163, %169 : vector<8x128xf32>
    %171 = vector.extract_strided_slice %15 {offsets = [112, 0], sizes = [8, 128], strides = [1, 1]} : vector<192x128xf32> to vector<8x128xf32>
    %c14 = arith.constant 14 : index
    %172 = memref.load %arg5[%c14] : memref<24xf32, #tpu.memory_space<smem>>
    %173 = vector.broadcast %172 : f32 to vector<8x128xf32>
    %174 = arith.mulf %173, %16 : vector<8x128xf32>
    %c14_26 = arith.constant 14 : index
    %175 = memref.load %arg6[%c14_26] : memref<24xf32, #tpu.memory_space<smem>>
    %176 = vector.broadcast %175 : f32 to vector<8x128xf32>
    %177 = arith.addf %174, %176 : vector<8x128xf32>
    %178 = arith.addf %171, %177 : vector<8x128xf32>
    %179 = vector.extract_strided_slice %15 {offsets = [144, 0], sizes = [8, 128], strides = [1, 1]} : vector<192x128xf32> to vector<8x128xf32>
    %c18 = arith.constant 18 : index
    %180 = memref.load %arg5[%c18] : memref<24xf32, #tpu.memory_space<smem>>
    %181 = vector.broadcast %180 : f32 to vector<8x128xf32>
    %182 = arith.mulf %181, %16 : vector<8x128xf32>
    %c18_27 = arith.constant 18 : index
    %183 = memref.load %arg6[%c18_27] : memref<24xf32, #tpu.memory_space<smem>>
    %184 = vector.broadcast %183 : f32 to vector<8x128xf32>
    %185 = arith.addf %182, %184 : vector<8x128xf32>
    %186 = arith.addf %179, %185 : vector<8x128xf32>
    %187 = vector.extract_strided_slice %15 {offsets = [176, 0], sizes = [8, 128], strides = [1, 1]} : vector<192x128xf32> to vector<8x128xf32>
    %c22 = arith.constant 22 : index
    %188 = memref.load %arg5[%c22] : memref<24xf32, #tpu.memory_space<smem>>
    %189 = vector.broadcast %188 : f32 to vector<8x128xf32>
    %190 = arith.mulf %189, %16 : vector<8x128xf32>
    %c22_28 = arith.constant 22 : index
    %191 = memref.load %arg6[%c22_28] : memref<24xf32, #tpu.memory_space<smem>>
    %192 = vector.broadcast %191 : f32 to vector<8x128xf32>
    %193 = arith.addf %190, %192 : vector<8x128xf32>
    %194 = arith.addf %187, %193 : vector<8x128xf32>
    %195 = arith.mulf %154, %186 : vector<8x128xf32>
    %196 = arith.mulf %162, %194 : vector<8x128xf32>
    %197 = arith.maximumf %195, %196 : vector<8x128xf32>
    %198 = arith.subf %195, %197 : vector<8x128xf32>
    %199 = math.exp %198 : vector<8x128xf32>
    %200 = arith.subf %196, %197 : vector<8x128xf32>
    %201 = math.exp %200 : vector<8x128xf32>
    %202 = arith.mulf %199, %170 : vector<8x128xf32>
    %203 = arith.mulf %201, %178 : vector<8x128xf32>
    %204 = arith.addf %202, %203 : vector<8x128xf32>
    %205 = arith.addf %199, %201 : vector<8x128xf32>
    %206 = tpu.reciprocal %205 {approx = true} : vector<8x128xf32> -> vector<8x128xf32>
    %207 = arith.mulf %204, %206 : vector<8x128xf32>
    %c0_29 = arith.constant 0 : index
    %c2_30 = arith.constant 2 : index
    %208 = arith.index_cast %4 : i32 to index
    %c0_31 = arith.constant 0 : index
    %209 = vector.load %arg7[%c0_29, %c2_30, %208, %c0_31] : memref<1x4x16x128xf32, #tpu.memory_space<vmem>>, vector<1x1x8x128xf32>
    %210 = vector.shape_cast %209 : vector<1x1x8x128xf32> to vector<8x128xf32>
    %211 = vector.shape_cast %207 : vector<8x128xf32> to vector<1x1x8x128xf32>
    tpu.vector_store %arg7[%c0_29, %c2_30, %208, %c0_31], %211 {strides = array<i32>} : memref<1x4x16x128xf32, #tpu.memory_space<vmem>>, vector<1x1x8x128xf32>,
    %212 = vector.extract_strided_slice %15 {offsets = [24, 0], sizes = [8, 128], strides = [1, 1]} : vector<192x128xf32> to vector<8x128xf32>
    %c3 = arith.constant 3 : index
    %213 = memref.load %arg5[%c3] : memref<24xf32, #tpu.memory_space<smem>>
    %214 = vector.broadcast %213 : f32 to vector<8x128xf32>
    %215 = arith.mulf %214, %16 : vector<8x128xf32>
    %c3_32 = arith.constant 3 : index
    %216 = memref.load %arg6[%c3_32] : memref<24xf32, #tpu.memory_space<smem>>
    %217 = vector.broadcast %216 : f32 to vector<8x128xf32>
    %218 = arith.addf %215, %217 : vector<8x128xf32>
    %219 = arith.addf %212, %218 : vector<8x128xf32>
    %220 = vector.extract_strided_slice %15 {offsets = [56, 0], sizes = [8, 128], strides = [1, 1]} : vector<192x128xf32> to vector<8x128xf32>
    %c7 = arith.constant 7 : index
    %221 = memref.load %arg5[%c7] : memref<24xf32, #tpu.memory_space<smem>>
    %222 = vector.broadcast %221 : f32 to vector<8x128xf32>
    %223 = arith.mulf %222, %16 : vector<8x128xf32>
    %c7_33 = arith.constant 7 : index
    %224 = memref.load %arg6[%c7_33] : memref<24xf32, #tpu.memory_space<smem>>
    %225 = vector.broadcast %224 : f32 to vector<8x128xf32>
    %226 = arith.addf %223, %225 : vector<8x128xf32>
    %227 = arith.addf %220, %226 : vector<8x128xf32>
    %228 = vector.extract_strided_slice %15 {offsets = [88, 0], sizes = [8, 128], strides = [1, 1]} : vector<192x128xf32> to vector<8x128xf32>
    %c11 = arith.constant 11 : index
    %229 = memref.load %arg5[%c11] : memref<24xf32, #tpu.memory_space<smem>>
    %230 = vector.broadcast %229 : f32 to vector<8x128xf32>
    %231 = arith.mulf %230, %16 : vector<8x128xf32>
    %c11_34 = arith.constant 11 : index
    %232 = memref.load %arg6[%c11_34] : memref<24xf32, #tpu.memory_space<smem>>
    %233 = vector.broadcast %232 : f32 to vector<8x128xf32>
    %234 = arith.addf %231, %233 : vector<8x128xf32>
    %235 = arith.addf %228, %234 : vector<8x128xf32>
    %236 = vector.extract_strided_slice %15 {offsets = [120, 0], sizes = [8, 128], strides = [1, 1]} : vector<192x128xf32> to vector<8x128xf32>
    %c15 = arith.constant 15 : index
    %237 = memref.load %arg5[%c15] : memref<24xf32, #tpu.memory_space<smem>>
    %238 = vector.broadcast %237 : f32 to vector<8x128xf32>
    %239 = arith.mulf %238, %16 : vector<8x128xf32>
    %c15_35 = arith.constant 15 : index
    %240 = memref.load %arg6[%c15_35] : memref<24xf32, #tpu.memory_space<smem>>
    %241 = vector.broadcast %240 : f32 to vector<8x128xf32>
    %242 = arith.addf %239, %241 : vector<8x128xf32>
    %243 = arith.addf %236, %242 : vector<8x128xf32>
    %244 = vector.extract_strided_slice %15 {offsets = [152, 0], sizes = [8, 128], strides = [1, 1]} : vector<192x128xf32> to vector<8x128xf32>
    %c19 = arith.constant 19 : index
    %245 = memref.load %arg5[%c19] : memref<24xf32, #tpu.memory_space<smem>>
    %246 = vector.broadcast %245 : f32 to vector<8x128xf32>
    %247 = arith.mulf %246, %16 : vector<8x128xf32>
    %c19_36 = arith.constant 19 : index
    %248 = memref.load %arg6[%c19_36] : memref<24xf32, #tpu.memory_space<smem>>
    %249 = vector.broadcast %248 : f32 to vector<8x128xf32>
    %250 = arith.addf %247, %249 : vector<8x128xf32>
    %251 = arith.addf %244, %250 : vector<8x128xf32>
    %252 = vector.extract_strided_slice %15 {offsets = [184, 0], sizes = [8, 128], strides = [1, 1]} : vector<192x128xf32> to vector<8x128xf32>
    %c23 = arith.constant 23 : index
    %253 = memref.load %arg5[%c23] : memref<24xf32, #tpu.memory_space<smem>>
    %254 = vector.broadcast %253 : f32 to vector<8x128xf32>
    %255 = arith.mulf %254, %16 : vector<8x128xf32>
    %c23_37 = arith.constant 23 : index
    %256 = memref.load %arg6[%c23_37] : memref<24xf32, #tpu.memory_space<smem>>
    %257 = vector.broadcast %256 : f32 to vector<8x128xf32>
    %258 = arith.addf %255, %257 : vector<8x128xf32>
    %259 = arith.addf %252, %258 : vector<8x128xf32>
    %260 = arith.mulf %219, %251 : vector<8x128xf32>
    %261 = arith.mulf %227, %259 : vector<8x128xf32>
    %262 = arith.maximumf %260, %261 : vector<8x128xf32>
    %263 = arith.subf %260, %262 : vector<8x128xf32>
    %264 = math.exp %263 : vector<8x128xf32>
    %265 = arith.subf %261, %262 : vector<8x128xf32>
    %266 = math.exp %265 : vector<8x128xf32>
    %267 = arith.mulf %264, %235 : vector<8x128xf32>
    %268 = arith.mulf %266, %243 : vector<8x128xf32>
    %269 = arith.addf %267, %268 : vector<8x128xf32>
    %270 = arith.addf %264, %266 : vector<8x128xf32>
    %271 = tpu.reciprocal %270 {approx = true} : vector<8x128xf32> -> vector<8x128xf32>
    %272 = arith.mulf %269, %271 : vector<8x128xf32>
    %c0_38 = arith.constant 0 : index
    %c3_39 = arith.constant 3 : index
    %273 = arith.index_cast %4 : i32 to index
    %c0_40 = arith.constant 0 : index
    %274 = vector.load %arg7[%c0_38, %c3_39, %273, %c0_40] : memref<1x4x16x128xf32, #tpu.memory_space<vmem>>, vector<1x1x8x128xf32>
    %275 = vector.shape_cast %274 : vector<1x1x8x128xf32> to vector<8x128xf32>
    %276 = vector.shape_cast %272 : vector<8x128xf32> to vector<1x1x8x128xf32>
    tpu.vector_store %arg7[%c0_38, %c3_39, %273, %c0_40], %276 {strides = array<i32>} : memref<1x4x16x128xf32, #tpu.memory_space<vmem>>, vector<1x1x8x128xf32>,
    %c1_i32_41 = arith.constant 1 : i32
    %c0_42 = arith.constant 0 : index
    %c8_43 = arith.constant 8 : index
    %c0_44 = arith.constant 0 : index
    %277 = vector.load %arg2[%c0_42, %c8_43, %c0_44] : memref<1x16x256xf32, #tpu.memory_space<vmem>>, vector<1x8x256xf32>
    %278 = vector.shape_cast %277 : vector<1x8x256xf32> to vector<8x256xf32>
    %c0_45 = arith.constant 0 : index
    %c0_46 = arith.constant 0 : index
    %c0_47 = arith.constant 0 : index
    %279 = vector.load %arg3[%c0_45, %c0_46, %c0_47] : memref<1x8x256xf32, #tpu.memory_space<vmem>>, vector<1x8x256xf32>
    %280 = vector.shape_cast %279 : vector<1x8x256xf32> to vector<8x256xf32>
    %281 = tpu.concatenate %278, %280 in 0 : vector<8x256xf32>, vector<8x256xf32> -> vector<16x256xf32>
    %282 = arith.truncf %281 : vector<16x256xf32> to vector<16x256xbf16>
    %283 = vector.extract_strided_slice %282 {offsets = [0, 0], sizes = [16, 128], strides = [1, 1]} : vector<16x256xbf16> to vector<16x128xbf16>
    %284 = vector.extract_strided_slice %282 {offsets = [0, 1], sizes = [16, 128], strides = [1, 1]} : vector<16x256xbf16> to vector<16x128xbf16>
    %285 = vector.extract_strided_slice %282 {offsets = [0, 2], sizes = [16, 128], strides = [1, 1]} : vector<16x256xbf16> to vector<16x128xbf16>
    %286 = vector.extract_strided_slice %282 {offsets = [0, 3], sizes = [16, 128], strides = [1, 1]} : vector<16x256xbf16> to vector<16x128xbf16>
    %287 = vector.extract_strided_slice %282 {offsets = [0, 4], sizes = [16, 128], strides = [1, 1]} : vector<16x256xbf16> to vector<16x128xbf16>
    %288 = tpu.concatenate %283, %284, %285, %286, %287 in 0 : vector<16x128xbf16>, vector<16x128xbf16>, vector<16x128xbf16>, vector<16x128xbf16>, vector<16x128xbf16> -> vector<80x128xbf16>
    %cst_48 = arith.constant dense<0.000000e+00> : vector<192x128xf32>
    %289 = tpu.matmul %0, %288, %cst_48 {dimension_numbers = #tpu.dot_dimension_numbers<[1], [0], [0], [1], [0, 0, 1, 1], [], []>} : vector<192x80xbf16>, vector<80x128xbf16>, vector<192x128xf32> -> vector<192x128xf32>
    %290 = vector.extract_strided_slice %281 {offsets = [2, 2], sizes = [8, 128], strides = [1, 1]} : vector<16x256xf32> to vector<8x128xf32>
    %291 = vector.extract_strided_slice %289 {offsets = [0, 0], sizes = [8, 128], strides = [1, 1]} : vector<192x128xf32> to vector<8x128xf32>
    %c0_49 = arith.constant 0 : index
    %292 = memref.load %arg5[%c0_49] : memref<24xf32, #tpu.memory_space<smem>>
    %293 = vector.broadcast %292 : f32 to vector<8x128xf32>
    %294 = arith.mulf %293, %290 : vector<8x128xf32>
    %c0_50 = arith.constant 0 : index
    %295 = memref.load %arg6[%c0_50] : memref<24xf32, #tpu.memory_space<smem>>
    %296 = vector.broadcast %295 : f32 to vector<8x128xf32>
    %297 = arith.addf %294, %296 : vector<8x128xf32>
    %298 = arith.addf %291, %297 : vector<8x128xf32>
    %299 = vector.extract_strided_slice %289 {offsets = [32, 0], sizes = [8, 128], strides = [1, 1]} : vector<192x128xf32> to vector<8x128xf32>
    %c4_51 = arith.constant 4 : index
    %300 = memref.load %arg5[%c4_51] : memref<24xf32, #tpu.memory_space<smem>>
    %301 = vector.broadcast %300 : f32 to vector<8x128xf32>
    %302 = arith.mulf %301, %290 : vector<8x128xf32>
    %c4_52 = arith.constant 4 : index
    %303 = memref.load %arg6[%c4_52] : memref<24xf32, #tpu.memory_space<smem>>
    %304 = vector.broadcast %303 : f32 to vector<8x128xf32>
    %305 = arith.addf %302, %304 : vector<8x128xf32>
    %306 = arith.addf %299, %305 : vector<8x128xf32>
    %307 = vector.extract_strided_slice %289 {offsets = [64, 0], sizes = [8, 128], strides = [1, 1]} : vector<192x128xf32> to vector<8x128xf32>
    %c8_53 = arith.constant 8 : index
    %308 = memref.load %arg5[%c8_53] : memref<24xf32, #tpu.memory_space<smem>>
    %309 = vector.broadcast %308 : f32 to vector<8x128xf32>
    %310 = arith.mulf %309, %290 : vector<8x128xf32>
    %c8_54 = arith.constant 8 : index
    %311 = memref.load %arg6[%c8_54] : memref<24xf32, #tpu.memory_space<smem>>
    %312 = vector.broadcast %311 : f32 to vector<8x128xf32>
    %313 = arith.addf %310, %312 : vector<8x128xf32>
    %314 = arith.addf %307, %313 : vector<8x128xf32>
    %315 = vector.extract_strided_slice %289 {offsets = [96, 0], sizes = [8, 128], strides = [1, 1]} : vector<192x128xf32> to vector<8x128xf32>
    %c12_55 = arith.constant 12 : index
    %316 = memref.load %arg5[%c12_55] : memref<24xf32, #tpu.memory_space<smem>>
    %317 = vector.broadcast %316 : f32 to vector<8x128xf32>
    %318 = arith.mulf %317, %290 : vector<8x128xf32>
    %c12_56 = arith.constant 12 : index
    %319 = memref.load %arg6[%c12_56] : memref<24xf32, #tpu.memory_space<smem>>
    %320 = vector.broadcast %319 : f32 to vector<8x128xf32>
    %321 = arith.addf %318, %320 : vector<8x128xf32>
    %322 = arith.addf %315, %321 : vector<8x128xf32>
    %323 = vector.extract_strided_slice %289 {offsets = [128, 0], sizes = [8, 128], strides = [1, 1]} : vector<192x128xf32> to vector<8x128xf32>
    %c16_57 = arith.constant 16 : index
    %324 = memref.load %arg5[%c16_57] : memref<24xf32, #tpu.memory_space<smem>>
    %325 = vector.broadcast %324 : f32 to vector<8x128xf32>
    %326 = arith.mulf %325, %290 : vector<8x128xf32>
    %c16_58 = arith.constant 16 : index
    %327 = memref.load %arg6[%c16_58] : memref<24xf32, #tpu.memory_space<smem>>
    %328 = vector.broadcast %327 : f32 to vector<8x128xf32>
    %329 = arith.addf %326, %328 : vector<8x128xf32>
    %330 = arith.addf %323, %329 : vector<8x128xf32>
    %331 = vector.extract_strided_slice %289 {offsets = [160, 0], sizes = [8, 128], strides = [1, 1]} : vector<192x128xf32> to vector<8x128xf32>
    %c20_59 = arith.constant 20 : index
    %332 = memref.load %arg5[%c20_59] : memref<24xf32, #tpu.memory_space<smem>>
    %333 = vector.broadcast %332 : f32 to vector<8x128xf32>
    %334 = arith.mulf %333, %290 : vector<8x128xf32>
    %c20_60 = arith.constant 20 : index
    %335 = memref.load %arg6[%c20_60] : memref<24xf32, #tpu.memory_space<smem>>
    %336 = vector.broadcast %335 : f32 to vector<8x128xf32>
    %337 = arith.addf %334, %336 : vector<8x128xf32>
    %338 = arith.addf %331, %337 : vector<8x128xf32>
    %339 = arith.mulf %298, %330 : vector<8x128xf32>
    %340 = arith.mulf %306, %338 : vector<8x128xf32>
    %341 = arith.maximumf %339, %340 : vector<8x128xf32>
    %342 = arith.subf %339, %341 : vector<8x128xf32>
    %343 = math.exp %342 : vector<8x128xf32>
    %344 = arith.subf %340, %341 : vector<8x128xf32>
    %345 = math.exp %344 : vector<8x128xf32>
    %346 = arith.mulf %343, %314 : vector<8x128xf32>
    %347 = arith.mulf %345, %322 : vector<8x128xf32>
    %348 = arith.addf %346, %347 : vector<8x128xf32>
    %349 = arith.addf %343, %345 : vector<8x128xf32>
    %350 = tpu.reciprocal %349 {approx = true} : vector<8x128xf32> -> vector<8x128xf32>
    %351 = arith.mulf %348, %350 : vector<8x128xf32>
    %c0_61 = arith.constant 0 : index
    %c0_62 = arith.constant 0 : index
    %c8_63 = arith.constant 8 : index
    %c0_64 = arith.constant 0 : index
    %352 = vector.load %arg7[%c0_61, %c0_62, %c8_63, %c0_64] : memref<1x4x16x128xf32, #tpu.memory_space<vmem>>, vector<1x1x8x128xf32>
    %353 = vector.shape_cast %352 : vector<1x1x8x128xf32> to vector<8x128xf32>
    %354 = vector.shape_cast %351 : vector<8x128xf32> to vector<1x1x8x128xf32>
    tpu.vector_store %arg7[%c0_61, %c0_62, %c8_63, %c0_64], %354 {strides = array<i32>} : memref<1x4x16x128xf32, #tpu.memory_space<vmem>>, vector<1x1x8x128xf32>,
    %355 = vector.extract_strided_slice %289 {offsets = [8, 0], sizes = [8, 128], strides = [1, 1]} : vector<192x128xf32> to vector<8x128xf32>
    %c1_65 = arith.constant 1 : index
    %356 = memref.load %arg5[%c1_65] : memref<24xf32, #tpu.memory_space<smem>>
    %357 = vector.broadcast %356 : f32 to vector<8x128xf32>
    %358 = arith.mulf %357, %290 : vector<8x128xf32>
    %c1_66 = arith.constant 1 : index
    %359 = memref.load %arg6[%c1_66] : memref<24xf32, #tpu.memory_space<smem>>
    %360 = vector.broadcast %359 : f32 to vector<8x128xf32>
    %361 = arith.addf %358, %360 : vector<8x128xf32>
    %362 = arith.addf %355, %361 : vector<8x128xf32>
    %363 = vector.extract_strided_slice %289 {offsets = [40, 0], sizes = [8, 128], strides = [1, 1]} : vector<192x128xf32> to vector<8x128xf32>
    %c5_67 = arith.constant 5 : index
    %364 = memref.load %arg5[%c5_67] : memref<24xf32, #tpu.memory_space<smem>>
    %365 = vector.broadcast %364 : f32 to vector<8x128xf32>
    %366 = arith.mulf %365, %290 : vector<8x128xf32>
    %c5_68 = arith.constant 5 : index
    %367 = memref.load %arg6[%c5_68] : memref<24xf32, #tpu.memory_space<smem>>
    %368 = vector.broadcast %367 : f32 to vector<8x128xf32>
    %369 = arith.addf %366, %368 : vector<8x128xf32>
    %370 = arith.addf %363, %369 : vector<8x128xf32>
    %371 = vector.extract_strided_slice %289 {offsets = [72, 0], sizes = [8, 128], strides = [1, 1]} : vector<192x128xf32> to vector<8x128xf32>
    %c9_69 = arith.constant 9 : index
    %372 = memref.load %arg5[%c9_69] : memref<24xf32, #tpu.memory_space<smem>>
    %373 = vector.broadcast %372 : f32 to vector<8x128xf32>
    %374 = arith.mulf %373, %290 : vector<8x128xf32>
    %c9_70 = arith.constant 9 : index
    %375 = memref.load %arg6[%c9_70] : memref<24xf32, #tpu.memory_space<smem>>
    %376 = vector.broadcast %375 : f32 to vector<8x128xf32>
    %377 = arith.addf %374, %376 : vector<8x128xf32>
    %378 = arith.addf %371, %377 : vector<8x128xf32>
    %379 = vector.extract_strided_slice %289 {offsets = [104, 0], sizes = [8, 128], strides = [1, 1]} : vector<192x128xf32> to vector<8x128xf32>
    %c13_71 = arith.constant 13 : index
    %380 = memref.load %arg5[%c13_71] : memref<24xf32, #tpu.memory_space<smem>>
    %381 = vector.broadcast %380 : f32 to vector<8x128xf32>
    %382 = arith.mulf %381, %290 : vector<8x128xf32>
    %c13_72 = arith.constant 13 : index
    %383 = memref.load %arg6[%c13_72] : memref<24xf32, #tpu.memory_space<smem>>
    %384 = vector.broadcast %383 : f32 to vector<8x128xf32>
    %385 = arith.addf %382, %384 : vector<8x128xf32>
    %386 = arith.addf %379, %385 : vector<8x128xf32>
    %387 = vector.extract_strided_slice %289 {offsets = [136, 0], sizes = [8, 128], strides = [1, 1]} : vector<192x128xf32> to vector<8x128xf32>
    %c17_73 = arith.constant 17 : index
    %388 = memref.load %arg5[%c17_73] : memref<24xf32, #tpu.memory_space<smem>>
    %389 = vector.broadcast %388 : f32 to vector<8x128xf32>
    %390 = arith.mulf %389, %290 : vector<8x128xf32>
    %c17_74 = arith.constant 17 : index
    %391 = memref.load %arg6[%c17_74] : memref<24xf32, #tpu.memory_space<smem>>
    %392 = vector.broadcast %391 : f32 to vector<8x128xf32>
    %393 = arith.addf %390, %392 : vector<8x128xf32>
    %394 = arith.addf %387, %393 : vector<8x128xf32>
    %395 = vector.extract_strided_slice %289 {offsets = [168, 0], sizes = [8, 128], strides = [1, 1]} : vector<192x128xf32> to vector<8x128xf32>
    %c21_75 = arith.constant 21 : index
    %396 = memref.load %arg5[%c21_75] : memref<24xf32, #tpu.memory_space<smem>>
    %397 = vector.broadcast %396 : f32 to vector<8x128xf32>
    %398 = arith.mulf %397, %290 : vector<8x128xf32>
    %c21_76 = arith.constant 21 : index
    %399 = memref.load %arg6[%c21_76] : memref<24xf32, #tpu.memory_space<smem>>
    %400 = vector.broadcast %399 : f32 to vector<8x128xf32>
    %401 = arith.addf %398, %400 : vector<8x128xf32>
    %402 = arith.addf %395, %401 : vector<8x128xf32>
    %403 = arith.mulf %362, %394 : vector<8x128xf32>
    %404 = arith.mulf %370, %402 : vector<8x128xf32>
    %405 = arith.maximumf %403, %404 : vector<8x128xf32>
    %406 = arith.subf %403, %405 : vector<8x128xf32>
    %407 = math.exp %406 : vector<8x128xf32>
    %408 = arith.subf %404, %405 : vector<8x128xf32>
    %409 = math.exp %408 : vector<8x128xf32>
    %410 = arith.mulf %407, %378 : vector<8x128xf32>
    %411 = arith.mulf %409, %386 : vector<8x128xf32>
    %412 = arith.addf %410, %411 : vector<8x128xf32>
    %413 = arith.addf %407, %409 : vector<8x128xf32>
    %414 = tpu.reciprocal %413 {approx = true} : vector<8x128xf32> -> vector<8x128xf32>
    %415 = arith.mulf %412, %414 : vector<8x128xf32>
    %c0_77 = arith.constant 0 : index
    %c1_78 = arith.constant 1 : index
    %c8_79 = arith.constant 8 : index
    %c0_80 = arith.constant 0 : index
    %416 = vector.load %arg7[%c0_77, %c1_78, %c8_79, %c0_80] : memref<1x4x16x128xf32, #tpu.memory_space<vmem>>, vector<1x1x8x128xf32>
    %417 = vector.shape_cast %416 : vector<1x1x8x128xf32> to vector<8x128xf32>
    %418 = vector.shape_cast %415 : vector<8x128xf32> to vector<1x1x8x128xf32>
    tpu.vector_store %arg7[%c0_77, %c1_78, %c8_79, %c0_80], %418 {strides = array<i32>} : memref<1x4x16x128xf32, #tpu.memory_space<vmem>>, vector<1x1x8x128xf32>,
    %419 = vector.extract_strided_slice %289 {offsets = [16, 0], sizes = [8, 128], strides = [1, 1]} : vector<192x128xf32> to vector<8x128xf32>
    %c2_81 = arith.constant 2 : index
    %420 = memref.load %arg5[%c2_81] : memref<24xf32, #tpu.memory_space<smem>>
    %421 = vector.broadcast %420 : f32 to vector<8x128xf32>
    %422 = arith.mulf %421, %290 : vector<8x128xf32>
    %c2_82 = arith.constant 2 : index
    %423 = memref.load %arg6[%c2_82] : memref<24xf32, #tpu.memory_space<smem>>
    %424 = vector.broadcast %423 : f32 to vector<8x128xf32>
    %425 = arith.addf %422, %424 : vector<8x128xf32>
    %426 = arith.addf %419, %425 : vector<8x128xf32>
    %427 = vector.extract_strided_slice %289 {offsets = [48, 0], sizes = [8, 128], strides = [1, 1]} : vector<192x128xf32> to vector<8x128xf32>
    %c6_83 = arith.constant 6 : index
    %428 = memref.load %arg5[%c6_83] : memref<24xf32, #tpu.memory_space<smem>>
    %429 = vector.broadcast %428 : f32 to vector<8x128xf32>
    %430 = arith.mulf %429, %290 : vector<8x128xf32>
    %c6_84 = arith.constant 6 : index
    %431 = memref.load %arg6[%c6_84] : memref<24xf32, #tpu.memory_space<smem>>
    %432 = vector.broadcast %431 : f32 to vector<8x128xf32>
    %433 = arith.addf %430, %432 : vector<8x128xf32>
    %434 = arith.addf %427, %433 : vector<8x128xf32>
    %435 = vector.extract_strided_slice %289 {offsets = [80, 0], sizes = [8, 128], strides = [1, 1]} : vector<192x128xf32> to vector<8x128xf32>
    %c10_85 = arith.constant 10 : index
    %436 = memref.load %arg5[%c10_85] : memref<24xf32, #tpu.memory_space<smem>>
    %437 = vector.broadcast %436 : f32 to vector<8x128xf32>
    %438 = arith.mulf %437, %290 : vector<8x128xf32>
    %c10_86 = arith.constant 10 : index
    %439 = memref.load %arg6[%c10_86] : memref<24xf32, #tpu.memory_space<smem>>
    %440 = vector.broadcast %439 : f32 to vector<8x128xf32>
    %441 = arith.addf %438, %440 : vector<8x128xf32>
    %442 = arith.addf %435, %441 : vector<8x128xf32>
    %443 = vector.extract_strided_slice %289 {offsets = [112, 0], sizes = [8, 128], strides = [1, 1]} : vector<192x128xf32> to vector<8x128xf32>
    %c14_87 = arith.constant 14 : index
    %444 = memref.load %arg5[%c14_87] : memref<24xf32, #tpu.memory_space<smem>>
    %445 = vector.broadcast %444 : f32 to vector<8x128xf32>
    %446 = arith.mulf %445, %290 : vector<8x128xf32>
    %c14_88 = arith.constant 14 : index
    %447 = memref.load %arg6[%c14_88] : memref<24xf32, #tpu.memory_space<smem>>
    %448 = vector.broadcast %447 : f32 to vector<8x128xf32>
    %449 = arith.addf %446, %448 : vector<8x128xf32>
    %450 = arith.addf %443, %449 : vector<8x128xf32>
    %451 = vector.extract_strided_slice %289 {offsets = [144, 0], sizes = [8, 128], strides = [1, 1]} : vector<192x128xf32> to vector<8x128xf32>
    %c18_89 = arith.constant 18 : index
    %452 = memref.load %arg5[%c18_89] : memref<24xf32, #tpu.memory_space<smem>>
    %453 = vector.broadcast %452 : f32 to vector<8x128xf32>
    %454 = arith.mulf %453, %290 : vector<8x128xf32>
    %c18_90 = arith.constant 18 : index
    %455 = memref.load %arg6[%c18_90] : memref<24xf32, #tpu.memory_space<smem>>
    %456 = vector.broadcast %455 : f32 to vector<8x128xf32>
    %457 = arith.addf %454, %456 : vector<8x128xf32>
    %458 = arith.addf %451, %457 : vector<8x128xf32>
    %459 = vector.extract_strided_slice %289 {offsets = [176, 0], sizes = [8, 128], strides = [1, 1]} : vector<192x128xf32> to vector<8x128xf32>
    %c22_91 = arith.constant 22 : index
    %460 = memref.load %arg5[%c22_91] : memref<24xf32, #tpu.memory_space<smem>>
    %461 = vector.broadcast %460 : f32 to vector<8x128xf32>
    %462 = arith.mulf %461, %290 : vector<8x128xf32>
    %c22_92 = arith.constant 22 : index
    %463 = memref.load %arg6[%c22_92] : memref<24xf32, #tpu.memory_space<smem>>
    %464 = vector.broadcast %463 : f32 to vector<8x128xf32>
    %465 = arith.addf %462, %464 : vector<8x128xf32>
    %466 = arith.addf %459, %465 : vector<8x128xf32>
    %467 = arith.mulf %426, %458 : vector<8x128xf32>
    %468 = arith.mulf %434, %466 : vector<8x128xf32>
    %469 = arith.maximumf %467, %468 : vector<8x128xf32>
    %470 = arith.subf %467, %469 : vector<8x128xf32>
    %471 = math.exp %470 : vector<8x128xf32>
    %472 = arith.subf %468, %469 : vector<8x128xf32>
    %473 = math.exp %472 : vector<8x128xf32>
    %474 = arith.mulf %471, %442 : vector<8x128xf32>
    %475 = arith.mulf %473, %450 : vector<8x128xf32>
    %476 = arith.addf %474, %475 : vector<8x128xf32>
    %477 = arith.addf %471, %473 : vector<8x128xf32>
    %478 = tpu.reciprocal %477 {approx = true} : vector<8x128xf32> -> vector<8x128xf32>
    %479 = arith.mulf %476, %478 : vector<8x128xf32>
    %c0_93 = arith.constant 0 : index
    %c2_94 = arith.constant 2 : index
    %c8_95 = arith.constant 8 : index
    %c0_96 = arith.constant 0 : index
    %480 = vector.load %arg7[%c0_93, %c2_94, %c8_95, %c0_96] : memref<1x4x16x128xf32, #tpu.memory_space<vmem>>, vector<1x1x8x128xf32>
    %481 = vector.shape_cast %480 : vector<1x1x8x128xf32> to vector<8x128xf32>
    %482 = vector.shape_cast %479 : vector<8x128xf32> to vector<1x1x8x128xf32>
    tpu.vector_store %arg7[%c0_93, %c2_94, %c8_95, %c0_96], %482 {strides = array<i32>} : memref<1x4x16x128xf32, #tpu.memory_space<vmem>>, vector<1x1x8x128xf32>,
    %483 = vector.extract_strided_slice %289 {offsets = [24, 0], sizes = [8, 128], strides = [1, 1]} : vector<192x128xf32> to vector<8x128xf32>
    %c3_97 = arith.constant 3 : index
    %484 = memref.load %arg5[%c3_97] : memref<24xf32, #tpu.memory_space<smem>>
    %485 = vector.broadcast %484 : f32 to vector<8x128xf32>
    %486 = arith.mulf %485, %290 : vector<8x128xf32>
    %c3_98 = arith.constant 3 : index
    %487 = memref.load %arg6[%c3_98] : memref<24xf32, #tpu.memory_space<smem>>
    %488 = vector.broadcast %487 : f32 to vector<8x128xf32>
    %489 = arith.addf %486, %488 : vector<8x128xf32>
    %490 = arith.addf %483, %489 : vector<8x128xf32>
    %491 = vector.extract_strided_slice %289 {offsets = [56, 0], sizes = [8, 128], strides = [1, 1]} : vector<192x128xf32> to vector<8x128xf32>
    %c7_99 = arith.constant 7 : index
    %492 = memref.load %arg5[%c7_99] : memref<24xf32, #tpu.memory_space<smem>>
    %493 = vector.broadcast %492 : f32 to vector<8x128xf32>
    %494 = arith.mulf %493, %290 : vector<8x128xf32>
    %c7_100 = arith.constant 7 : index
    %495 = memref.load %arg6[%c7_100] : memref<24xf32, #tpu.memory_space<smem>>
    %496 = vector.broadcast %495 : f32 to vector<8x128xf32>
    %497 = arith.addf %494, %496 : vector<8x128xf32>
    %498 = arith.addf %491, %497 : vector<8x128xf32>
    %499 = vector.extract_strided_slice %289 {offsets = [88, 0], sizes = [8, 128], strides = [1, 1]} : vector<192x128xf32> to vector<8x128xf32>
    %c11_101 = arith.constant 11 : index
    %500 = memref.load %arg5[%c11_101] : memref<24xf32, #tpu.memory_space<smem>>
    %501 = vector.broadcast %500 : f32 to vector<8x128xf32>
    %502 = arith.mulf %501, %290 : vector<8x128xf32>
    %c11_102 = arith.constant 11 : index
    %503 = memref.load %arg6[%c11_102] : memref<24xf32, #tpu.memory_space<smem>>
    %504 = vector.broadcast %503 : f32 to vector<8x128xf32>
    %505 = arith.addf %502, %504 : vector<8x128xf32>
    %506 = arith.addf %499, %505 : vector<8x128xf32>
    %507 = vector.extract_strided_slice %289 {offsets = [120, 0], sizes = [8, 128], strides = [1, 1]} : vector<192x128xf32> to vector<8x128xf32>
    %c15_103 = arith.constant 15 : index
    %508 = memref.load %arg5[%c15_103] : memref<24xf32, #tpu.memory_space<smem>>
    %509 = vector.broadcast %508 : f32 to vector<8x128xf32>
    %510 = arith.mulf %509, %290 : vector<8x128xf32>
    %c15_104 = arith.constant 15 : index
    %511 = memref.load %arg6[%c15_104] : memref<24xf32, #tpu.memory_space<smem>>
    %512 = vector.broadcast %511 : f32 to vector<8x128xf32>
    %513 = arith.addf %510, %512 : vector<8x128xf32>
    %514 = arith.addf %507, %513 : vector<8x128xf32>
    %515 = vector.extract_strided_slice %289 {offsets = [152, 0], sizes = [8, 128], strides = [1, 1]} : vector<192x128xf32> to vector<8x128xf32>
    %c19_105 = arith.constant 19 : index
    %516 = memref.load %arg5[%c19_105] : memref<24xf32, #tpu.memory_space<smem>>
    %517 = vector.broadcast %516 : f32 to vector<8x128xf32>
    %518 = arith.mulf %517, %290 : vector<8x128xf32>
    %c19_106 = arith.constant 19 : index
    %519 = memref.load %arg6[%c19_106] : memref<24xf32, #tpu.memory_space<smem>>
    %520 = vector.broadcast %519 : f32 to vector<8x128xf32>
    %521 = arith.addf %518, %520 : vector<8x128xf32>
    %522 = arith.addf %515, %521 : vector<8x128xf32>
    %523 = vector.extract_strided_slice %289 {offsets = [184, 0], sizes = [8, 128], strides = [1, 1]} : vector<192x128xf32> to vector<8x128xf32>
    %c23_107 = arith.constant 23 : index
    %524 = memref.load %arg5[%c23_107] : memref<24xf32, #tpu.memory_space<smem>>
    %525 = vector.broadcast %524 : f32 to vector<8x128xf32>
    %526 = arith.mulf %525, %290 : vector<8x128xf32>
    %c23_108 = arith.constant 23 : index
    %527 = memref.load %arg6[%c23_108] : memref<24xf32, #tpu.memory_space<smem>>
    %528 = vector.broadcast %527 : f32 to vector<8x128xf32>
    %529 = arith.addf %526, %528 : vector<8x128xf32>
    %530 = arith.addf %523, %529 : vector<8x128xf32>
    %531 = arith.mulf %490, %522 : vector<8x128xf32>
    %532 = arith.mulf %498, %530 : vector<8x128xf32>
    %533 = arith.maximumf %531, %532 : vector<8x128xf32>
    %534 = arith.subf %531, %533 : vector<8x128xf32>
    %535 = math.exp %534 : vector<8x128xf32>
    %536 = arith.subf %532, %533 : vector<8x128xf32>
    %537 = math.exp %536 : vector<8x128xf32>
    %538 = arith.mulf %535, %506 : vector<8x128xf32>
    %539 = arith.mulf %537, %514 : vector<8x128xf32>
    %540 = arith.addf %538, %539 : vector<8x128xf32>
    %541 = arith.addf %535, %537 : vector<8x128xf32>
    %542 = tpu.reciprocal %541 {approx = true} : vector<8x128xf32> -> vector<8x128xf32>
    %543 = arith.mulf %540, %542 : vector<8x128xf32>
    %c0_109 = arith.constant 0 : index
    %c3_110 = arith.constant 3 : index
    %c8_111 = arith.constant 8 : index
    %c0_112 = arith.constant 0 : index
    %544 = vector.load %arg7[%c0_109, %c3_110, %c8_111, %c0_112] : memref<1x4x16x128xf32, #tpu.memory_space<vmem>>, vector<1x1x8x128xf32>
    %545 = vector.shape_cast %544 : vector<1x1x8x128xf32> to vector<8x128xf32>
    %546 = vector.shape_cast %543 : vector<8x128xf32> to vector<1x1x8x128xf32>
    tpu.vector_store %arg7[%c0_109, %c3_110, %c8_111, %c0_112], %546 {strides = array<i32>} : memref<1x4x16x128xf32, #tpu.memory_space<vmem>>, vector<1x1x8x128xf32>,
    return
  }
  func.func @transform_0(%arg0: i32, %arg1: i32) -> (i32, i32, i32) {
    %c0_i32 = arith.constant 0 : i32
    %c0_i32_0 = arith.constant 0 : i32
    return %arg0, %arg1, %c0_i32 : i32, i32, i32
  }
  func.func @transform_1(%arg0: i32, %arg1: i32) -> (i32, i32, i32) {
    %c1_i32 = arith.constant 1 : i32
    %0 = arith.addi %arg1, %c1_i32 : i32
    %c2_i32 = arith.constant 2 : i32
    %1 = arith.muli %0, %c2_i32 : i32
    %c0_i32 = arith.constant 0 : i32
    %c0_i32_0 = arith.constant 0 : i32
    return %arg0, %1, %c0_i32 : i32, i32, i32
  }
  func.func @transform_2(%arg0: i32, %arg1: i32) -> (i32, i32) {
    %c0_i32 = arith.constant 0 : i32
    %c0_i32_0 = arith.constant 0 : i32
    %c0_i32_1 = arith.constant 0 : i32
    return %c0_i32, %c0_i32_0 : i32, i32
  }
  func.func @transform_3(%arg0: i32, %arg1: i32) -> i32 {
    %c0_i32 = arith.constant 0 : i32
    %c0_i32_0 = arith.constant 0 : i32
    return %c0_i32 : i32
  }
  func.func @transform_4(%arg0: i32, %arg1: i32) -> i32 {
    %c0_i32 = arith.constant 0 : i32
    %c0_i32_0 = arith.constant 0 : i32
    return %c0_i32 : i32
  }
  func.func @transform_5(%arg0: i32, %arg1: i32) -> (i32, i32, i32, i32) {
    %c0_i32 = arith.constant 0 : i32
    %c0_i32_0 = arith.constant 0 : i32
    %c0_i32_1 = arith.constant 0 : i32
    return %arg0, %c0_i32, %arg1, %c0_i32_0 : i32, i32, i32, i32
  }
}

</mosaic_0001>

<bundles_post_ra>
// kernel: edgesr_tr_forward.1
= control target key start
LH: loop header
LB: loop body
LE: loop exit
PB: predicated region body
PF: predicated region fallthrough
CT: control target
= control target key end

     0   :  { %10 = vsyncpa [#allocation3], 0  ;;  %s4438_s0 = inlined_call_operand.vmem [shape: f32[2,24,256], index: 0, kind: input, shape index: {}, may-alias: {0,1}]   ;;  %s4439_s1 = inlined_call_operand.vmem [shape: f32[2,24,256], index: 1, kind: input, shape index: {}, may-alias: {0,1}]   ;;  %s4440_s2 = inlined_call_operand.vmem [shape: bf16[192,80], index: 2, kind: input, shape index: {}]   ;;  %s4441_s3 = inlined_call_operand.vmem [shape: f32[24], index: 3, kind: input, shape index: {}]   ;;  %s4442_s4 = inlined_call_operand.vmem [shape: f32[24], index: 4, kind: input, shape index: {}]   ;;  %s4443_s5 = inlined_call_operand.vmem [shape: f32[2,4,16,128], index: 5, kind: output, shape index: {}]  }
   0x1   :  { %11 = vsyncpa [#allocation5], 0  ;;  %s2956_s18 = smov 0   ;;  %s2958_s19 = smov 0  }
   0x2   :  { %s2960_s20 = smov 0  }
   0x3 LB: > { %s2485_s21 = sadd.s32 4294967295, %s2918_s20   ;;  %s29_s22 = sadd.s32 1, %s2914_s19  ;;  %s2918_s20 = sphi %s2960_s20, %s17_s20   ;;  %s2914_s19 = sphi %s2958_s19, %s4559_s19   ;;  %s2910_s18 = sphi %s2956_s18, %s4558_s18  }
   0x4   : > { %p31_p0 = scmp.ge.s32.totalorder %s29_s22, 2  ;;  %p2487_p1 = scmp.ge.s32.totalorder %s2918_s20, 1 }
   0x5   : > { %p185_p2 = scmp.lt.s32.totalorder %s2918_s20, 3  ;;  %p2981_p4 = scmp.eq.s32.totalorder %s2485_s21, 0 }
   0x6   : > { %s4561_s22 = smov (%p31_p0, %s29_s22), 0  ;;  %s201_s27 = sshll.u32 %s4441_s3, 4  ;;  %s202_s27 = int_to_ptr.vmem [resolvable:$true] %s201_s27 }
   0x7   : > { %p2977_p3 = pnand %p2487_p1, %p185_p2  ;;  %s212_s30 = sshll.u32 %s4442_s4, 4  ;;  %s213_s30 = int_to_ptr.vmem [resolvable:$true] %s212_s30 }
   0x8   : > { %s4464_s24 = scalar_select %p2981_p4, 1, 0 }
   0x9   : > { %s4463_s23 = scalar_select %p2977_p3, 1, 0 }
   0xa   : > { %p2749_p5 = pneg %p2977_p3  ;;  %s2858_s7 = scalar_lea.vmem %s202_s27, 16 }
   0xb   : > { %p2859_p7 = scmp.ne.s32.totalorder %s202_s27, %s2858_s7  ;;  %p2866_p11 = scmp.lt.s32.totalorder %s202_s27, %s202_s27 }
   0xc   : > { %p2995_p6 = pnand %p2981_p4, %p2749_p5  ;;  %p2867_p12 = scmp.lt.s32.totalorder %s2858_s7, %s2858_s7 }
   0xe   : > { %p2860_p8 = pneg %p2995_p6  ;;  %p2868_p13 = por %p2867_p12, %p2866_p11 }
  0x10   : > { %p2861_p9 = pnand %p2860_p8, %p2859_p7 }
  0x12   : > { %p2862_p10 = pneg %p2861_p9 }
  0x14   : > { %p2869_p0 = pnand %p2868_p13, %p2862_p10 }
  0x16   : > { %2872 = shalt.err (!%p2869_p0)
}
  0x17   : > { %s2920_s8 = smov [#allocation2]   ;;  %s2873_s9 = scalar_lea.vmem %s213_s30, 16 }
  0x18   : > { %2752 = dma.vmem_to_smem (!%p2995_p6), %s202_s27, 16, %s2920_s8, [#allocation3]  }
  0x19   : > { %p2874_p1 = scmp.ne.s32.totalorder %s213_s30, %s2873_s9  ;;  %p2881_p4 = scmp.lt.s32.totalorder %s213_s30, %s213_s30 }
  0x1a   : > { %p2882_p3 = scmp.lt.s32.totalorder %s2873_s9, %s2873_s9 }
  0x1b   : > { %p2876_p2 = pnand %p2874_p1, %p2860_p8 }
  0x1c   : > { %p2883_p7 = por %p2882_p3, %p2881_p4 }
  0x1d   : > { %p2877_p5 = pneg %p2876_p2 }
  0x1f   : > { %p2884_p9 = pnand %p2883_p7, %p2877_p5 }
  0x21   : > { %2887 = shalt.err (!%p2884_p9)
}
  0x22   : > { %s2921_s10 = smov [#allocation4]   ;;  %p4466_p10 = scmp.ne.s32.totalorder %s4463_s23, 0 }
  0x23   : > { %2755 = dma.vmem_to_smem (!%p2995_p6), %s213_s30, 16, %s2921_s10, [#allocation5]  }
  0x24   : > { %265 = sbr.rel (%p4466_p10) target bundleno = 498 (0x1f2), region = 40 }
  0x29   : > { %p4467_p11 = scmp.ne.s32.totalorder %s4464_s24, 0 }
  0x2b   : > { %2901 = dma.done.wait (%p4467_p11), [#allocation3], 16  }
  0x2c   : > { %2903 = vsyncadd (%p4467_p11), [#allocation3], 4294967280 }
  0x2d   : > { %2905 = dma.done.wait (%p4467_p11), [#allocation5], 16  }
  0x2e   : > { %2907 = vsyncadd (%p4467_p11), [#allocation5], 4294967280 }
  0x2f   : > { %275 = sfence }
  0x30   : > { %p329_p3 = scmp.lt.s32.totalorder %s2910_s18, 1  ;;  %s657_s23 = sld [smem:[#allocation2]]  ;;  %vm673_vm0 = vcmask 1045504   ;;  %vm491_vm1 = vcmask 654336   ;;  %vm428_vm2 = vcmask 1014784   ;;  %vm421_vm3 = vcmask 1022976  }
  0x31   : > { %s2922_s24 = smov 125   ;;  %s2522_s25 = sld [smem:[#allocation2 + $0x4]]  ;;  %vm414_vm4 = vcmask 1031168   ;;  %vm407_vm5 = vcmask 1039360  }
  0x32   : > { %s4563_s18 = smov (!%p329_p3, %s2910_s18), 1  ;;  %s2923_s26 = smov 124  }
  0x33   : > { %s2739_s11 = smul.u32 48, %s4563_s18  ;;  %s663_s27 = sld [smem:[#allocation4]] }
  0x34   : > { %s2523_s28 = sld [smem:[#allocation4 + $0x4]]  ;;  %s2924_s8 = smov 126  }
  0x35   : > { %s3023_s14 = scalar_lea.vmem %s4438_s0, %s2739_s11  ;;  %s2635_s15 = sadd.s32 32, %s2739_s11 }
  0x36   : > { %v3026_v0 = vld [vmem:[%s3023_s14 + $0x8] sm:$0xff]  ;;  %v3029_v1 = vld [vmem:[%s3023_s14 + $0x18] sm:$0xff]  ;;  %v3032_v2 = vld [vmem:[%s3023_s14] sm:$0xff]  ;;  %s3037_s21 = scalar_lea.vmem %s4439_s1, %s2635_s15  ;;  %s2524_s29 = sld [smem:[#allocation2 + $0x8]]  ;;  %v658_v10 = vstv %s657_s23 }
  0x37   : > { %v3041_v3 = vpack.c.bf16 %v3029_v1, %v3026_v0  ;;  %v3044_v4 = vld [vmem:[%s3023_s14 + $0x10] sm:$0xff]  ;;  %v1427_v5 = vld [vmem:[%s3037_s21] sm:$0xff]  ;;  %v3057_v8 = vld [vmem:[%s3037_s21 + $0x8] sm:$0xff]  ;;  %v689_v11 = vstv %s2522_s25  ;;  %v660_v12 = vmul.f32 %v658_v10, %v3026_v0  ;;  %v662_v13 = vmul.f32 %v658_v10, %v3029_v1  ;;  %s3070_s30 = sld [smem:[#allocation4 + $0x8]]  ;;  %s2925_s15 = smov 127  }
  0x38   : > { %v3049_v6 = vpack.c.bf16 %v3044_v4, %v3032_v2  ;;  %v3053_v7 = vpack.c.bf16 %v1427_v5, %v3044_v4  ;;  %v3062_v9 = vpack.c.bf16 %v3057_v8, %v3029_v1  ;;  %v659_v14 = vmul.f32 %v658_v10, %v3032_v2  ;;  %s3076_s6 = sld [smem:[#allocation2 + $0xc]] }
  0x39   : > { %419 = vrot.lane.b32.xlu1 %v3041_v3, %s2922_s24  ;;  %v664_v15 = vstv %s663_s27  ;;  %v661_v16 = vmul.f32 %v658_v10, %v3044_v4  ;;  %v691_v17 = vmul.f32 %v689_v11, %v3026_v0  ;;  %v693_v18 = vmul.f32 %v689_v11, %v3029_v1  ;;  %s3081_s7 = sld [smem:[#allocation4 + $0xc]] }
  0x3a   : > { %424 = vrot.lane.b32.xlu0 %v3049_v6, %s2923_s26  ;;  %v695_v19 = vstv %s2523_s28  ;;  %v690_v20 = vmul.f32 %v689_v11, %v3032_v2  ;;  %v692_v21 = vmul.f32 %v689_v11, %v3044_v4  ;;  %v666_v22 = vadd.f32 %v664_v15, %v660_v12  ;;  %s3085_s9 = sld [smem:[#allocation2 + $0x10]] }
  0x3b   : > { %v668_v23 = vadd.f32 %v664_v15, %v662_v13  ;;  %v665_v24 = vadd.f32 %v664_v15, %v659_v14  ;;  %v667_v26 = vadd.f32 %v664_v15, %v661_v16  ;;  %v697_v27 = vadd.f32 %v695_v19, %v691_v17  ;;  %s3089_s10 = sld [smem:[#allocation2 + $0x14]] }
  0x3c   : > { %v718_v25 = vstv %s2524_s29  ;;  %v699_v28 = vadd.f32 %v695_v19, %v693_v18  ;;  %v696_v29 = vadd.f32 %v695_v19, %v690_v20  ;;  %v698_v30 = vadd.f32 %v695_v19, %v692_v21  ;;  %s3097_s11 = sld [smem:[#allocation4 + $0x10]] }
  0x3d   : > { %1451 = vrot.lane.b32.xlu1 %v3053_v7, %s2923_s26  ;;  %v720_v31 = vmul.f32 %v718_v25, %v3026_v0  ;;  %v722_v32 = vmul.f32 %v718_v25, %v3029_v1  ;;  %v677_v33 = vrot.slane %v666_v22, 2  ;;  %v678_v34 = vrot.slane %v668_v23, 2  ;;  %s3103_s12 = sld [smem:[#allocation4 + $0x14]] }
  0x3e   : > { %426 = vrot.lane.b32.xlu0 %v3041_v3, %s2923_s26  ;;  %v674_v35 = vrot.slane %v665_v24, 2  ;;  %v724_v36 = vstv %s3070_s30  ;;  %v675_v37 = vrot.slane %v667_v26, 2  ;;  %v707_v38 = vrot.slane %v697_v27, 2  ;;  %s3108_s13 = sld [smem:[#allocation2 + $0x1]] }
  0x3f   : > { %v708_v39 = vrot.slane %v699_v28, 2  ;;  %v747_v40 = vstv %s3076_s6  ;;  %v704_v41 = vrot.slane %v696_v29, 2  ;;  %v705_v42 = vrot.slane %v698_v30, 2  ;;  %s3126_s16 = sld [smem:[#allocation4 + $0x1]] }
  0x40   : > { %v719_v43 = vmul.f32 %v718_v25, %v3032_v2  ;;  %v721_v44 = vmul.f32 %v718_v25, %v3044_v4  ;;  %v726_v45 = vadd.f32 %v724_v36, %v720_v31  ;;  %v728_v46 = vadd.f32 %v724_v36, %v722_v32  ;;  %s3133_s17 = sld [smem:[#allocation2 + $0x5]] }
  0x41   : > { %1453 = vrot.lane.b32.xlu1 %v3062_v9, %s2923_s26  ;;  %v679_v47 = vsel %vm673_vm0, %v677_v33, %v678_v34  ;;  %v749_v48 = vmul.f32 %v747_v40, %v3026_v0  ;;  %v751_v49 = vmul.f32 %v747_v40, %v3029_v1  ;;  %v676_v50 = vsel %vm673_vm0, %v674_v35, %v675_v37  ;;  %s3144_s23 = sld [smem:[#allocation4 + $0x5]] }
  0x42   : > { %417 = vrot.lane.b32.xlu0 %v3049_v6, %s2922_s24  ;;  %v709_v51 = vsel %vm673_vm0, %v707_v38, %v708_v39  ;;  %v753_v52 = vstv %s3081_s7  ;;  %v776_v53 = vstv %s3085_s9  ;;  %v706_v54 = vsel %vm673_vm0, %v704_v41, %v705_v42  ;;  %s3152_s25 = sld [smem:[#allocation2 + $0xd]] }
  0x43   : > { %v3117_v55 = vadd.f32 %v724_v36, %v719_v43  ;;  %v3119_v56 = vadd.f32 %v724_v36, %v721_v44  ;;  %v805_v57 = vstv %s3089_s10  ;;  %v736_v58 = vrot.slane %v726_v45, 2  ;;  %s3158_s26 = sld [smem:[#allocation4 + $0x9]] }
  0x44   : > { %v737_v59 = vrot.slane %v728_v46, 2  ;;  %v748_v60 = vmul.f32 %v747_v40, %v3032_v2  ;;  %v750_v61 = vmul.f32 %v747_v40, %v3044_v4  ;;  %v755_v62 = vadd.f32 %v753_v52, %v749_v48  ;;  %s3164_s27 = sld [smem:[#allocation4 + $0xd]] }
  0x45   : > { %1447 = vrot.lane.b32.xlu1 %v3062_v9, %s2922_s24  ;;  %v757_v63 = vadd.f32 %v753_v52, %v751_v49  ;;  %v780_v5 = vmul.f32 %v776_v53, %v3029_v1  ;;  %v782_v10 = vstv %s3097_s11  ;;  %v777_v11 = vmul.f32 %v776_v53, %v3032_v2  ;;  %s3171_s28 = sld [smem:[#allocation2 + $0x11]] }
  0x46   : > { %1445 = vrot.lane.b32.xlu0 %v3053_v7, %s2922_s24  ;;  %v779_v12 = vmul.f32 %v776_v53, %v3044_v4  ;;  %v807_v13 = vmul.f32 %v805_v57, %v3026_v0  ;;  %v809_v14 = vmul.f32 %v805_v57, %v3029_v1  ;;  %v811_v15 = vstv %s3103_s12  ;;  %s3147_s24 = sld [smem:[#allocation2 + $0x9]] }
  0x47   : > { %v806_v16 = vmul.f32 %v805_v57, %v3032_v2  ;;  %v808_v17 = vmul.f32 %v805_v57, %v3044_v4  ;;  %v734_v18 = vrot.slane %v3119_v56, 2  ;;  %v754_v19 = vadd.f32 %v753_v52, %v748_v60  ;;  %s3192_s29 = sld [smem:[#allocation4 + $0x11]] }
  0x48   : > { %v756_v20 = vadd.f32 %v753_v52, %v750_v61  ;;  %v738_v21 = vsel %vm673_vm0, %v736_v58, %v737_v59  ;;  %v786_v23 = vadd.f32 %v782_v10, %v780_v5  ;;  %v850_v24 = vstv %s3108_s13  ;;  %s3199_s30 = sld [smem:[#allocation2 + $0x15]] }
  0x49   : > { %412 = vrot.lane.b32.xlu1 %v3041_v3, %s2924_s8  ;;  %v765_v25 = vrot.slane %v755_v62, 2  ;;  %v783_v26 = vadd.f32 %v782_v10, %v777_v11  ;;  %v785_v27 = vadd.f32 %v782_v10, %v779_v12  ;;  %v813_v28 = vadd.f32 %v811_v15, %v807_v13  ;;  %s3215_s6 = sld [smem:[#allocation4 + $0x15]] }
  0x4a   : > { %410 = vrot.lane.b32.xlu0 %v3049_v6, %s2924_s8  ;;  %v766_v29 = vrot.slane %v757_v63, 2  ;;  %v815_v30 = vadd.f32 %v811_v15, %v809_v14  ;;  %v812_v31 = vadd.f32 %v811_v15, %v806_v16  ;;  %v814_v32 = vadd.f32 %v811_v15, %v808_v17  ;;  %s3218_s7 = sld [smem:[#allocation2 + $0x2]] }
  0x4b   : > { %v762_v33 = vrot.slane %v754_v19, 2  ;;  %v763_v34 = vrot.slane %v756_v20, 2  ;;  %v852_v35 = vmul.f32 %v850_v24, %v3026_v0  ;;  %v854_v36 = vmul.f32 %v850_v24, %v3029_v1  ;;  %s3224_s9 = sld [smem:[#allocation2 + $0x6]] }
  0x4c   : > { %v795_v38 = vrot.slane %v786_v23, 2  ;;  %v856_v39 = vstv %s3126_s16  ;;  %v851_v40 = vmul.f32 %v850_v24, %v3032_v2  ;;  %v791_v41 = vrot.slane %v783_v26, 2  ;;  %s3235_s10 = sld [smem:[#allocation4 + $0x2]] }
  0x4d   : > { %1441 = vrot.lane.b32.xlu1 %v3062_v9, %s2924_s8  ;;  %v792_v42 = vrot.slane %v785_v27, 2  ;;  %v823_v43 = vrot.slane %v813_v28, 2  ;;  %v879_v44 = vstv %s3133_s17  ;;  %v824_v45 = vrot.slane %v815_v30, 2  ;;  %s3238_s11 = sld [smem:[#allocation4 + $0x6]] }
  0x4e   : > { %1439 = vrot.lane.b32.xlu0 %v3053_v7, %s2924_s8  ;;  %v820_v46 = vrot.slane %v812_v31, 2  ;;  %v853_v48 = vmul.f32 %v850_v24, %v3044_v4  ;;  %v860_v52 = vadd.f32 %v856_v39, %v854_v36  ;;  %v883_v56 = vmul.f32 %v879_v44, %v3029_v1  ;;  %s3245_s12 = sld [smem:[#allocation2 + $0xa]] }
  0x4f   : > { %v793_v58 = vsel %vm673_vm0, %v791_v41, %v792_v42  ;;  %v885_v59 = vstv %s3144_s23  ;;  %v908_v60 = vstv %s3147_s24  ;;  %v825_v61 = vsel %vm673_vm0, %v823_v43, %v824_v45  ;;  %s3266_s13 = sld [smem:[#allocation4 + $0xa]] }
  0x50   : > { %v3181_v63 = vadd.f32 %v856_v39, %v853_v48  ;;  %v882_v11 = vmul.f32 %v879_v44, %v3044_v4  ;;  %v937_v12 = vstv %s3152_s25  ;;  %v3189_v15 = vadd.f32 %v885_v59, %v883_v56  ;;  %s3297_s16 = sld [smem:[#allocation4 + $0xe]] }
  0x51   : > { %405 = vrot.lane.b32.xlu1 %v3041_v3, %s2925_s15  ;;  %v778_v3 = vmul.f32 %v776_v53, %v3026_v0  ;;  %v764_v53 = vsel %vm673_vm0, %v762_v33, %v763_v34  ;;  %v910_v16 = vmul.f32 %v908_v60, %v3026_v0  ;;  %v912_v17 = vmul.f32 %v908_v60, %v3029_v1  ;;  %s3303_s17 = sld [smem:[#allocation2 + $0x12]] }
  0x52   : > { %403 = vrot.lane.b32.xlu0 %v3049_v6, %s2925_s15  ;;  %v911_v19 = vmul.f32 %v908_v60, %v3044_v4  ;;  %v939_v20 = vmul.f32 %v937_v12, %v3026_v0  ;;  %v940_v23 = vmul.f32 %v937_v12, %v3044_v4  ;;  %v866_v24 = vrot.slane %v3181_v63, 2  ;;  %s3308_s23 = sld [smem:[#allocation2 + $0x16]] }
  0x53   : > { %v784_v22 = vadd.f32 %v782_v10, %v778_v3  ;;  %v880_v3 = vmul.f32 %v879_v44, %v3032_v2  ;;  %v869_v10 = vrot.slane %v860_v52, 2  ;;  %v888_v26 = vadd.f32 %v885_v59, %v882_v11  ;;  %s3312_s24 = sld [smem:[#allocation2 + $0x3]] }
  0x54   : > { %v943_v27 = vstv %s3164_s27  ;;  %v3211_v31 = vstv %s3171_s28  ;;  %v3227_v45 = vstv %s3192_s29  ;;  %s3315_s25 = sld [smem:[#allocation4 + $0x12]] }
  0x55   : > { %1435 = vrot.lane.b32.xlu1 %v3062_v9, %s2925_s15  ;;  %v733_v9 = vrot.slane %v3117_v55, 2  ;;  %v794_v37 = vrot.slane %v784_v22, 2  ;;  %v3167_v55 = vadd.f32 %v856_v39, %v851_v40  ;;  %v938_v22 = vmul.f32 %v937_v12, %v3032_v2  ;;  %s3328_s27 = sld [smem:[#allocation4 + $0x3]] }
  0x56   : > { %1433 = vrot.lane.b32.xlu0 %v3053_v7, %s2925_s15  ;;  %v945_v36 = vadd.f32 %v943_v27, %v939_v20  ;;  %v895_v41 = vrot.slane %v888_v26, 2  ;;  %v968_v42 = vmul.f32 %v3211_v31, %v3026_v0  ;;  %v970_v43 = vmul.f32 %v3211_v31, %v3029_v1  ;;  %s3278_s15 = sld [smem:[#allocation2 + $0xe]] }
  0x57   : > { %v735_v49 = vsel %vm673_vm0, %v733_v9, %v734_v18  ;;  %v796_v57 = vsel %vm673_vm0, %v794_v37, %v795_v38  ;;  %v865_v13 = vrot.slane %v3167_v55, 2  ;;  %v914_v9 = vstv %s3158_s26  ;;  %s3318_s26 = sld [smem:[#allocation4 + $0x16]] }
  0x58   : > { %v909_v18 = vmul.f32 %v908_v60, %v3032_v2  ;;  %v916_v30 = vadd.f32 %v914_v9, %v910_v16  ;;  %v918_v33 = vadd.f32 %v914_v9, %v912_v17  ;;  %v944_v38 = vadd.f32 %v943_v27, %v938_v22  ;;  %s3623_s28 = sld [smem:[#allocation2 + $0x14]] }
  0x59   : > { %682 = vrot.lane.b32.xlu1 %v679_v47, %s2924_s8  ;;  %v821_v47 = vrot.slane %v814_v32, 2  ;;  %v898_v32 = vrot.slane %v3189_v15, 2  ;;  %v955_v52 = vrot.slane %v945_v36, 2  ;;  %v867_v56 = vsel %vm673_vm0, %v865_v13, %v866_v24  ;;  %s3628_s29 = sld [smem:[#allocation2 + $0x1]] }
  0x5a   : > { %680 = vrot.lane.b32.xlu0 %v676_v50, %s2924_s8  ;;  %v767_v50 = vsel %vm673_vm0, %v765_v25, %v766_v29  ;;  %v886_v25 = vadd.f32 %v885_v59, %v880_v3  ;;  %v915_v34 = vadd.f32 %v914_v9, %v909_v18  ;;  %v927_v48 = vrot.slane %v918_v33, 2 }
  0x5b   : > { %v822_v62 = vsel %vm673_vm0, %v820_v46, %v821_v47  ;;  %v967_v46 = vmul.f32 %v3211_v31, %v3032_v2  ;;  %v969_v47 = vmul.f32 %v3211_v31, %v3044_v4  ;;  %v952_v55 = vrot.slane %v944_v38, 2 }
  0x5c   : > { %v894_v40 = vrot.slane %v886_v25, 2  ;;  %v1048_v26 = vstv %s3235_s10  ;;  %s3430_s10 = sld [smem:[#allocation2 + $0x13]] }
  0x5d   : > { %712 = vrot.lane.b32.xlu1 %v709_v51, %s2924_s8  ;;  %v858_v51 = vadd.f32 %v856_v39, %v852_v35  ;;  %v917_v35 = vadd.f32 %v914_v9, %v911_v19  ;;  %v946_v39 = vadd.f32 %v943_v27, %v940_v23  ;;  %v3249_v60 = vadd.f32 %v3227_v45, %v969_v47 }
  0x5e   : > { %710 = vrot.lane.b32.xlu0 %v706_v54, %s2924_s8  ;;  %v881_v54 = vmul.f32 %v879_v44, %v3026_v0  ;;  %v926_v44 = vrot.slane %v916_v30, 2  ;;  %v896_v3 = vsel %vm673_vm0, %v894_v40, %v895_v41  ;;  %v1071_v9 = vstv %s3224_s9  ;;  %s3416_s9 = sld [smem:[#allocation2 + $0xf]] }
  0x5f   : > { %v868_v5 = vrot.slane %v858_v51, 2  ;;  %v995_v51 = vstv %s3199_s30  ;;  %v4457_v19 = vrot.slane %v3249_v60, 2  ;;  %v1075_v30 = vmul.f32 %v1071_v9, %v3029_v1  ;;  %s3370_s30 = sld [smem:[#allocation2 + $0x7]] }
  0x60   : > { %v3187_v14 = vadd.f32 %v885_v59, %v881_v54  ;;  %v953_v54 = vrot.slane %v946_v39, 2  ;;  %v973_v59 = vadd.f32 %v3227_v45, %v967_v46  ;;  %v996_v17 = vmul.f32 %v995_v51, %v3032_v2 }
  0x61   : > { %741 = vrot.lane.b32.xlu1 %v738_v21, %s2924_s8  ;;  %v941_v21 = vmul.f32 %v937_v12, %v3029_v1  ;;  %v870_v28 = vsel %vm673_vm0, %v868_v5, %v869_v10  ;;  %v928_v5 = vsel %vm673_vm0, %v926_v44, %v927_v48  ;;  %v1001_v10 = vstv %s3215_s6  ;;  %s3394_s6 = sld [smem:[#allocation2 + $0xb]] }
  0x62   : > { %739 = vrot.lane.b32.xlu0 %v735_v49, %s2924_s8  ;;  %v897_v29 = vrot.slane %v3187_v14, 2  ;;  %v923_v49 = vrot.slane %v915_v34, 2  ;;  %v954_v13 = vsel %vm673_vm0, %v952_v55, %v953_v54  ;;  %v1042_v14 = vstv %s3218_s7  ;;  %s3405_s7 = sld [smem:[#allocation4 + $0x7]] }
  0x63   : > { %v947_v37 = vadd.f32 %v943_v27, %v941_v21  ;;  %v981_v18 = vrot.slane %v973_v59, 2  ;;  %v998_v22 = vmul.f32 %v995_v51, %v3044_v4  ;;  %v1044_v23 = vmul.f32 %v1042_v14, %v3026_v0 }
  0x64   : > { %v899_v63 = vsel %vm673_vm0, %v897_v29, %v898_v32  ;;  %v1046_v24 = vmul.f32 %v1042_v14, %v3029_v1  ;;  %v1043_v25 = vmul.f32 %v1042_v14, %v3032_v2  ;;  %v1045_v27 = vmul.f32 %v1042_v14, %v3044_v4 }
  0x65   : > { %770 = vrot.lane.b32.xlu1 %v767_v50, %s2924_s8  ;;  %v924_v50 = vrot.slane %v917_v35, 2  ;;  %v1077_v29 = vstv %s3238_s11  ;;  %v1072_v32 = vmul.f32 %v1071_v9, %v3032_v2  ;;  %v1074_v33 = vmul.f32 %v1071_v9, %v3044_v4  ;;  %s3437_s11 = sld [smem:[#allocation4 + $0xb]] }
  0x66   : > { %768 = vrot.lane.b32.xlu0 %v764_v53, %s2924_s8  ;;  %v956_v53 = vrot.slane %v947_v37, 2  ;;  %v1100_v34 = vstv %s3245_s12  ;;  %v983_v36 = vsel %vm673_vm0, %v981_v18, %v4457_v19  ;;  %v1002_v38 = vadd.f32 %v1001_v10, %v996_v17  ;;  %s3441_s12 = sld [smem:[#allocation4 + $0xf]] }
  0x67   : > { %v925_v11 = vsel %vm673_vm0, %v923_v49, %v924_v50  ;;  %v1004_v39 = vadd.f32 %v1001_v10, %v998_v22  ;;  %v1050_v40 = vadd.f32 %v1048_v26, %v1044_v23  ;;  %v1052_v41 = vadd.f32 %v1048_v26, %v1046_v24 }
  0x68   : > { %v957_v12 = vsel %vm673_vm0, %v955_v52, %v956_v53  ;;  %v1102_v46 = vmul.f32 %v1100_v34, %v3026_v0  ;;  %v1104_v47 = vmul.f32 %v1100_v34, %v3029_v1  ;;  %v1081_v48 = vadd.f32 %v1077_v29, %v1075_v30 }
  0x69   : > { %799 = vrot.lane.b32.xlu1 %v796_v57, %s2924_s8  ;;  %v974_v57 = vadd.f32 %v3227_v45, %v968_v42  ;;  %v1049_v42 = vadd.f32 %v1048_v26, %v1043_v25  ;;  %v1078_v49 = vadd.f32 %v1077_v29, %v1072_v32  ;;  %v1080_v50 = vadd.f32 %v1077_v29, %v1074_v33 }
  0x6a   : > { %797 = vrot.lane.b32.xlu0 %v793_v58, %s2924_s8  ;;  %v3243_v58 = vadd.f32 %v3227_v45, %v970_v43  ;;  %v1051_v43 = vadd.f32 %v1048_v26, %v1045_v27  ;;  %v1010_v53 = vrot.slane %v1002_v38, 2  ;;  %v1101_v55 = vmul.f32 %v1100_v34, %v3032_v2 }
  0x6b   : > { %v984_v15 = vrot.slane %v974_v57, 2  ;;  %v1103_v54 = vmul.f32 %v1100_v34, %v3044_v4  ;;  %v1060_v57 = vrot.slane %v1050_v40, 2  ;;  %v1061_v59 = vrot.slane %v1052_v41, 2 }
  0x6c   : > { %v4458_v16 = vrot.slane %v3243_v58, 2  ;;  %v1086_v14 = vrot.slane %v1078_v49, 2  ;;  %v3339_v34 = vstv %s3308_s23  ;;  %v3348_v38 = vstv %s3312_s24  ;;  %s3530_s23 = sld [smem:[#allocation2 + $0x4]] }
  0x6d   : > { %828 = vrot.lane.b32.xlu1 %v825_v61, %s2924_s8  ;;  %v997_v61 = vmul.f32 %v995_v51, %v3026_v0  ;;  %v1062_v23 = vsel %vm673_vm0, %v1060_v57, %v1061_v59  ;;  %v3373_v49 = vstv %s3318_s26  ;;  %s3538_s24 = sld [smem:[#allocation4]] }
  0x6e   : > { %826 = vrot.lane.b32.xlu0 %v822_v62, %s2924_s8  ;;  %v999_v62 = vmul.f32 %v995_v51, %v3029_v1  ;;  %v986_v35 = vsel %vm673_vm0, %v984_v15, %v4458_v16  ;;  %v1106_v51 = vstv %s3266_s13  ;;  %v1087_v15 = vrot.slane %v1080_v50, 2  ;;  %s3453_s13 = sld [smem:[#allocation4 + $0x13]] }
  0x6f   : > { %v3269_v20 = vadd.f32 %v1001_v10, %v997_v61  ;;  %v1129_v61 = vstv %s3278_s15  ;;  %v1109_v17 = vadd.f32 %v1106_v51, %v1103_v54  ;;  %v1188_v50 = vmul.f32 %v3339_v34, %v3032_v2  ;;  %s3501_s15 = sld [smem:[#allocation2 + $0x17]] }
  0x70   : > { %v3271_v21 = vadd.f32 %v1001_v10, %v999_v62  ;;  %v1057_v62 = vrot.slane %v1049_v42, 2  ;;  %v1133_v18 = vmul.f32 %v1129_v61, %v3029_v1  ;;  %v3357_v42 = vstv %s3315_s25  ;;  %s3540_s25 = sld [smem:[#allocation2 + $0x10]] }
  0x71   : > { %873 = vrot.lane.b32.xlu1 %v870_v28, %s2924_s8  ;;  %v1073_v28 = vmul.f32 %v1071_v9, %v3026_v0  ;;  %v1013_v37 = vrot.slane %v3269_v20, 2  ;;  %v1131_v9 = vmul.f32 %v1129_v61, %v3026_v0  ;;  %v1135_v20 = vstv %s3297_s16  ;;  %s3520_s16 = sld [smem:[#allocation2]] }
  0x72   : > { %871 = vrot.lane.b32.xlu0 %v867_v56, %s2924_s8  ;;  %v1014_v52 = vrot.slane %v3271_v21, 2  ;;  %v1011_v56 = vrot.slane %v1004_v39, 2  ;;  %v1130_v21 = vmul.f32 %v1129_v61, %v3032_v2  ;;  %v1116_v32 = vrot.slane %v1109_v17, 2  ;;  %s3550_s26 = sld [smem:[#allocation4 + $0x4]] }
  0x73   : > { %v1079_v44 = vadd.f32 %v1077_v29, %v1073_v28  ;;  %v1088_v28 = vsel %vm673_vm0, %v1086_v14, %v1087_v15  ;;  %v3334_v29 = vstv %s3303_s17  ;;  %v3336_v33 = vadd.f32 %v1135_v20, %v1131_v9  ;;  %s3522_s17 = sld [smem:[#allocation4 + $0x17]] }
  0x74   : > { %v1012_v22 = vsel %vm673_vm0, %v1010_v53, %v1011_v56  ;;  %v1160_v40 = vmul.f32 %v3334_v29, %v3026_v0  ;;  %v1162_v41 = vmul.f32 %v3334_v29, %v3029_v1  ;;  %v1238_v53 = vmul.f32 %v3348_v38, %v3029_v1 }
  0x75   : > { %902 = vrot.lane.b32.xlu1 %v899_v63, %s2924_s8  ;;  %v1058_v63 = vrot.slane %v1051_v43, 2  ;;  %v1089_v10 = vrot.slane %v1079_v44, 2  ;;  %v2791_v43 = vld [vmem:[%s4440_s2] sm:$0xff]   ;;  %v1159_v44 = vmul.f32 %v3334_v29, %v3032_v2  ;;  %v1237_v54 = vmul.f32 %v3348_v38, %v3044_v4 }
  0x76   : > { %900 = vrot.lane.b32.xlu0 %v896_v3, %s2924_s8  ;;  %v1108_v3 = vadd.f32 %v1106_v51, %v1102_v46  ;;  %v1161_v46 = vmul.f32 %v3334_v29, %v3044_v4  ;;  %v1166_v59 = vadd.f32 %v3357_v42, %v1160_v40  ;;  %2681 = vmatprep.mubr.msk.bf16.mxu0 %vm491_vm1, %v2791_v43 }
  0x77   : > { %v1059_v26 = vsel %vm673_vm0, %v1057_v62, %v1058_v63  ;;  %v1147_v62 = vrot.slane %v3336_v33, 2  ;;  %v3399_v63 = vadd.f32 %v3357_v42, %v1162_v41  ;;  %2715 = vmatprep.mubr.msk.bf16.mxu1 %vm491_vm1, %v2791_v43  ;;  %v1194_v14 = vadd.f32 %v3373_v49, %v1188_v50 }
  0x78   : > { %v1118_v24 = vrot.slane %v1108_v3, 2  ;;  %v1165_v3 = vadd.f32 %v3357_v42, %v1159_v44  ;;  %v1292_v44 = vstv %s3394_s6  ;;  %s3636_s6 = sld [smem:[#allocation4 + $0x14]] }
  0x79   : > { %931 = vrot.lane.b32.xlu1 %v928_v5, %s2924_s8  ;;  %v1110_v5 = vadd.f32 %v1106_v51, %v1104_v47  ;;  %v1189_v47 = vmul.f32 %v3339_v34, %v3026_v0 }
  0x7a   : > { %929 = vrot.lane.b32.xlu0 %v925_v11, %s2924_s8  ;;  %v1090_v11 = vrot.slane %v1081_v48, 2  ;;  %v1191_v48 = vmul.f32 %v3339_v34, %v3029_v1 }
  0x7b   : > { %v1119_v25 = vrot.slane %v1110_v5, 2  ;;  %v3403_v5 = vadd.f32 %v3357_v42, %v1161_v46 }
  0x7c   : > { %v1091_v27 = vsel %vm673_vm0, %v1089_v10, %v1090_v11  ;;  %v1195_v10 = vadd.f32 %v3373_v49, %v1189_v47  ;;  %v3410_v11 = vadd.f32 %v3373_v49, %v1191_v48  ;;  %v3463_v48 = vstv %s3405_s7  ;;  %s3638_s7 = sld [smem:[#allocation4 + $0x1]] }
  0x7d   : > { %960 = vrot.lane.b32.xlu1 %v957_v12, %s2924_s8  ;;  %v1107_v12 = vadd.f32 %v1106_v51, %v1101_v55  ;;  %v1120_v39 = vsel %vm673_vm0, %v1118_v24, %v1119_v25  ;;  %v1190_v51 = vmul.f32 %v3339_v34, %v3044_v4  ;;  %v1235_v55 = vmul.f32 %v3348_v38, %v3032_v2 }
  0x7e   : > { %958 = vrot.lane.b32.xlu0 %v954_v13, %s2924_s8  ;;  %v1015_v13 = vsel %vm673_vm0, %v1013_v37, %v1014_v52  ;;  %v3345_v37 = vadd.f32 %v1135_v20, %v1130_v21  ;;  %v1236_v52 = vmul.f32 %v3348_v38, %v3026_v0  ;;  %v1173_v24 = vrot.slane %v1165_v3, 2 }
  0x7f   : > { %v1115_v30 = vrot.slane %v1107_v12, 2  ;;  %v3414_v15 = vadd.f32 %v3373_v49, %v1190_v51  ;;  %v4451_v25 = vrot.slane %v3403_v5, 2  ;;  %v1296_v3 = vmul.f32 %v1292_v44, %v3029_v1 }
  0x81   : > { %989 = vrot.lane.b32.xlu1 %v986_v35, %s2924_s8  ;;  %v3342_v35 = vadd.f32 %v1135_v20, %v1133_v18  ;;  %v1117_v56 = vsel %vm673_vm0, %v1115_v30, %v1116_v32  ;;  %v1202_v30 = vrot.slane %v1194_v14, 2  ;;  %v4449_v32 = vrot.slane %v3414_v15, 2 }
  0x82   : > { %987 = vrot.lane.b32.xlu0 %v983_v36, %s2924_s8  ;;  %v1132_v36 = vmul.f32 %v1129_v61, %v3044_v4  ;;  %v3392_v61 = vstv %s3328_s27  ;;  %v1175_v47 = vsel %vm673_vm0, %v1173_v24, %v4451_v25  ;;  %v1298_v14 = vstv %s3437_s11  ;;  %s3564_s27 = sld [smem:[#allocation4 + $0x10]] }
  0x83   : > { %v1242_v12 = vadd.f32 %v3392_v61, %v1236_v52  ;;  %v3421_v17 = vadd.f32 %v3392_v61, %v1238_v53  ;;  %v1241_v9 = vadd.f32 %v3392_v61, %v1235_v55  ;;  %v1148_v18 = vrot.slane %v3342_v35, 2  ;;  %s3694_s11 = sld [smem:[#allocation4 + $0x15]] }
  0x84   : > { %v1138_v57 = vadd.f32 %v1135_v20, %v1132_v36  ;;  %v1144_v20 = vrot.slane %v3345_v37, 2  ;;  %v1204_v51 = vsel %vm673_vm0, %v1202_v30, %v4449_v32  ;;  %v1321_v53 = vstv %s3416_s9  ;;  %s3640_s9 = sld [smem:[#allocation4 + $0x5]] }
  0x85   : > { %1018 = vrot.lane.b32.xlu1 %v1015_v13, %s2924_s8  ;;  %4468 = vst [vmem:[#allocation8_spill] sm:$0xff] %v3421_v17  ;;  %v3425_v13 = vadd.f32 %v3392_v61, %v1237_v54  ;;  %v1252_v33 = vrot.slane %v1242_v12, 2  ;;  %v4448_v35 = vrot.slane %v3421_v17, 2  ;;  %v1249_v36 = vrot.slane %v1241_v9, 2 }
  0x86   : > { %1016 = vrot.lane.b32.xlu0 %v1012_v22, %s2924_s8  ;;  %v1145_v21 = vrot.slane %v1138_v57, 2  ;;  %v1176_v22 = vrot.slane %v1166_v59, 2  ;;  %v1149_v40 = vsel %vm673_vm0, %v1147_v62, %v1148_v18  ;;  %v1294_v57 = vmul.f32 %v1292_v44, %v3026_v0 }
  0x87   : > { %4469 = vst [vmem:[#allocation9_spill] sm:$0xff] %v3425_v13  ;;  %v4447_v37 = vrot.slane %v3425_v13, 2  ;;  %v1254_v55 = vsel %vm673_vm0, %v1252_v33, %v4448_v35  ;;  %v1293_v12 = vmul.f32 %v1292_v44, %v3032_v2  ;;  %v1295_v9 = vmul.f32 %v1292_v44, %v3044_v4 }
  0x88   : > { %v1323_v18 = vmul.f32 %v1321_v53, %v3026_v0  ;;  %v1324_v24 = vmul.f32 %v1321_v53, %v3044_v4 }
  0x89   : > { %1065 = vrot.lane.b32.xlu1 %v1062_v23, %s2924_s8  ;;  %v4454_v23 = vrot.slane %v3399_v63, 2  ;;  %v1251_v54 = vsel %vm673_vm0, %v1249_v36, %v4447_v37 }
  0x8a   : > { %1063 = vrot.lane.b32.xlu0 %v1059_v26, %s2924_s8  ;;  %v3435_v26 = vstv %s3370_s30  ;;  %s3633_s30 = sld [smem:[#allocation2 + $0x5]] }
  0x8b   : > { %v1265_v41 = vmul.f32 %v3435_v26, %v3026_v0  ;;  %v1267_v43 = vmul.f32 %v3435_v26, %v3029_v1  ;;  %v1178_v46 = vsel %vm673_vm0, %v1176_v22, %v4454_v23  ;;  %v1264_v52 = vmul.f32 %v3435_v26, %v3032_v2 }
  0x8c   : > { %v1322_v22 = vmul.f32 %v1321_v53, %v3032_v2 }
  0x8d   : > { %1094 = vrot.lane.b32.xlu1 %v1091_v27, %s2924_s8  ;;  %v1205_v27 = vrot.slane %v1195_v10, 2  ;;  %v1271_v59 = vadd.f32 %v3463_v48, %v1265_v41  ;;  %v3487_v62 = vadd.f32 %v3463_v48, %v1267_v43  ;;  %v3491_v10 = vstv %s3430_s10  ;;  %s3678_s10 = sld [smem:[#allocation2 + $0x15]] }
  0x8e   : > { %1092 = vrot.lane.b32.xlu0 %v1088_v28, %s2924_s8  ;;  %v4450_v28 = vrot.slane %v3410_v11, 2  ;;  %v1352_v33 = vmul.f32 %v3491_v10, %v3026_v0  ;;  %v1354_v36 = vmul.f32 %v3491_v10, %v3029_v1  ;;  %v3514_v41 = vstv %s3453_s13  ;;  %s3704_s13 = sld [smem:[#allocation4 + $0x2]] }
  0x8f   : > { %4470 = vst [vmem:[#allocation10_spill] sm:$0xff] %v3487_v62  ;;  %v1351_v43 = vmul.f32 %v3491_v10, %v3032_v2  ;;  %v1353_v44 = vmul.f32 %v3491_v10, %v3044_v4 }
  0x90   : > { %v1207_v50 = vsel %vm673_vm0, %v1205_v27, %v4450_v28  ;;  %v1270_v27 = vadd.f32 %v3463_v48, %v1264_v52  ;;  %v1301_v52 = vadd.f32 %v1298_v14, %v1295_v9  ;;  %v1358_v28 = vadd.f32 %v3514_v41, %v1352_v33 }
  0x91   : > { %1123 = vrot.lane.b32.xlu1 %v1120_v39, %s2924_s8  ;;  %v1146_v39 = vsel %vm673_vm0, %v1144_v20, %v1145_v21  ;;  %v1325_v20 = vmul.f32 %v1321_v53, %v3029_v1  ;;  %v1327_v21 = vstv %s3441_s12  ;;  %v3528_v25 = vadd.f32 %v3514_v41, %v1354_v36  ;;  %s3698_s12 = sld [smem:[#allocation2 + $0x2]] }
  0x92   : > { %1121 = vrot.lane.b32.xlu0 %v1117_v56, %s2924_s8  ;;  %v1266_v56 = vmul.f32 %v3435_v26, %v3044_v4  ;;  %v1329_v53 = vadd.f32 %v1327_v21, %v1323_v18  ;;  %v1328_v35 = vadd.f32 %v1327_v21, %v1322_v22  ;;  %v1330_v32 = vadd.f32 %v1327_v21, %v1324_v24 }
  0x93   : > { %v1331_v37 = vadd.f32 %v1327_v21, %v1325_v20  ;;  %v1308_v18 = vrot.slane %v1301_v52, 2  ;;  %v3543_v24 = vstv %s3501_s15  ;;  %v1368_v33 = vrot.slane %v1358_v28, 2  ;;  %s3709_s15 = sld [smem:[#allocation2 + $0x6]] }
  0x94   : > { %v3506_v30 = vadd.f32 %v3463_v48, %v1266_v56  ;;  %v1281_v56 = vrot.slane %v1271_v59, 2  ;;  %v1339_v20 = vrot.slane %v1329_v53, 2  ;;  %v1336_v22 = vrot.slane %v1328_v35, 2  ;;  %v3582_v53 = vld [vmem:[%s3023_s14 + $0x18] sm:$0xff] }
  0x95   : > { %1152 = vrot.lane.b32.xlu1 %v1149_v40, %s2924_s8  ;;  %v1300_v40 = vadd.f32 %v1298_v14, %v1294_v57  ;;  %v1278_v57 = vrot.slane %v1270_v27, 2  ;;  %v1340_v21 = vrot.slane %v1331_v37, 2  ;;  %v4456_v36 = vrot.slane %v3528_v25, 2 }
  0x96   : > { %1150 = vrot.lane.b32.xlu0 %v1146_v39, %s2924_s8  ;;  %4471 = vst [vmem:[#allocation11_spill] sm:$0xff] %v3506_v30  ;;  %v1302_v39 = vadd.f32 %v1298_v14, %v1296_v3  ;;  %v4452_v59 = vrot.slane %v3506_v30, 2  ;;  %v1380_v52 = vmul.f32 %v3543_v24, %v3032_v2 }
  0x97   : > { %v1310_v3 = vrot.slane %v1300_v40, 2 }
  0x99   : > { %1181 = vrot.lane.b32.xlu1 %v1178_v46, %s2924_s8  ;;  %v1299_v46 = vadd.f32 %v1298_v14, %v1293_v12  ;;  %v1357_v14 = vadd.f32 %v3514_v41, %v1351_v43  ;;  %v1311_v12 = vrot.slane %v1302_v39, 2  ;;  %v1381_v43 = vmul.f32 %v3543_v24, %v3026_v0 }
  0x9a   : > { %1179 = vrot.lane.b32.xlu0 %v1175_v47, %s2924_s8  ;;  %v4453_v47 = vrot.slane %v3487_v62, 2  ;;  %v3577_v0 = vsel %vm673_vm0, %v1368_v33, %v4456_v36 }
  0x9b   : > { %v1307_v9 = vrot.slane %v1299_v46, 2  ;;  %v1365_v35 = vrot.slane %v1357_v14, 2  ;;  %v1312_v40 = vsel %vm673_vm0, %v1310_v3, %v1311_v12  ;;  %v3569_v46 = vstv %s3522_s17  ;;  %v3595_v12 = vld [vmem:[%s3023_s14 + $0x10] sm:$0xff]  ;;  %s4066_s17 = sld [smem:[#allocation2 + $0xf]] }
  0x9c   : > { %v1283_v27 = vsel %vm673_vm0, %v1281_v56, %v4453_v47  ;;  %v1593_v14 = vstv %s3538_s24  ;;  %s3918_s24 = sld [smem:[#allocation2 + $0x9]] }
  0x9d   : > { %1210 = vrot.lane.b32.xlu1 %v1207_v50, %s2924_s8  ;;  %v3536_v50 = vadd.f32 %v3514_v41, %v1353_v44  ;;  %v1309_v28 = vsel %vm673_vm0, %v1307_v9, %v1308_v18  ;;  %v1341_v44 = vsel %vm673_vm0, %v1339_v20, %v1340_v21  ;;  %v1387_v9 = vadd.f32 %v3569_v46, %v1381_v43  ;;  %v3603_v20 = vld [vmem:[%s3037_s21] sm:$0xff] }
  0x9e   : > { %1208 = vrot.lane.b32.xlu0 %v1204_v51, %s2924_s8  ;;  %v1337_v51 = vrot.slane %v1330_v32, 2  ;;  %v1280_v32 = vsel %vm673_vm0, %v1278_v57, %v4452_v59  ;;  %v1616_v57 = vstv %s3530_s23  ;;  %s3909_s23 = sld [smem:[#allocation4 + $0xc]] }
  0x9f   : > { %v4455_v37 = vrot.slane %v3536_v50, 2  ;;  %v1617_v33 = vmul.f32 %v3595_v12, %v1616_v57 }
  0xa0   : > { %v1338_v39 = vsel %vm673_vm0, %v1336_v22, %v1337_v51  ;;  %v1703_v22 = vstv %s3540_s25  ;;  %v1618_v51 = vmul.f32 %v3582_v53, %v1616_v57  ;;  %s3936_s25 = sld [smem:[#allocation4 + $0x9]] }
  0xa1   : > { %1257 = vrot.lane.b32.xlu1 %v1254_v55, %s2924_s8  ;;  %v1587_v55 = vstv %s3520_s16  ;;  %v3590_v2 = vsel %vm673_vm0, %v1365_v35, %v4455_v37  ;;  %v1386_v35 = vadd.f32 %v3569_v46, %v1380_v52  ;;  %v1705_v23 = vmul.f32 %v3582_v53, %v1703_v22  ;;  %s3737_s16 = sld [smem:[#allocation4 + $0x6]] }
  0xa2   : > { %1255 = vrot.lane.b32.xlu0 %v1251_v54, %s2924_s8  ;;  %v1383_v54 = vmul.f32 %v3543_v24, %v3029_v1  ;;  %v1382_v1 = vmul.f32 %v3543_v24, %v3044_v4  ;;  %v1589_v56 = vmul.f32 %v3582_v53, %v1587_v55  ;;  %v1591_v3 = vmul.f32 %v1587_v55, %v3057_v8 }
  0xa3   : > { %v1588_v4 = vmul.f32 %v3595_v12, %v1587_v55  ;;  %v1590_v21 = vmul.f32 %v3603_v20, %v1587_v55  ;;  %v1704_v52 = vmul.f32 %v3595_v12, %v1703_v22  ;;  %v1394_v62 = vrot.slane %v1386_v35, 2 }
  0xa4   : > { %v3600_v18 = vadd.f32 %v3569_v46, %v1383_v54  ;;  %v3617_v43 = vadd.f32 %v3569_v46, %v1382_v1  ;;  %v1595_v55 = vadd.f32 %v1593_v14, %v1589_v56  ;;  %v1622_v54 = vstv %s3550_s26 }
  0xa5   : > { %1286 = vrot.lane.b32.xlu1 %v1283_v27, %s2924_s8  ;;  %v3609_v27 = vld [vmem:[%s3037_s21 + $0x8] sm:$0xff]  ;;  %v1597_v59 = vadd.f32 %v1593_v14, %v1591_v3  ;;  %v1594_v47 = vadd.f32 %v1593_v14, %v1588_v4  ;;  %v1596_v36 = vadd.f32 %v1593_v14, %v1590_v21  ;;  %v1706_v1 = vmul.f32 %v3603_v20, %v1703_v22 }
  0xa6   : > { %1284 = vrot.lane.b32.xlu0 %v1280_v32, %s2924_s8  ;;  %v1620_v8 = vmul.f32 %v3609_v27, %v1616_v57  ;;  %v1619_v32 = vmul.f32 %v3603_v20, %v1616_v57  ;;  %v1707_v37 = vmul.f32 %v3609_v27, %v1703_v22  ;;  %v1624_v56 = vadd.f32 %v1622_v54, %v1618_v51 }
  0xa7   : > { %v1623_v30 = vadd.f32 %v1622_v54, %v1617_v33  ;;  %v1397_v3 = vrot.slane %v1387_v9, 2  ;;  %v1605_v21 = vrot.slane %v1595_v55, 2  ;;  %v1606_v22 = vrot.slane %v1597_v59, 2 }
  0xa8   : > { %v1626_v16 = vadd.f32 %v1622_v54, %v1620_v8  ;;  %v1634_v14 = vrot.slane %v1624_v56, 2 }
  0xa9   : > { %1315 = vrot.lane.b32.xlu1 %v1312_v40, %s2924_s8  ;;  %v1709_v40 = vstv %s3564_s27  ;;  %v1631_v13 = vrot.slane %v1623_v30, 2 }
  0xaa   : > { %1313 = vrot.lane.b32.xlu0 %v1309_v28, %s2924_s8  ;;  %v1625_v28 = vadd.f32 %v1622_v54, %v1619_v32  ;;  %v1711_v51 = vadd.f32 %v1709_v40, %v1705_v23  ;;  %v1713_v8 = vadd.f32 %v1709_v40, %v1707_v37  ;;  %v1602_v32 = vrot.slane %v1594_v47, 2 }
  0xab   : > { %v420_v57 = vpop.permute.xlu1 %419  ;;  %v1603_v54 = vrot.slane %v1596_v36, 2  ;;  %v1712_v9 = vadd.f32 %v1709_v40, %v1706_v1  ;;  %v1635_v4 = vrot.slane %v1626_v16, 2  ;;  %v4472_v47 = vrot.slane %v3600_v18, 2 }
  0xac   : > { %v425_v19 = vpop.permute.xlu0 %424  ;;  %v1632_v17 = vrot.slane %v1625_v28, 2  ;;  %v4473_v16 = vrot.slane %v3617_v43, 2  ;;  %v1721_v36 = vrot.slane %v1711_v51, 2  ;;  %v1732_v37 = vstv %s3623_s28 }
  0xad   : > { %1344 = vrot.lane.b32.xlu1 %v1341_v44, %s2924_s8  ;;  %v1710_v44 = vadd.f32 %v1709_v40, %v1704_v52  ;;  %v1399_v59 = vsel %vm673_vm0, %v1397_v3, %v4472_v47  ;;  %v1604_v55 = vsel %vm673_vm0, %v1602_v32, %v1603_v54  ;;  %v1719_v52 = vrot.slane %v1712_v9, 2 }
  0xae   : > { %1342 = vrot.lane.b32.xlu0 %v1338_v39, %s2924_s8  ;;  %v1396_v30 = vsel %vm673_vm0, %v1394_v62, %v4473_v16  ;;  %v1636_v56 = vsel %vm673_vm0, %v1634_v14, %v1635_v4  ;;  %v1633_v62 = vsel %vm673_vm0, %v1631_v13, %v1632_v17  ;;  %v1777_v28 = vstv %s3628_s29 }
  0xaf   : > { %v1452_v33 = vpop.permute.xlu1 %1451  ;;  %v1718_v40 = vrot.slane %v1710_v44, 2  ;;  %v1806_v51 = vstv %s3633_s30  ;;  %v1738_v4 = vstv %s3636_s6  ;;  %v1733_v17 = vmul.f32 %v3595_v12, %v1732_v37  ;;  %s3848_s30 = sld [smem:[#allocation2 + $0x8]] }
  0xb0   : > { %v427_v35 = vpop.permute.xlu0 %426  ;;  %v1735_v13 = vmul.f32 %v3603_v20, %v1732_v37  ;;  %v1781_v32 = vmul.f32 %v3609_v27, %v1777_v28  ;;  %v1783_v54 = vstv %s3638_s7  ;;  %v1778_v9 = vmul.f32 %v3595_v12, %v1777_v28  ;;  %s3980_s6 = sld [smem:[#allocation2 + $0xa]] }
  0xb1   : > { %v429_v23 = vsel %vm428_vm2, %v425_v19, %v427_v35  ;;  %1373 = vrot.lane.b32.xlu1 %v3577_v0, %s2924_s8  ;;  %v1722_v19 = vrot.slane %v1713_v8, 2  ;;  %v1607_v0 = vsel %vm673_vm0, %v1605_v21, %v1606_v22  ;;  %v1734_v21 = vmul.f32 %v3582_v53, %v1732_v37  ;;  %s3991_s7 = sld [smem:[#allocation4 + $0xd]] }
  0xb2   : > { %2671 = vmatprep.subr.bf16.mxu0 %v429_v23  ;;  %1371 = vrot.lane.b32.xlu0 %v3590_v2, %s2924_s8  ;;  %v1736_v22 = vmul.f32 %v3609_v27, %v1732_v37  ;;  %v3673_v14 = vsel %vm673_vm0, %v1718_v40, %v1719_v52  ;;  %v1780_v35 = vmul.f32 %v3603_v20, %v1777_v28  ;;  %v1812_v47 = vstv %s3640_s9  ;;  %s4011_s9 = sld [smem:[#allocation2 + $0xe]] }
  0xb3   : > { %2672 = vmatpush3.bf16.msra.mxu0 %v429_v23  ;;  %v1454_v39 = vpop.permute.xlu1 %1453  ;;  %v3666_v8 = vsel %vm673_vm0, %v1721_v36, %v1722_v19  ;;  %v1808_v23 = vmul.f32 %v3582_v53, %v1806_v51  ;;  %v1810_v16 = vmul.f32 %v3609_v27, %v1806_v51  ;;  %v1809_v36 = vmul.f32 %v3603_v20, %v1806_v51 }
  0xb4   : > { %v418_v1 = vpop.permute.xlu0 %417  ;;  %v1455_v2 = vsel %vm428_vm2, %v1452_v33, %v1454_v39  ;;  %v1779_v33 = vmul.f32 %v3582_v53, %v1777_v28  ;;  %v1740_v19 = vadd.f32 %v1738_v4, %v1734_v21  ;;  %v1742_v37 = vadd.f32 %v1738_v4, %v1736_v22 }
  0xb5   : > { %v422_v3 = vsel %vm421_vm3, %v418_v1, %v420_v57  ;;  %2705 = vmatprep.subr.bf16.mxu1 %v1455_v2  ;;  %1402 = vrot.lane.b32.xlu1 %v1399_v59, %s2924_s8  ;;  %v1739_v39 = vadd.f32 %v1738_v4, %v1733_v17  ;;  %v1897_v40 = vmul.f32 %v3609_v27, %v3211_v31 }
  0xb6   : > { %2673 = vmatprep.subr.bf16.mxu0 %v422_v3  ;;  %2706 = vmatpush3.bf16.msra.mxu1 %v1455_v2  ;;  %v1741_v1 = vadd.f32 %v1738_v4, %v1735_v13  ;;  %v1896_v2 = vmul.f32 %v3603_v20, %v3211_v31  ;;  %v1784_v21 = vadd.f32 %v1783_v54, %v1778_v9  ;;  %v1750_v4 = vrot.slane %v1740_v19, 2 }
  0xb7   : > { %2674 = vmatpush3.bf16.msra.mxu0 %v422_v3  ;;  %v1448_v57 = vpop.permute.xlu1 %1447  ;;  %1400 = vrot.lane.b32.xlu0 %v1396_v30, %s2924_s8  ;;  %v1807_v30 = vmul.f32 %v3595_v12, %v1806_v51  ;;  %v1787_v3 = vadd.f32 %v1783_v54, %v1781_v32  ;;  %v1786_v22 = vadd.f32 %v1783_v54, %v1780_v35  ;;  %v1751_v31 = vrot.slane %v1742_v37, 2 }
  0xb8   : > { %v1446_v44 = vpop.permute.xlu0 %1445  ;;  %v1814_v51 = vadd.f32 %v1812_v47, %v1808_v23  ;;  %v1747_v13 = vrot.slane %v1739_v39, 2  ;;  %v1922_v35 = vstv %s3678_s10 }
  0xb9   : > { %v1449_v59 = vsel %vm421_vm3, %v1446_v44, %v1448_v57  ;;  %1610 = vrot.lane.b32.xlu1 %v1607_v0, %s2924_s8  ;;  %v1785_v0 = vadd.f32 %v1783_v54, %v1779_v33  ;;  %v1816_v57 = vadd.f32 %v1812_v47, %v1810_v16  ;;  %v1813_v44 = vadd.f32 %v1812_v47, %v1807_v30 }
  0xba   : > { %2707 = vmatprep.subr.bf16.mxu1 %v1449_v59  ;;  %v1903_v33 = vadd.f32 %v1897_v40, %v3227_v45  ;;  %v1748_v54 = vrot.slane %v1741_v1, 2  ;;  %v1793_v16 = vrot.slane %v1786_v22, 2  ;;  %v1824_v30 = vrot.slane %v1814_v51, 2 }
  0xbb   : > { %2708 = vmatpush3.bf16.msra.mxu1 %v1449_v59  ;;  %v413_v52 = vpop.permute.xlu1 %412  ;;  %1608 = vrot.lane.b32.xlu0 %v1604_v55, %s2924_s8  ;;  %v1815_v55 = vadd.f32 %v1812_v47, %v1809_v36  ;;  %v1795_v9 = vrot.slane %v1785_v0, 2  ;;  %v1796_v59 = vrot.slane %v1787_v3, 2  ;;  %v1792_v47 = vrot.slane %v1784_v21, 2 }
  0xbc   : > { %v411_v28 = vpop.permute.xlu0 %410  ;;  %v1825_v19 = vrot.slane %v1816_v57, 2  ;;  %v1912_v39 = vrot.slane %v1903_v33, 2  ;;  %v1924_v40 = vmul.f32 %v3582_v53, %v1922_v35  ;;  %v1928_v0 = vstv %s3694_s11  ;;  %s3871_s11 = sld [smem:[#allocation4 + $0x8]] }
  0xbd   : > { %v415_v17 = vsel %vm414_vm4, %v411_v28, %v413_v52  ;;  %1639 = vrot.lane.b32.xlu1 %v1636_v56, %s2924_s8  ;;  %v1902_v56 = vadd.f32 %v1896_v2, %v3227_v45  ;;  %v1822_v37 = vrot.slane %v1815_v55, 2  ;;  %v1752_v45 = vsel %vm673_vm0, %v1750_v4, %v1751_v31 }
  0xbe   : > { %2675 = vmatprep.subr.bf16.mxu0 %v415_v17  ;;  %v1926_v52 = vmul.f32 %v3609_v27, %v1922_v35  ;;  %v1749_v28 = vsel %vm673_vm0, %v1747_v13, %v1748_v54  ;;  %v1797_v3 = vsel %vm673_vm0, %v1795_v9, %v1796_v59  ;;  %v1794_v21 = vsel %vm673_vm0, %v1792_v47, %v1793_v16 }
  0xbf   : > { %2676 = vmatpush3.bf16.msra.mxu0 %v415_v17  ;;  %v1442_v32 = vpop.permute.xlu1 %1441  ;;  %1637 = vrot.lane.b32.xlu0 %v1633_v62, %s2924_s8  ;;  %v1821_v62 = vrot.slane %v1813_v44, 2  ;;  %v1826_v51 = vsel %vm673_vm0, %v1824_v30, %v1825_v19  ;;  %v1968_v57 = vstv %s3698_s12  ;;  %v1930_v55 = vadd.f32 %v1928_v0, %v1924_v40  ;;  %s3885_s12 = sld [smem:[#allocation2 + $0xc]] }
  0xc0   : > { %v1440_v23 = vpop.permute.xlu0 %1439  ;;  %v1932_v4 = vadd.f32 %v1928_v0, %v1926_v52  ;;  %v1923_v31 = vmul.f32 %v3595_v12, %v1922_v35  ;;  %v4475_v33 = vrot.slane %v3249_v60, 2  ;;  %v2278_v54 = vmul.f32 %v3603_v20, %v3491_v10 }
  0xc1   : > { %v1443_v36 = vsel %vm414_vm4, %v1440_v23, %v1442_v32  ;;  %1726 = vrot.lane.b32.xlu1 %v3666_v8, %s2924_s8  ;;  %v1909_v8 = vrot.slane %v1902_v56, 2  ;;  %v1823_v17 = vsel %vm673_vm0, %v1821_v62, %v1822_v37  ;;  %v1925_v56 = vmul.f32 %v3603_v20, %v1922_v35 }
  0xc2   : > { %2709 = vmatprep.subr.bf16.mxu1 %v1443_v36  ;;  %v1970_v23 = vmul.f32 %v3582_v53, %v1968_v57  ;;  %v1972_v60 = vmul.f32 %v3609_v27, %v1968_v57  ;;  %v1974_v59 = vstv %s3704_s13  ;;  %v1997_v16 = vstv %s3709_s15  ;;  %s4031_s13 = sld [smem:[#allocation4 + $0xe]] }
  0xc3   : > { %2710 = vmatpush3.bf16.msra.mxu1 %v1443_v36  ;;  %v406_v1 = vpop.permute.xlu1 %405  ;;  %1724 = vrot.lane.b32.xlu0 %v3673_v14, %s2924_s8  ;;  %v4474_v14 = vrot.slane %v3243_v58, 2  ;;  %v3735_v32 = vsel %vm673_vm0, %v4475_v33, %v1909_v8  ;;  %v2279_v58 = vmul.f32 %v3609_v27, %v3491_v10  ;;  %v2284_v36 = vadd.f32 %v2278_v54, %v3514_v41  ;;  %v2792_v10 = vld [vmem:[%s4440_s2 + $0x8] sm:$0xff]   ;;  %s4046_s15 = sld [smem:[#allocation2 + $0xb]] }
  0xc4   : > { %v404_v2 = vpop.permute.xlu0 %403  ;;  %v1940_v35 = vrot.slane %v1930_v55, 2  ;;  %v1941_v19 = vrot.slane %v1932_v4, 2  ;;  %v1929_v62 = vadd.f32 %v1928_v0, %v1923_v31  ;;  %v2308_v37 = vmul.f32 %v3609_v27, %v3543_v24 }
  0xc5   : > { %v408_v22 = vsel %vm407_vm5, %v404_v2, %v406_v1  ;;  %1755 = vrot.lane.b32.xlu1 %v1752_v45, %s2924_s8  ;;  %v3728_v44 = vsel %vm673_vm0, %v4474_v14, %v1912_v39  ;;  %v2285_v30 = vadd.f32 %v2279_v58, %v3514_v41  ;;  %v2793_v45 = vld [vmem:[%s4440_s2 + $0x10] sm:$0xff]   ;;  %v1969_v41 = vmul.f32 %v3595_v12, %v1968_v57 }
  0xc6   : > { %2677 = vmatprep.subr.bf16.mxu0 %v408_v22  ;;  %v2291_v52 = vrot.slane %v2284_v36, 2  ;;  %v2307_v1 = vmul.f32 %v3603_v20, %v3543_v24  ;;  %v1971_v2 = vmul.f32 %v3603_v20, %v1968_v57  ;;  %v4477_v24 = vrot.slane %v3536_v50, 2 }
  0xc7   : > { %2678 = vmatpush3.bf16.msra.mxu0 %v408_v22  ;;  %v1436_v13 = vpop.permute.xlu1 %1435  ;;  %1753 = vrot.lane.b32.xlu0 %v1749_v28, %s2924_s8  ;;  %v2294_v40 = vrot.slane %v2285_v30, 2  ;;  %v2314_v28 = vadd.f32 %v2308_v37, %v3569_v46  ;;  %v4476_v22 = vrot.slane %v3528_v25, 2  ;;  %v1978_v57 = vadd.f32 %v1974_v59, %v1972_v60 }
  0xc8   : > { %v1434_v9 = vpop.permute.xlu0 %1433  ;;  %2679 = vmatprep.subr.bf16.mxu0 %v3049_v6  ;;  %v1999_v55 = vmul.f32 %v3582_v53, %v1997_v16  ;;  %v1942_v50 = vsel %vm673_vm0, %v1940_v35, %v1941_v19  ;;  %v1937_v31 = vrot.slane %v1929_v62, 2  ;;  %v1975_v54 = vadd.f32 %v1974_v59, %v1969_v41 }
  0xc9   : > { %v1437_v47 = vsel %vm407_vm5, %v1434_v9, %v1436_v13  ;;  %1800 = vrot.lane.b32.xlu1 %v1797_v3, %s2924_s8  ;;  %v1976_v3 = vadd.f32 %v1974_v59, %v1970_v23  ;;  %v3777_v14 = vsel %vm673_vm0, %v4476_v22, %v2294_v40  ;;  %v2323_v4 = vrot.slane %v2314_v28, 2 }
  0xca   : > { %2711 = vmatprep.subr.bf16.mxu1 %v1437_v47  ;;  %v2003_v13 = vstv %s3737_s16  ;;  %v1977_v9 = vadd.f32 %v1974_v59, %v1971_v2  ;;  %v1998_v60 = vmul.f32 %v3595_v12, %v1997_v16  ;;  %v1987_v59 = vrot.slane %v1978_v57, 2  ;;  %s4062_s16 = sld [smem:[#allocation4 + $0xb]] }
  0xcb   : > { %2680 = vmatpush3.bf16.msra.mxu0 %v3049_v6  ;;  %2712 = vmatpush3.bf16.msra.mxu1 %v1437_v47  ;;  %v3762_v39 = vpop.permute.xlu1 %682  ;;  %v1931_v6 = vadd.f32 %v1928_v0, %v1925_v56  ;;  %v2313_v0 = vadd.f32 %v2307_v1, %v3569_v46  ;;  %v4478_v56 = vrot.slane %v3600_v18, 2  ;;  %v1986_v23 = vrot.slane %v1976_v3, 2  ;;  %v2794_v18 = vld [vmem:[%s4440_s2 + $0x18] sm:$0xff]  }
  0xcc   : > { %2713 = vmatprep.subr.bf16.mxu1 %v3053_v7  ;;  %1798 = vrot.lane.b32.xlu0 %v1794_v21, %s2924_s8  ;;  %v3769_v8 = vpop.permute.xlu0 %680  ;;  %v3782_v21 = vsel %vm673_vm0, %v4477_v24, %v2291_v52  ;;  %v2000_v47 = vmul.f32 %v3603_v20, %v1997_v16  ;;  %v2005_v36 = vadd.f32 %v2003_v13, %v1999_v55  ;;  %v1983_v19 = vrot.slane %v1975_v54, 2 }
  0xcd   : > { %1829 = vrot.lane.b32.xlu1 %v1826_v51, %s2924_s8  ;;  %v2001_v51 = vmul.f32 %v3609_v27, %v1997_v16  ;;  %v2320_v33 = vrot.slane %v2313_v0, 2  ;;  %v1938_v58 = vrot.slane %v1931_v6, 2  ;;  %v1984_v62 = vrot.slane %v1977_v9, 2 }
  0xce   : > { %2682 = vmatmul.mubr.msk.bf16.vlgmr.msra.gmra.mxu0 %vm491_vm1, %v2792_v10  ;;  %v2087_v37 = vmul.f32 %v3603_v20, %v3334_v29  ;;  %v2004_v41 = vadd.f32 %v2003_v13, %v1998_v60  ;;  %v2006_v40 = vadd.f32 %v2003_v13, %v2000_v47  ;;  %v2117_v52 = vmul.f32 %v3609_v27, %v3339_v34 }
  0xcf   : > { %2714 = vmatpush3.bf16.msra.mxu1 %v3053_v7  ;;  %2685 = vmatprep.mubr.msk.bf16.mxu0 %vm491_vm1, %v2793_v45  ;;  %v3790_v25 = vpop.permute.xlu1 %712  ;;  %v3800_v7 = vsel %vm673_vm0, %v4478_v56, %v2323_v4  ;;  %v2007_v35 = vadd.f32 %v2003_v13, %v2001_v51  ;;  %v2015_v1 = vrot.slane %v2005_v36, 2  ;;  %v1985_v3 = vsel %vm673_vm0, %v1983_v19, %v1984_v62  ;;  %v2796_v51 = vld [vmem:[%s4440_s2 + $0x28] sm:$0xff]  }
  0xd0   : > { %1827 = vrot.lane.b32.xlu0 %v1823_v17, %s2924_s8  ;;  %v3795_v46 = vpop.permute.xlu0 %710  ;;  %v4479_v17 = vrot.slane %v3617_v43, 2  ;;  %v2795_v43 = vld [vmem:[%s4440_s2 + $0x20] sm:$0xff]   ;;  %v2093_v22 = vadd.f32 %v2087_v37, %v3357_v42  ;;  %v2012_v24 = vrot.slane %v2004_v41, 2  ;;  %v2013_v0 = vrot.slane %v2006_v40, 2 }
  0xd1   : > { %1916 = vrot.lane.b32.xlu1 %v3728_v44, %s2924_s8  ;;  %v2088_v44 = vmul.f32 %v3609_v27, %v3334_v29  ;;  %v2016_v6 = vrot.slane %v2007_v35, 2  ;;  %v2123_v57 = vadd.f32 %v2117_v52, %v3373_v49  ;;  %v2116_v55 = vmul.f32 %v3603_v20, %v3339_v34  ;;  %v2797_v34 = vld [vmem:[%s4440_s2 + $0x30] sm:$0xff]  }
  0xd2   : > { %v3809_v30 = vsel %vm673_vm0, %v4479_v17, %v2320_v33  ;;  %2716 = vmatmul.mubr.msk.bf16.vlgmr.msra.gmra.mxu1 %vm491_vm1, %v2792_v10  ;;  %v2100_v33 = vrot.slane %v2093_v22, 2  ;;  %v2162_v56 = vmul.f32 %v3603_v20, %v3348_v38  ;;  %v2192_v17 = vmul.f32 %v3609_v27, %v3435_v26 }
  0xd3   : > { %2719 = vmatprep.mubr.msk.bf16.mxu1 %vm491_vm1, %v2793_v45  ;;  %v3821_v16 = vpop.permute.xlu1 %741  ;;  %v1939_v45 = vsel %vm673_vm0, %v1937_v31, %v1938_v58  ;;  %v2094_v2 = vadd.f32 %v2088_v44, %v3357_v42  ;;  %v2017_v4 = vsel %vm673_vm0, %v2015_v1, %v2016_v6  ;;  %v2014_v58 = vsel %vm673_vm0, %v2012_v24, %v2013_v0  ;;  %v2798_v44 = vld [vmem:[%s4440_s2 + $0x38] sm:$0xff]   ;;  %v4484_v1 = vld [vmem:[#allocation8_spill] sm:$0xff] }
  0xd4   : > { %1914 = vrot.lane.b32.xlu0 %v3735_v32, %s2924_s8  ;;  %v3825_v10 = vpop.permute.xlu0 %739  ;;  %v1988_v32 = vsel %vm673_vm0, %v1986_v23, %v1987_v59  ;;  %v2132_v54 = vrot.slane %v2123_v57, 2  ;;  %v2122_v9 = vadd.f32 %v2116_v55, %v3373_v49  ;;  %v4480_v23 = vrot.slane %v3399_v63, 2 }
  0xd5   : > { %1945 = vrot.lane.b32.xlu1 %v1942_v50, %s2924_s8  ;;  %v2103_v42 = vrot.slane %v2094_v2, 2  ;;  %v2163_v50 = vmul.f32 %v3609_v27, %v3348_v38  ;;  %v2191_v49 = vmul.f32 %v3603_v20, %v3435_v26  ;;  %v4481_v63 = vrot.slane %v3403_v5, 2 }
  0xd6   : > { %2686 = vmatmul.mubr.msk.bf16.gmra.mxu0 %vm491_vm1, %v2794_v18  ;;  %v2129_v36 = vrot.slane %v2122_v9, 2  ;;  %v2168_v35 = vadd.f32 %v2162_v56, %v3392_v61  ;;  %v1645_v26 = vstv %s3848_s30  ;;  %v2198_v5 = vadd.f32 %v2192_v17, %v3463_v48  ;;  %v4490_v56 = vld [vmem:[#allocation11_spill] sm:$0xff]  ;;  %v2801_v17 = vld [vmem:[%s4440_s2 + $0x50] sm:$0xff]   ;;  %s3955_s30 = sld [smem:[#allocation2 + $0xd]] }
  0xd7   : > { %2689 = vmatprep.mubr.msk.bf16.mxu0 %vm491_vm1, %v2795_v43  ;;  %v3837_v29 = vpop.permute.xlu1 %770  ;;  %v2104_v60 = vsel %vm673_vm0, %v4480_v23, %v2103_v42  ;;  %v2169_v47 = vadd.f32 %v2163_v50, %v3392_v61  ;;  %v2101_v59 = vsel %vm673_vm0, %v4481_v63, %v2100_v33  ;;  %v2197_v37 = vadd.f32 %v2191_v49, %v3463_v48  ;;  %v2799_v61 = vld [vmem:[%s4440_s2 + $0x40] sm:$0xff]   ;;  %v4486_v42 = vld [vmem:[#allocation9_spill] sm:$0xff] }
  0xd8   : > { %1943 = vrot.lane.b32.xlu0 %v1939_v45, %s2924_s8  ;;  %v3840_v28 = vpop.permute.xlu0 %768  ;;  %v1647_v41 = vmul.f32 %v3582_v53, %v1645_v26  ;;  %v4483_v40 = vrot.slane %v3414_v15, 2  ;;  %v2175_v52 = vrot.slane %v2168_v35, 2  ;;  %v4485_v6 = vrot.slane %v4484_v1, 2  ;;  %v2800_v33 = vld [vmem:[%s4440_s2 + $0x48] sm:$0xff]  }
  0xd9   : > { %1991 = vrot.lane.b32.xlu1 %v1988_v32, %s2924_s8  ;;  %v2178_v62 = vrot.slane %v2169_v47, 2  ;;  %v1651_v32 = vstv %s3871_s11  ;;  %v2204_v22 = vrot.slane %v2197_v37, 2  ;;  %v1649_v0 = vmul.f32 %v3609_v27, %v1645_v26 }
  0xda   : > { %2720 = vmatmul.mubr.msk.bf16.gmra.mxu1 %vm491_vm1, %v2794_v18  ;;  %v2130_v48 = vsel %vm673_vm0, %v4483_v40, %v2129_v36  ;;  %v1674_v15 = vstv %s3885_s12  ;;  %v3928_v55 = vadd.f32 %v1651_v32, %v1647_v41  ;;  %v4487_v50 = vrot.slane %v4486_v42, 2  ;;  %s4023_s12 = sld [smem:[#allocation4 + $0xa]] }
  0xdb   : > { %2723 = vmatprep.mubr.msk.bf16.mxu1 %vm491_vm1, %v2795_v43  ;;  %v3861_v31 = vpop.permute.xlu1 %799  ;;  %v4482_v43 = vrot.slane %v3410_v11, 2  ;;  %v2179_v2 = vsel %vm673_vm0, %v4485_v6, %v2178_v62  ;;  %v4491_v23 = vrot.slane %v4490_v56, 2  ;;  %v1676_v47 = vmul.f32 %v3582_v53, %v1674_v15 }
  0xdc   : > { %1989 = vrot.lane.b32.xlu0 %v1985_v3, %s2924_s8  ;;  %v3864_v13 = vpop.permute.xlu0 %797  ;;  %v2207_v3 = vrot.slane %v2198_v5, 2  ;;  %v1655_v63 = vadd.f32 %v1651_v32, %v1649_v0  ;;  %v1680_v36 = vstv %s3909_s23  ;;  %v3960_v35 = vsel %vm414_vm4, %v3769_v8, %v3762_v39  ;;  %s4079_s23 = sld [smem:[#allocation4 + $0xf]] }
  0xdd   : > { %2020 = vrot.lane.b32.xlu1 %v2017_v4, %s2924_s8  ;;  %v2133_v19 = vsel %vm673_vm0, %v4482_v43, %v2132_v54  ;;  %v1648_v4 = vmul.f32 %v3603_v20, %v1645_v26  ;;  %v1675_v5 = vmul.f32 %v3595_v12, %v1674_v15  ;;  %v1835_v37 = vstv %s3918_s24 }
  0xde   : > { %2690 = vmatmul.mubr.msk.bf16.gmra.mxu0 %vm491_vm1, %v2796_v51  ;;  %v3973_v39 = vsel %vm414_vm4, %v3795_v46, %v3790_v25  ;;  %v1677_v41 = vmul.f32 %v3603_v20, %v1674_v15  ;;  %v3996_v40 = vsel %vm414_vm4, %v3840_v28, %v3837_v29  ;;  %v1837_v1 = vmul.f32 %v3582_v53, %v1835_v37 }
  0xdf   : > { %2693 = vmatprep.mubr.msk.bf16.mxu0 %vm491_vm1, %v2797_v34  ;;  %v3883_v38 = vpop.permute.xlu1 %828  ;;  %4495 = vst [vmem:[#allocation11_spill] sm:$0xff] %v3996_v40  ;;  %v1839_v29 = vmul.f32 %v3609_v27, %v1835_v37  ;;  %v1864_v0 = vstv %s3955_s30 }
  0xe0   : > { %2018 = vrot.lane.b32.xlu0 %v2014_v58, %s2924_s8  ;;  %v3888_v18 = vpop.permute.xlu0 %826  ;;  %v4488_v58 = vld [vmem:[#allocation10_spill] sm:$0xff] }
  0xe1   : > { %2107 = vrot.lane.b32.xlu1 %v2104_v60, %s2924_s8  ;;  %v4489_v54 = vrot.slane %v4488_v58, 2  ;;  %v2205_v60 = vsel %vm673_vm0, %v4491_v23, %v2204_v22  ;;  %v1836_v22 = vmul.f32 %v3595_v12, %v1835_v37  ;;  %v2026_v58 = vstv %s3980_s6 }
  0xe2   : > { %2724 = vmatmul.mubr.msk.bf16.gmra.mxu1 %vm491_vm1, %v2796_v51  ;;  %v1646_v51 = vmul.f32 %v3595_v12, %v1645_v26  ;;  %v1870_v23 = vstv %s3991_s7 }
  0xe3   : > { %2727 = vmatprep.mubr.msk.bf16.mxu1 %vm491_vm1, %v2797_v34  ;;  %v874_v45 = vpop.permute.xlu1 %873  ;;  %v2176_v34 = vsel %vm673_vm0, %v4487_v50, %v2175_v52  ;;  %v2208_v9 = vsel %vm673_vm0, %v4489_v54, %v2207_v3  ;;  %v1664_v52 = vrot.slane %v1655_v63, 2  ;;  %v2055_v63 = vstv %s4011_s9 }
  0xe4   : > { %2105 = vrot.lane.b32.xlu0 %v2101_v59, %s2924_s8  ;;  %v872_v11 = vpop.permute.xlu0 %871  ;;  %v1678_v59 = vmul.f32 %v3609_v27, %v1674_v15  ;;  %v1652_v43 = vadd.f32 %v1651_v32, %v1646_v51 }
  0xe5   : > { %2136 = vrot.lane.b32.xlu1 %v2133_v19, %s2924_s8  ;;  %v1654_v19 = vadd.f32 %v1651_v32, %v1648_v4  ;;  %v3965_v62 = vsel %vm414_vm4, %v872_v11, %v874_v45  ;;  %v3985_v45 = vsel %vm414_vm4, %v3825_v10, %v3821_v16  ;;  %v4001_v16 = vsel %vm414_vm4, %v3864_v13, %v3861_v31 }
  0xe6   : > { %2694 = vmatmul.mubr.msk.bf16.gmra.mxu0 %vm491_vm1, %v2798_v44  ;;  %4493 = vst [vmem:[#allocation9_spill] sm:$0xff] %v3985_v45  ;;  %v1684_v46 = vadd.f32 %v1680_v36, %v1678_v59  ;;  %v4006_v10 = vsel %vm414_vm4, %v3888_v18, %v3883_v38  ;;  %v1660_v32 = vrot.slane %v1652_v43, 2  ;;  %v1681_v31 = vadd.f32 %v1680_v36, %v1675_v5  ;;  %v2802_v18 = vld [vmem:[%s4440_s2 + $0x58] sm:$0xff]  }
  0xe7   : > { %2697 = vmatprep.mubr.msk.bf16.mxu0 %vm491_vm1, %v2799_v61  ;;  %v903_v24 = vpop.permute.xlu1 %902  ;;  %4496 = vst [vmem:[#allocation12_spill] sm:$0xff] %v4006_v10  ;;  %v1661_v28 = vrot.slane %v1654_v19, 2  ;;  %v1841_v13 = vstv %s3936_s25  ;;  %v1867_v59 = vmul.f32 %v3603_v20, %v1864_v0  ;;  %v2032_v19 = vstv %s4023_s12 }
  0xe8   : > { %2134 = vrot.lane.b32.xlu0 %v2130_v48, %s2924_s8  ;;  %v901_v57 = vpop.permute.xlu0 %900  ;;  %v1689_v42 = vrot.slane %v1681_v31, 2  ;;  %v2027_v5 = vmul.f32 %v3595_v12, %v2026_v58 }
  0xe9   : > { %2182 = vrot.lane.b32.xlu1 %v2179_v2, %s2924_s8  ;;  %v3976_v8 = vsel %vm414_vm4, %v901_v57, %v903_v24  ;;  %v1683_v2 = vadd.f32 %v1680_v36, %v1677_v41  ;;  %v1838_v24 = vmul.f32 %v3603_v20, %v1835_v37  ;;  %v1843_v57 = vadd.f32 %v1841_v13, %v1837_v1 }
  0xea   : > { %2728 = vmatmul.mubr.msk.bf16.gmra.mxu1 %vm491_vm1, %v2798_v44  ;;  %v1663_v44 = vrot.slane %v3928_v55, 2  ;;  %4492 = vst [vmem:[#allocation8_spill] sm:$0xff] %v3976_v8  ;;  %v1845_v55 = vadd.f32 %v1841_v13, %v1839_v29  ;;  %v1662_v4 = vsel %vm673_vm0, %v1660_v32, %v1661_v28  ;;  %v2059_v1 = vmul.f32 %v3609_v27, %v2055_v63 }
  0xeb   : > { %2731 = vmatprep.mubr.msk.bf16.mxu1 %vm491_vm1, %v2799_v61  ;;  %v932_v49 = vpop.permute.xlu1 %931  ;;  %v1682_v61 = vadd.f32 %v1680_v36, %v1676_v47  ;;  %v1844_v56 = vadd.f32 %v1841_v13, %v1838_v24  ;;  %v1853_v47 = vrot.slane %v1843_v57, 2  ;;  %v2028_v36 = vmul.f32 %v3582_v53, %v2026_v58 }
  0xec   : > { %2180 = vrot.lane.b32.xlu0 %v2176_v34, %s2924_s8  ;;  %v930_v26 = vpop.permute.xlu0 %929  ;;  %v1665_v51 = vsel %vm673_vm0, %v1663_v44, %v1664_v52  ;;  %v1866_v34 = vmul.f32 %v3582_v53, %v1864_v0  ;;  %v2061_v29 = vstv %s4031_s13  ;;  %v1873_v28 = vadd.f32 %v1870_v23, %v1867_v59 }
  0xed   : > { %2211 = vrot.lane.b32.xlu1 %v2208_v9, %s2924_s8  ;;  %v3988_v11 = vsel %vm414_vm4, %v930_v26, %v932_v49  ;;  %v1692_v6 = vrot.slane %v1682_v61, 2  ;;  %v1842_v9 = vadd.f32 %v1841_v13, %v1836_v22  ;;  %v1865_v49 = vmul.f32 %v3595_v12, %v1864_v0 }
  0xee   : > { %2698 = vmatmul.mubr.msk.bf16.gmra.mxu0 %vm491_vm1, %v2800_v33  ;;  %4494 = vst [vmem:[#allocation10_spill] sm:$0xff] %v3988_v11  ;;  %v2030_v26 = vmul.f32 %v3609_v27, %v2026_v58  ;;  %v1851_v41 = vrot.slane %v1844_v56, 2  ;;  %v2034_v31 = vadd.f32 %v2032_v19, %v2028_v36  ;;  %v2217_v57 = vstv %s4046_s15 }
  0xef   : > { %2701 = vmatprep.mubr.msk.bf16.mxu0 %vm491_vm1, %v2801_v17  ;;  %v961_v25 = vpop.permute.xlu1 %960  ;;  %v1850_v61 = vrot.slane %v1842_v9, 2  ;;  %v1871_v32 = vadd.f32 %v1870_v23, %v1865_v49  ;;  %v2219_v56 = vmul.f32 %v3582_v53, %v2217_v57  ;;  %v2223_v49 = vstv %s4062_s16 }
  0xf0   : > { %2209 = vrot.lane.b32.xlu0 %v2205_v60, %s2924_s8  ;;  %v959_v48 = vpop.permute.xlu0 %958  ;;  %v2036_v13 = vadd.f32 %v2032_v19, %v2030_v26 }
  0xf1   : > { %2298 = vrot.lane.b32.xlu1 %v3777_v14, %s2924_s8  ;;  %v4017_v38 = vsel %vm414_vm4, %v959_v48, %v961_v25  ;;  %v1693_v14 = vrot.slane %v1684_v46, 2  ;;  %v2029_v25 = vmul.f32 %v3603_v20, %v2026_v58  ;;  %v2057_v46 = vmul.f32 %v3582_v53, %v2055_v63 }
  0xf2   : > { %4497 = vst [vmem:[#allocation13_spill] sm:$0xff] %v4017_v38  ;;  %2732 = vmatmul.mubr.msk.bf16.gmra.mxu1 %vm491_vm1, %v2800_v33  ;;  %v1868_v33 = vmul.f32 %v3609_v27, %v1864_v0  ;;  %v1852_v24 = vsel %vm673_vm0, %v1850_v61, %v1851_v41  ;;  %v2045_v58 = vrot.slane %v2036_v13, 2  ;;  %v2225_v61 = vadd.f32 %v2223_v49, %v2219_v56 }
  0xf3   : > { %2735 = vmatprep.mubr.msk.bf16.mxu1 %vm491_vm1, %v2801_v17  ;;  %v990_v3 = vpop.permute.xlu1 %989  ;;  %v1854_v17 = vrot.slane %v1845_v55, 2  ;;  %v2035_v0 = vadd.f32 %v2032_v19, %v2029_v25  ;;  %v2855_v25 = vld [vmem:[%s3023_s14 + $0x18] sm:$0xff] }
  0xf4   : > { %2296 = vrot.lane.b32.xlu0 %v3782_v21, %s2924_s8  ;;  %v988_v15 = vpop.permute.xlu0 %987  ;;  %v1690_v21 = vrot.slane %v1683_v2, 2  ;;  %v1874_v43 = vadd.f32 %v1870_v23, %v1868_v33  ;;  %v2044_v33 = vrot.slane %v2034_v31, 2 }
  0xf5   : > { %2327 = vrot.lane.b32.xlu1 %v3800_v7, %s2924_s8  ;;  %v4038_v50 = vsel %vm414_vm4, %v988_v15, %v990_v3  ;;  %v1694_v7 = vsel %vm673_vm0, %v1692_v6, %v1693_v14  ;;  %v1855_v6 = vsel %vm673_vm0, %v1853_v47, %v1854_v17  ;;  %v2033_v14 = vadd.f32 %v2032_v19, %v2027_v5 }
  0xf6   : > { %2702 = vmatmul.mubr.msk.bf16.gmra.mxu0 %vm491_vm1, %v2802_v18  ;;  %v1691_v52 = vsel %vm673_vm0, %v1689_v42, %v1690_v21  ;;  %v1883_v3 = vrot.slane %v1874_v43, 2  ;;  %v2063_v15 = vadd.f32 %v2061_v29, %v2057_v46  ;;  %v2056_v42 = vmul.f32 %v3595_v12, %v2055_v63 }
  0xf7   : > { %v1019_v54 = vpop.permute.xlu1 %1018  ;;  %v2058_v21 = vmul.f32 %v3603_v20, %v2055_v63  ;;  %v2041_v9 = vrot.slane %v2033_v14, 2  ;;  %v2042_v47 = vrot.slane %v2035_v0, 2  ;;  %v2246_v63 = vstv %s4066_s17 }
  0xf8   : > { %2325 = vrot.lane.b32.xlu0 %v3809_v30, %s2924_s8  ;;  %v1017_v60 = vpop.permute.xlu0 %1016  ;;  %v1872_v30 = vadd.f32 %v1870_v23, %v1866_v34  ;;  %v1880_v34 = vrot.slane %v1873_v28, 2  ;;  %v2221_v23 = vmul.f32 %v3609_v27, %v2217_v57  ;;  %v2073_v17 = vrot.slane %v2063_v15, 2 }
  0xf9   : > { %1668 = vrot.lane.b32.xlu1 %v1665_v51, %s2924_s8  ;;  %v4057_v44 = vsel %vm414_vm4, %v1017_v60, %v1019_v54  ;;  %v1879_v51 = vrot.slane %v1871_v32, 2  ;;  %v2062_v26 = vadd.f32 %v2061_v29, %v2056_v42  ;;  %v2218_v43 = vmul.f32 %v3595_v12, %v2217_v57 }
  0xfa   : > { %4498 = vst [vmem:[#allocation14_spill] sm:$0xff] %v4057_v44  ;;  %2736 = vmatmul.mubr.msk.bf16.gmra.mxu1 %vm491_vm1, %v2802_v18  ;;  %v1882_v2 = vrot.slane %v1872_v30, 2  ;;  %v2064_v30 = vadd.f32 %v2061_v29, %v2058_v21  ;;  %v2046_v19 = vsel %vm673_vm0, %v2044_v33, %v2045_v58  ;;  %v2220_v5 = vmul.f32 %v3603_v20, %v2217_v57 }
  0xfb   : > { %v1066_v37 = vpop.permute.xlu1 %1065  ;;  %v1881_v53 = vsel %vm673_vm0, %v1879_v51, %v1880_v34  ;;  %v2227_v41 = vadd.f32 %v2223_v49, %v2221_v23  ;;  %v2248_v46 = vmul.f32 %v2855_v25, %v2246_v63  ;;  %v2252_v32 = vstv %s4079_s23 }
  0xfc   : > { %1666 = vrot.lane.b32.xlu0 %v1662_v4, %s2924_s8  ;;  %v1064_v48 = vpop.permute.xlu0 %1063  ;;  %v2065_v4 = vadd.f32 %v2061_v29, %v2059_v1  ;;  %v2070_v29 = vrot.slane %v2062_v26, 2  ;;  %v2071_v28 = vrot.slane %v2064_v30, 2  ;;  %v2224_v31 = vadd.f32 %v2223_v49, %v2218_v43 }
  0xfd   : > { %1697 = vrot.lane.b32.xlu1 %v1694_v7, %s2924_s8  ;;  %v4074_v18 = vsel %vm414_vm4, %v1064_v48, %v1066_v37  ;;  %v1884_v7 = vsel %vm673_vm0, %v1882_v2, %v1883_v3  ;;  %v2250_v48 = vmul.f32 %v3609_v27, %v2246_v63  ;;  %v2226_v13 = vadd.f32 %v2223_v49, %v2220_v5  ;;  %v2857_v3 = vld [vmem:[%s3037_s21] sm:$0xff] }
  0xfe   : > { %v2074_v36 = vrot.slane %v2065_v4, 2  ;;  %v2249_v14 = vmul.f32 %v2857_v3, %v2246_v63  ;;  %v2254_v0 = vadd.f32 %v2252_v32, %v2248_v46  ;;  %v2072_v51 = vsel %vm673_vm0, %v2070_v29, %v2071_v28 }
  0xff   : > { %v1095_v22 = vpop.permute.xlu1 %1094  ;;  %v2256_v15 = vadd.f32 %v2252_v32, %v2250_v48  ;;  %v2232_v4 = vrot.slane %v2224_v31, 2  ;;  %v2233_v42 = vrot.slane %v2226_v13, 2 }
 0x100   : > { %1695 = vrot.lane.b32.xlu0 %v1691_v52, %s2924_s8  ;;  %v1093_v55 = vpop.permute.xlu0 %1092  ;;  %v2043_v52 = vsel %vm673_vm0, %v2041_v9, %v2042_v47  ;;  %v2075_v20 = vsel %vm673_vm0, %v2073_v17, %v2074_v36  ;;  %v2255_v34 = vadd.f32 %v2252_v32, %v2249_v14 }
 0x101   : > { %1858 = vrot.lane.b32.xlu1 %v1855_v6, %s2924_s8  ;;  %v4086_v54 = vsel %vm414_vm4, %v1093_v55, %v1095_v22  ;;  %v2856_v6 = vld [vmem:[%s3023_s14 + $0x10] sm:$0xff]  ;;  %v2235_v22 = vrot.slane %v2225_v61, 2  ;;  %v2265_v9 = vrot.slane %v2256_v15, 2  ;;  %s2636_s14 = sshll.u32 %s4563_s18, 6 }
 0x102   : > { %v2247_v2 = vmul.f32 %v2856_v6, %v2246_v63  ;;  %v2262_v17 = vrot.slane %v2255_v34, 2  ;;  %s4399_s24 = scalar_lea.vmem %s4443_s5, %s2636_s14 }
 0x103   : > { %v1124_v60 = vpop.permute.xlu1 %1123 }
 0x104   : > { %1856 = vrot.lane.b32.xlu0 %v1852_v24, %s2924_s8  ;;  %v1122_v59 = vpop.permute.xlu0 %1121  ;;  %v2236_v24 = vrot.slane %v2227_v41, 2  ;;  %v2253_v21 = vadd.f32 %v2252_v32, %v2247_v2 }
 0x105   : > { %1887 = vrot.lane.b32.xlu1 %v1884_v7, %s2924_s8  ;;  %v4100_v37 = vsel %vm414_vm4, %v1122_v59, %v1124_v60  ;;  %v2264_v7 = vrot.slane %v2254_v0, 2  ;;  %v2234_v60 = vsel %vm673_vm0, %v2232_v4, %v2233_v42 }
 0x106   : > { %4499 = vst [vmem:[#allocation15_spill] sm:$0xff] %v4100_v37  ;;  %v2237_v58 = vsel %vm673_vm0, %v2235_v22, %v2236_v24  ;;  %v2261_v47 = vrot.slane %v2253_v21, 2 }
 0x107   : > { %v1153_v12 = vpop.permute.xlu1 %1152  ;;  %v2266_v63 = vsel %vm673_vm0, %v2264_v7, %v2265_v9 }
 0x108   : > { %1885 = vrot.lane.b32.xlu0 %v1881_v53, %s2924_s8  ;;  %v1151_v1 = vpop.permute.xlu0 %1150  ;;  %v2263_v26 = vsel %vm673_vm0, %v2261_v47, %v2262_v17 }
 0x109   : > { %2049 = vrot.lane.b32.xlu1 %v2046_v19, %s2924_s8  ;;  %v4112_v27 = vsel %vm414_vm4, %v1151_v1, %v1153_v12 }
 0x10a   : > { %4500 = vst [vmem:[#allocation16_spill] sm:$0xff] %v4112_v27 }
 0x10b   : > { %v1182_v57 = vpop.permute.xlu1 %1181 }
 0x10c   : > { %2047 = vrot.lane.b32.xlu0 %v2043_v52, %s2924_s8  ;;  %v1180_v55 = vpop.permute.xlu0 %1179 }
 0x10d   : > { %2078 = vrot.lane.b32.xlu1 %v2075_v20, %s2924_s8  ;;  %v4118_v33 = vsel %vm414_vm4, %v1180_v55, %v1182_v57 }
 0x10f   : > { %v1211_v56 = vpop.permute.xlu1 %1210 }
 0x110   : > { %2076 = vrot.lane.b32.xlu0 %v2072_v51, %s2924_s8  ;;  %v1209_v23 = vpop.permute.xlu0 %1208 }
 0x111   : > { %2240 = vrot.lane.b32.xlu1 %v2237_v58, %s2924_s8  ;;  %v4125_v49 = vsel %vm414_vm4, %v1209_v23, %v1211_v56 }
 0x113   : > { %v1258_v59 = vpop.permute.xlu1 %1257 }
 0x114   : > { %2238 = vrot.lane.b32.xlu0 %v2234_v60, %s2924_s8  ;;  %v1256_v36 = vpop.permute.xlu0 %1255 }
 0x115   : > { %2269 = vrot.lane.b32.xlu1 %v2266_v63, %s2924_s8  ;;  %v4132_v30 = vsel %vm414_vm4, %v1256_v36, %v1258_v59 }
 0x117   : > { %v1287_v43 = vpop.permute.xlu1 %1286 }
 0x118   : > { %v1285_v53 = vpop.permute.xlu0 %1284  ;;  %2267 = vrot.lane.b32.xlu0 %v2263_v26, %s2924_s8 }
 0x119   : > { %v4136_v19 = vsel %vm414_vm4, %v1285_v53, %v1287_v43 }
 0x11a   : > { %4501 = vst [vmem:[#allocation17_spill] sm:$0xff] %v4136_v19 }
 0x11b   : > { %v1316_v5 = vpop.permute.xlu1 %1315 }
 0x11c   : > { %v1314_v61 = vpop.permute.xlu0 %1313 }
 0x11d   : > { %v4139_v41 = vsel %vm414_vm4, %v1314_v61, %v1316_v5 }
 0x11e   : > { %4502 = vst [vmem:[#allocation18_spill] sm:$0xff] %v4139_v41 }
 0x11f   : > { %v1345_v25 = vpop.permute.xlu1 %1344 }
 0x120   : > { %v1343_v46 = vpop.permute.xlu0 %1342 }
 0x121   : > { %v4142_v48 = vsel %vm414_vm4, %v1343_v46, %v1345_v25 }
 0x122   : > { %4503 = vst [vmem:[#allocation19_spill] sm:$0xff] %v4142_v48 }
 0x123   : > { %v4144_v12 = vpop.permute.xlu1 %1373 }
 0x124   : > { %v4146_v52 = vpop.permute.xlu0 %1371 }
 0x127   : > { %v4148_v32 = vpop.permute.xlu1 %1402 }
 0x129   : > { %v4150_v1 = vpop.permute.xlu0 %1400 }
 0x12b   : > { %v4152_v20 = vpop.permute.xlu1 %1610 }
 0x12d   : > { %v4154_v29 = vpop.permute.xlu0 %1608 }
 0x12f   : > { %v4156_v28 = vpop.permute.xlu1 %1639 }
 0x131   : > { %v4158_v31 = vpop.permute.xlu0 %1637 }
 0x133   : > { %v4160_v13 = vpop.permute.xlu1 %1726 }
 0x135   : > { %v4162_v6 = vpop.permute.xlu0 %1724 }
 0x137   : > { %v4164_v2 = vpop.permute.xlu1 %1755 }
 0x139   : > { %v4166_v3 = vpop.permute.xlu0 %1753 }
 0x13b   : > { %v4168_v14 = vpop.permute.xlu1 %1800 }
 0x13e   : > { %v4170_v22 = vpop.permute.xlu0 %1798 }
 0x13f   : > { %v4172_v24 = vpop.permute.xlu1 %1829 }
 0x142   : > { %v4174_v0 = vpop.permute.xlu0 %1827 }
 0x143   : > { %v4176_v15 = vpop.permute.xlu1 %1916 }
 0x146   : > { %v4178_v57 = vpop.permute.xlu0 %1914 }
 0x147   : > { %v4180_v55 = vpop.permute.xlu1 %1945 }
 0x14a   : > { %v4182_v51 = vpop.permute.xlu0 %1943 }
 0x14b   : > { %v4184_v4 = vpop.permute.xlu1 %1991 }
 0x14e   : > { %v4186_v42 = vpop.permute.xlu0 %1989 }
 0x14f   : > { %v4188_v21 = vpop.permute.xlu1 %2020 }
 0x152   : > { %v4190_v34 = vpop.permute.xlu0 %2018 }
 0x153   : > { %v4192_v9 = vpop.permute.xlu1 %2107 }
 0x156   : > { %v4194_v56 = vpop.permute.xlu0 %2105 }
 0x157   : > { %v4208_v36 = vpop.permute.xlu1 %2136 }
 0x15a   : > { %v2135_v26 = vpop.permute.xlu0 %2134 }
 0x15b   : > { %v2183_v38 = vpop.permute.xlu1 %2182 }
 0x15e   : > { %v2181_v11 = vpop.permute.xlu0 %2180 }
 0x15f   : > { %v2212_v44 = vpop.permute.xlu1 %2211 }
 0x162   : > { %v2210_v8 = vpop.permute.xlu0 %2209 }
 0x18e   : > { %v2683_v58 = vpop.f32.mrf.mxu0 }
 0x190   : > { %v562_v7 = vpop.f32.mrf.mxu0 }
 0x192   : > { %v4196_v23 = vpop.f32.mrf.mxu0  ;;  %v4198_v60 = vpop.f32.mrf.mxu1 }
 0x194   : > { %v4200_v47 = vpop.f32.mrf.mxu0  ;;  %v4202_v17 = vpop.f32.mrf.mxu1 }
 0x196   : > { %v4204_v63 = vpop.f32.mrf.mxu0  ;;  %v4206_v59 = vpop.f32.mrf.mxu1 }
 0x198   : > { %v4210_v43 = vpop.f32.mrf.mxu0  ;;  %v4212_v53 = vpop.f32.mrf.mxu1 }
 0x199   : > { %4504 = vst [vmem:[#allocation20_spill] sm:$0xff] %v4212_v53 }
 0x19a   : > { %v4214_v5 = vpop.f32.mrf.mxu0  ;;  %v4216_v61 = vpop.f32.mrf.mxu1 }
 0x19b   : > { %4505 = vst [vmem:[#allocation21_spill] sm:$0xff] %v4214_v5  ;;  %4506 = vst [vmem:[#allocation22_spill] sm:$0xff] %v4216_v61 }
 0x19c   : > { %v4218_v25 = vpop.f32.mrf.mxu0  ;;  %v4220_v46 = vpop.f32.mrf.mxu1 }
 0x19d   : > { %4507 = vst [vmem:[#allocation23_spill] sm:$0xff] %v4218_v25  ;;  %4508 = vst [vmem:[#allocation24_spill] sm:$0xff] %v4220_v46 }
 0x19e   : > { %v4222_v48 = vpop.f32.mrf.mxu0  ;;  %v4224_v41 = vpop.f32.mrf.mxu1 }
 0x19f   : > { %4509 = vst [vmem:[#allocation25_spill] sm:$0xff] %v4222_v48  ;;  %4510 = vst [vmem:[#allocation26_spill] sm:$0xff] %v4224_v41 }
 0x1a0   : > { %v4226_v40 = vpop.f32.mrf.mxu0  ;;  %v4228_v45 = vpop.f32.mrf.mxu1 }
 0x1a1   : > { %4511 = vst [vmem:[#allocation27_spill] sm:$0xff] %v4226_v40  ;;  %4512 = vst [vmem:[#allocation28_spill] sm:$0xff] %v4228_v45  ;;  %v2299_v40 = vpop.permute.xlu1 %2298  ;;  %v2297_v45 = vpop.permute.xlu0 %2296 }
 0x1a2   : > { %v4230_v27 = vpop.f32.mrf.mxu0  ;;  %v4232_v37 = vpop.f32.mrf.mxu1 }
 0x1a3   : > { %4513 = vst [vmem:[#allocation29_spill] sm:$0xff] %v4230_v27  ;;  %4514 = vst [vmem:[#allocation30_spill] sm:$0xff] %v4232_v37 }
 0x1a4   : > { %v4234_v10 = vpop.f32.mrf.mxu0  ;;  %v4236_v25 = vpop.f32.mrf.mxu1 }
 0x1a5   : > { %4515 = vst [vmem:[#allocation31_spill] sm:$0xff] %v4234_v10  ;;  %4516 = vst [vmem:[#allocation32_spill] sm:$0xff] %v4236_v25  ;;  %v2326_v53 = vpop.permute.xlu0 %2325 }
 0x1a6   : > { %v4238_v46 = vpop.f32.mrf.mxu0  ;;  %v4240_v61 = vpop.f32.mrf.mxu1 }
 0x1a7   : > { %4517 = vst [vmem:[#allocation33_spill] sm:$0xff] %v4238_v46  ;;  %4518 = vst [vmem:[#allocation34_spill] sm:$0xff] %v4240_v61  ;;  %v2328_v46 = vpop.permute.xlu1 %2327  ;;  %v1069_v61 = vadd.f32 %v2683_v58, %v4074_v18  ;;  %v1728_v18 = vsel %vm414_vm4, %v4162_v6, %v4160_v13  ;;  %v2213_v6 = vsel %vm414_vm4, %v2210_v8, %v2212_v44 }
 0x1a8   : > { %v4242_v48 = vpop.f32.mrf.mxu0  ;;  %v4244_v41 = vpop.f32.mrf.mxu1  ;;  %v877_v8 = vadd.f32 %v3965_v62, %v4200_v47  ;;  %v4528_v47 = vld [vmem:[#allocation22_spill] sm:$0xff] }
 0x1a9   : > { %4519 = vst [vmem:[#allocation35_spill] sm:$0xff] %v4242_v48  ;;  %4520 = vst [vmem:[#allocation36_spill] sm:$0xff] %v4244_v41  ;;  %v1375_v41 = vsel %vm414_vm4, %v4146_v52, %v4144_v12 }
 0x1aa   : > { %v4246_v5 = vpop.f32.mrf.mxu0  ;;  %v4248_v27 = vpop.f32.mrf.mxu1 }
 0x1ab   : > { %4521 = vst [vmem:[#allocation37_spill] sm:$0xff] %v4248_v27  ;;  %v1612_v27 = vsel %vm414_vm4, %v4154_v29, %v4152_v20  ;;  %v4282_v20 = vsel %vm414_vm4, %v4166_v3, %v4164_v2  ;;  %v1802_v29 = vsel %vm414_vm4, %v4170_v22, %v4168_v14  ;;  %v2109_v2 = vsel %vm414_vm4, %v4194_v56, %v4192_v9  ;;  %v4526_v56 = vld [vmem:[#allocation17_spill] sm:$0xff] }
 0x1ac   : > { %v4250_v37 = vpop.f32.mrf.mxu0  ;;  %v4252_v19 = vpop.f32.mrf.mxu1  ;;  %v2300_v22 = vsel %vm414_vm4, %v2297_v45, %v2299_v40  ;;  %v1614_v45 = vadd.f32 %v1612_v27, %v4202_v17  ;;  %v1098_v40 = vadd.f32 %v4204_v63, %v4086_v54 }
 0x1ad   : > { %4522 = vst [vmem:[#allocation38_spill] sm:$0xff] %v4250_v37  ;;  %4523 = vst [vmem:[#allocation39_spill] sm:$0xff] %v4252_v19  ;;  %v1641_v19 = vsel %vm414_vm4, %v4158_v31, %v4156_v28  ;;  %v1831_v28 = vsel %vm414_vm4, %v4174_v0, %v4172_v24  ;;  %v2022_v31 = vsel %vm414_vm4, %v4190_v34, %v4188_v21  ;;  %v4525_v21 = vld [vmem:[#allocation20_spill] sm:$0xff] }
 0x1ae   : > { %v2699_v10 = vpop.f32.mrf.mxu0  ;;  %v4254_v25 = vpop.f32.mrf.mxu1  ;;  %v2138_v24 = vsel %vm414_vm4, %v2135_v26, %v4208_v36  ;;  %v1261_v0 = vadd.f32 %v4196_v23, %v4132_v30  ;;  %v716_v30 = vadd.f32 %v3973_v39, %v4210_v43  ;;  %v4335_v34 = vadd.f32 %v1802_v29, %v4525_v21  ;;  %v4527_v23 = vld [vmem:[#allocation21_spill] sm:$0xff]  ;;  %v4529_v39 = vld [vmem:[#allocation12_spill] sm:$0xff] }
 0x1af   : > { %4524 = vst [vmem:[#allocation40_spill] sm:$0xff] %v4254_v25  ;;  %v1185_v48 = vadd.f32 %v2699_v10, %v4118_v33  ;;  %v1404_v10 = vsel %vm414_vm4, %v4150_v1, %v4148_v32  ;;  %v687_v33 = vadd.f32 %v3960_v35, %v562_v7  ;;  %v1918_v35 = vsel %vm414_vm4, %v4178_v57, %v4176_v15  ;;  %v4531_v36 = vld [vmem:[#allocation8_spill] sm:$0xff] }
 0x1b0   : > { %v626_v37 = vpop.f32.mrf.mxu0  ;;  %v4267_v25 = vpop.f32.mrf.mxu1  ;;  %v2329_v15 = vsel %vm414_vm4, %v2326_v53, %v2328_v46  ;;  %v2024_v17 = vadd.f32 %v4528_v47, %v2022_v31  ;;  %v4533_v53 = vld [vmem:[#allocation26_spill] sm:$0xff]  ;;  %v4534_v46 = vld [vmem:[#allocation28_spill] sm:$0xff] }
 0x1b1   : > { %v4276_v12 = vmul.f32 %v1185_v48, %v1069_v61  ;;  %v803_v52 = vadd.f32 %v4001_v16, %v626_v37  ;;  %v4296_v16 = vsel %vm414_vm4, %v4182_v51, %v4180_v55  ;;  %v1993_v37 = vsel %vm414_vm4, %v4186_v42, %v4184_v4 }
 0x1b2   : > { %v2700_v32 = vpop.f32.mrf.mxu0  ;;  %v2733_v1 = vpop.f32.mrf.mxu1  ;;  %v2184_v48 = vsel %vm414_vm4, %v2181_v11, %v2183_v38  ;;  %v1995_v57 = vadd.f32 %v4198_v60, %v1993_v37  ;;  %v1290_v60 = vadd.f32 %v4527_v23, %v4526_v56  ;;  %v2215_v61 = vadd.f32 %v4533_v53, %v2213_v6 }
 0x1b3   : > { %v4305_v13 = vmul.f32 %v803_v52, %v687_v33  ;;  %v4314_v11 = vpop.permute.xlu1 %1668  ;;  %v4316_v38 = vpop.permute.xlu0 %1666  ;;  %v2186_v55 = vadd.f32 %v4206_v59, %v2184_v48  ;;  %v1377_v42 = vadd.f32 %v2700_v32, %v1375_v41  ;;  %v2111_v58 = vadd.f32 %v2733_v1, %v2109_v2  ;;  %v4530_v59 = vld [vmem:[#allocation23_spill] sm:$0xff] }
 0x1b4   : > { %v629_v3 = vpop.f32.mrf.mxu0  ;;  %v1555_v14 = vpop.f32.mrf.mxu1  ;;  %v906_v26 = vadd.f32 %v4531_v36, %v4530_v59 }
 0x1b5   : > { %v993_v44 = vadd.f32 %v4038_v50, %v629_v3  ;;  %v1730_v27 = vadd.f32 %v1728_v18, %v1555_v14  ;;  %v4346_v18 = vadd.f32 %v1831_v28, %v4534_v46  ;;  %v1407_v1 = vmul.f32 %v1377_v42, %v1261_v0  ;;  %v4535_v0 = vld [vmem:[#allocation14_spill] sm:$0xff] }
 0x1b6   : > { %v2703_v51 = vpop.f32.mrf.mxu0  ;;  %v2734_v4 = vpop.f32.mrf.mxu1  ;;  %v2141_v2 = vmul.f32 %v2111_v58, %v1995_v57 }
 0x1b7   : > { %v4331_v62 = vmul.f32 %v993_v44, %v877_v8  ;;  %v1214_v50 = vadd.f32 %v2703_v51, %v4125_v49  ;;  %v2302_v7 = vadd.f32 %v2734_v4, %v2300_v22  ;;  %v4532_v49 = vld [vmem:[#allocation24_spill] sm:$0xff]  ;;  %v4348_v29 = vpop.permute.xlu1 %1697  ;;  %v4350_v32 = vpop.permute.xlu0 %1695  ;;  %v1760_v3 = vmul.f32 %v1730_v27, %v1614_v45 }
 0x1b8   : > { %v642_v9 = vpop.f32.mrf.mxu0  ;;  %v1558_v54 = vpop.f32.mrf.mxu1  ;;  %v1643_v43 = vadd.f32 %v1641_v19, %v4532_v49 }
 0x1b9   : > { %v1216_v63 = vmul.f32 %v1214_v50, %v1098_v40  ;;  %v832_v41 = vadd.f32 %v4529_v39, %v642_v9  ;;  %v4353_v14 = vmul.f32 %v2302_v7, %v2186_v55  ;;  %v1920_v51 = vadd.f32 %v1918_v35, %v1558_v54 }
 0x1ba   : > { %v2704_v33 = vpop.f32.mrf.mxu0  ;;  %v2737_v52 = vpop.f32.mrf.mxu1 }
 0x1bb   : > { %v1217_v37 = vmax.f32 %v4276_v12, %v1216_v63  ;;  %v834_v48 = vmul.f32 %v832_v41, %v716_v30  ;;  %v1406_v31 = vadd.f32 %v2704_v33, %v1404_v10  ;;  %v2140_v19 = vadd.f32 %v2737_v52, %v2138_v24  ;;  %v4360_v35 = vpop.permute.xlu1 %1858  ;;  %v4362_v54 = vpop.permute.xlu0 %1856 }
 0x1bc   : > { %v645_v6 = vpop.f32.mrf.mxu0  ;;  %v1571_v22 = vpop.f32.mrf.mxu1  ;;  %v1950_v46 = vmul.f32 %v1920_v51, %v4335_v34 }
 0x1bd   : > { %v1218_v28 = vsub.f32 %v4276_v12, %v1217_v37  ;;  %v1221_v8 = vsub.f32 %v1216_v63, %v1217_v37  ;;  %v835_v44 = vmax.f32 %v4305_v13, %v834_v48  ;;  %v1408_v40 = vmul.f32 %v1406_v31, %v1290_v60 }
 0x1be   : > { %v2142_v4 = vmul.f32 %v2140_v19, %v2024_v17  ;;  %v1022_v42 = vadd.f32 %v4535_v0, %v645_v6  ;;  %v1759_v30 = vadd.f32 %v4282_v20, %v1571_v22  ;;  %v2738_v10 = vpop.f32.mrf.mxu1  ;;  %v4536_v22 = vld [vmem:[#allocation15_spill] sm:$0xff]  ;;  %v4539_v0 = vld [vmem:[#allocation33_spill] sm:$0xff] }
 0x1bf   : > { %v1219_v57 = vmul.f32 1.442695, %v1218_v28  ;;  %v1222_v45 = vmul.f32 1.442695, %v1221_v8  ;;  %v836_v55 = vsub.f32 %v4305_v13, %v835_v44  ;;  %v839_v24 = vsub.f32 %v834_v48, %v835_v44  ;;  %v4370_v37 = vpop.permute.xlu0 %1885  ;;  %v4537_v28 = vld [vmem:[#allocation25_spill] sm:$0xff] }
 0x1c0   : > { %v1409_v50 = vmax.f32 %v1407_v1, %v1408_v40  ;;  %v2143_v21 = vmax.f32 %v2141_v2, %v2142_v4  ;;  %v1024_v58 = vmul.f32 %v1022_v42, %v906_v26  ;;  %v1761_v12 = vmul.f32 %v1759_v30, %v1643_v43  ;;  %v1574_v17 = vpop.f32.mrf.mxu1 }
 0x1c1   : > { %2803 = vpow2.f32 %v1219_v57  ;;  %v837_v27 = vmul.f32 1.442695, %v836_v55  ;;  %v840_v7 = vmul.f32 1.442695, %v839_v24  ;;  %v2331_v9 = vadd.f32 %v2738_v10, %v2329_v15  ;;  %v4540_v10 = vld [vmem:[#allocation27_spill] sm:$0xff]  ;;  %v4541_v57 = vld [vmem:[#allocation9_spill] sm:$0xff] }
 0x1c2   : > { %2805 = vpow2.f32 %v1222_v45  ;;  %v1410_v20 = vsub.f32 %v1407_v1, %v1409_v50  ;;  %v1413_v56 = vsub.f32 %v1408_v40, %v1409_v50  ;;  %v2144_v23 = vsub.f32 %v2141_v2, %v2143_v21  ;;  %v4368_v1 = vpop.permute.xlu1 %1887 }
 0x1c3   : > { %2807 = vpow2.f32 %v837_v27  ;;  %v2147_v60 = vsub.f32 %v2142_v4, %v2143_v21  ;;  %v1025_v13 = vmax.f32 %v4331_v62, %v1024_v58  ;;  %v1762_v47 = vmax.f32 %v1760_v3, %v1761_v12  ;;  %v4538_v4 = vld [vmem:[#allocation16_spill] sm:$0xff]  ;;  %v4542_v21 = vld [vmem:[#allocation35_spill] sm:$0xff] }
 0x1c4   : > { %2809 = vpow2.f32 %v840_v7  ;;  %v1411_v63 = vmul.f32 1.442695, %v1410_v20  ;;  %v1414_v39 = vmul.f32 1.442695, %v1413_v56  ;;  %v2145_v41 = vmul.f32 1.442695, %v2144_v23 }
 0x1c5   : > { %v2148_v59 = vmul.f32 1.442695, %v2147_v60  ;;  %v1026_v15 = vsub.f32 %v4331_v62, %v1025_v13  ;;  %v1029_v36 = vsub.f32 %v1024_v58, %v1025_v13  ;;  %v1763_v26 = vsub.f32 %v1760_v3, %v1762_v47  ;;  %v4543_v58 = vld [vmem:[#allocation11_spill] sm:$0xff]  ;;  %v4544_v20 = vld [vmem:[#allocation18_spill] sm:$0xff]  ;;  %v4545_v56 = vld [vmem:[#allocation29_spill] sm:$0xff] }
 0x1c6   : > { %2811 = vpow2.f32 %v1411_v63  ;;  %v1766_v49 = vsub.f32 %v1761_v12, %v1762_v47  ;;  %v2333_v43 = vmul.f32 %v2331_v9, %v2215_v61  ;;  %v1949_v53 = vadd.f32 %v4296_v16, %v1574_v17  ;;  %v2050_v51 = vpop.permute.xlu1 %2049 }
 0x1c7   : > { %2813 = vpow2.f32 %v1414_v39  ;;  %v1027_v33 = vmul.f32 1.442695, %v1026_v15  ;;  %v1030_v52 = vmul.f32 1.442695, %v1029_v36  ;;  %v1764_v48 = vmul.f32 1.442695, %v1763_v26 }
 0x1c8   : > { %2815 = vpow2.f32 %v2145_v41  ;;  %v2334_v62 = vmax.f32 %v4353_v14, %v2333_v43  ;;  %v1951_v31 = vmul.f32 %v1949_v53, %v4346_v18  ;;  %v1767_v2 = vmul.f32 1.442695, %v1766_v49  ;;  %v2048_v18 = vpop.permute.xlu0 %2047  ;;  %v4546_v39 = vld [vmem:[#allocation19_spill] sm:$0xff] }
 0x1c9   : > { %2817 = vpow2.f32 %v2148_v59  ;;  %v1127_v8 = vadd.f32 %v4537_v28, %v4536_v22  ;;  %v1156_v42 = vadd.f32 %v4539_v0, %v4538_v4  ;;  %v745_v45 = vadd.f32 %v4541_v57, %v4540_v10 }
 0x1ca   : > { %2819 = vpow2.f32 %v1027_v33  ;;  %v2335_v16 = vsub.f32 %v4353_v14, %v2334_v62  ;;  %v2338_v61 = vsub.f32 %v2333_v43, %v2334_v62  ;;  %v1952_v34 = vmax.f32 %v1950_v46, %v1951_v31  ;;  %v2079_v15 = vpop.permute.xlu1 %2078 }
 0x1cb   : > { %2821 = vpow2.f32 %v1030_v52  ;;  %v774_v12 = vadd.f32 %v4543_v58, %v4542_v21  ;;  %v1319_v23 = vadd.f32 %v4545_v56, %v4544_v20  ;;  %v1348_v41 = vadd.f32 %v4246_v5, %v4546_v39  ;;  %v4547_v52 = vld [vmem:[#allocation31_spill] sm:$0xff]  ;;  %v4551_v58 = vld [vmem:[#allocation30_spill] sm:$0xff]  ;;  %v4553_v39 = vld [vmem:[#allocation32_spill] sm:$0xff] }
 0x1cc   : > { %2823 = vpow2.f32 %v1764_v48  ;;  %v2336_v3 = vmul.f32 1.442695, %v2335_v16  ;;  %v2339_v19 = vmul.f32 1.442695, %v2338_v61  ;;  %v1953_v6 = vsub.f32 %v1950_v46, %v1952_v34  ;;  %v2077_v36 = vpop.permute.xlu0 %2076  ;;  %v4548_v48 = vld [vmem:[#allocation10_spill] sm:$0xff]  ;;  %v4550_v16 = vld [vmem:[#allocation13_spill] sm:$0xff] }
 0x1cd   : > { %2825 = vpow2.f32 %v1767_v2  ;;  %v1956_v44 = vsub.f32 %v1951_v31, %v1952_v34  ;;  %v935_v62 = vadd.f32 %v4548_v48, %v4547_v52  ;;  %v4549_v2 = vld [vmem:[#allocation38_spill] sm:$0xff]  ;;  %v2080_v10 = vsel %vm414_vm4, %v2077_v36, %v2079_v15  ;;  %v4556_v15 = vld [vmem:[#allocation40_spill] sm:$0xff] }
 0x1ce   : > { %v2804_v40 = vpop.eup %2803  ;;  %2827 = vpow2.f32 %v2336_v3  ;;  %v1954_v14 = vmul.f32 1.442695, %v1953_v6  ;;  %v964_v61 = vadd.f32 %v4550_v16, %v4549_v2  ;;  %v1699_v20 = vsel %vm414_vm4, %v4350_v32, %v4348_v29  ;;  %v4555_v32 = vld [vmem:[#allocation34_spill] sm:$0xff] }
 0x1cf   : > { %v2806_v30 = vpop.eup %2805  ;;  %v1224_v55 = vmul.f32 %v2804_v40, %v1127_v8  ;;  %2829 = vpow2.f32 %v2339_v19  ;;  %v1957_v24 = vmul.f32 1.442695, %v1956_v44  ;;  %v2241_v44 = vpop.permute.xlu1 %2240 }
 0x1d0   : > { %v2808_v50 = vpop.eup %2807  ;;  %v1225_v27 = vmul.f32 %v2806_v30, %v1156_v42  ;;  %v1227_v7 = vadd.f32 %v2806_v30, %v2804_v40  ;;  %2831 = vpow2.f32 %v1954_v14  ;;  %v2239_v40 = vpop.permute.xlu0 %2238  ;;  %v2051_v30 = vsel %vm414_vm4, %v2048_v18, %v2050_v51 }
 0x1d1   : > { %v2810_v9 = vpop.eup %2809  ;;  %v842_v60 = vmul.f32 %v2808_v50, %v745_v45  ;;  %2833 = vpow2.f32 %v1957_v24  ;;  %v1670_v18 = vsel %vm414_vm4, %v4316_v38, %v4314_v11  ;;  %v1860_v11 = vsel %vm414_vm4, %v4362_v54, %v4360_v35  ;;  %v4554_v38 = vld [vmem:[#allocation39_spill] sm:$0xff]  ;;  %v4557_v35 = vld [vmem:[#allocation36_spill] sm:$0xff] }
 0x1d2   : > { %v1226_v13 = vadd.f32 %v1225_v27, %v1224_v55  ;;  %2835 = vrcp.f32 %v1227_v7  ;;  %v843_v47 = vmul.f32 %v2810_v9, %v774_v12  ;;  %v845_v17 = vadd.f32 %v2810_v9, %v2808_v50  ;;  %v4552_v27 = vld [vmem:[#allocation37_spill] sm:$0xff] }
 0x1d3   : > { %v2812_v63 = vpop.eup %2811  ;;  %v2270_v24 = vpop.permute.xlu1 %2269  ;;  %v2053_v12 = vadd.f32 %v4551_v58, %v2051_v30  ;;  %v2082_v7 = vadd.f32 %v4552_v27, %v2080_v10  ;;  %v2242_v9 = vsel %vm414_vm4, %v2239_v40, %v2241_v44  ;;  %v1862_v54 = vadd.f32 %v1860_v11, %v4557_v35 }
 0x1d4   : > { %v2814_v59 = vpop.eup %2813  ;;  %v844_v26 = vadd.f32 %v843_v47, %v842_v60  ;;  %2837 = vrcp.f32 %v845_v17  ;;  %v1416_v49 = vmul.f32 %v2812_v63, %v1319_v23  ;;  %v2268_v50 = vpop.permute.xlu0 %2267 }
 0x1d5   : > { %v2816_v43 = vpop.eup %2815  ;;  %v1417_v53 = vmul.f32 %v2814_v59, %v1348_v41  ;;  %v1419_v46 = vadd.f32 %v2814_v59, %v2812_v63  ;;  %v2271_v60 = vsel %vm414_vm4, %v2268_v50, %v2270_v24  ;;  %v1672_v41 = vadd.f32 %v1670_v18, %v4553_v39 }
 0x1d6   : > { %v2818_v33 = vpop.eup %2817  ;;  %v2150_v47 = vmul.f32 %v2816_v43, %v2053_v12  ;;  %v1701_v59 = vadd.f32 %v1699_v20, %v4554_v38  ;;  %v2273_v36 = vadd.f32 %v4556_v15, %v2271_v60 }
 0x1d7   : > { %v2820_v31 = vpop.eup %2819  ;;  %v1418_v34 = vadd.f32 %v1417_v53, %v1416_v49  ;;  %2839 = vrcp.f32 %v1419_v46  ;;  %v2153_v5 = vadd.f32 %v2818_v33, %v2816_v43  ;;  %v2151_v17 = vmul.f32 %v2818_v33, %v2082_v7 }
 0x1d8   : > { %v2822_v3 = vpop.eup %2821  ;;  %v1032_v19 = vmul.f32 %v2820_v31, %v935_v62  ;;  %v1889_v49 = vsel %vm414_vm4, %v4370_v37, %v4368_v1 }
 0x1d9   : > { %v2824_v6 = vpop.eup %2823  ;;  %2841 = vrcp.f32 %v2153_v5  ;;  %v1033_v22 = vmul.f32 %v2822_v3, %v964_v61  ;;  %v1035_v28 = vadd.f32 %v2822_v3, %v2820_v31  ;;  %v2152_v43 = vadd.f32 %v2151_v17, %v2150_v47 }
 0x1da   : > { %v2826_v8 = vpop.eup %2825  ;;  %v1769_v53 = vmul.f32 %v2824_v6, %v1672_v41  ;;  %v1891_v52 = vadd.f32 %v1889_v49, %v4267_v25 }
 0x1db   : > { %v2828_v4 = vpop.eup %2827  ;;  %v1034_v0 = vadd.f32 %v1033_v22, %v1032_v19  ;;  %2843 = vrcp.f32 %v1035_v28  ;;  %v1772_v42 = vadd.f32 %v2826_v8, %v2824_v6  ;;  %v1770_v46 = vmul.f32 %v2826_v8, %v1701_v59 }
 0x1dc   : > { %v2830_v14 = vpop.eup %2829 }
 0x1dd   : > { %v2832_v57 = vpop.eup %2831  ;;  %2845 = vrcp.f32 %v1772_v42  ;;  %v2344_v45 = vadd.f32 %v2830_v14, %v2828_v4  ;;  %v2342_v31 = vmul.f32 %v2830_v14, %v2273_v36  ;;  %v1771_v37 = vadd.f32 %v1770_v46, %v1769_v53 }
 0x1de   : > { %v2834_v55 = vpop.eup %2833  ;;  %v1959_v16 = vmul.f32 %v2832_v57, %v1862_v54 }
 0x1df   : > { %v2836_v21 = vpop.eup %2835  ;;  %2847 = vrcp.f32 %v2344_v45  ;;  %v1962_v51 = vadd.f32 %v2834_v55, %v2832_v57  ;;  %v1960_v61 = vmul.f32 %v2834_v55, %v1891_v52 }
 0x1e0   : > { %v1229_v56 = vmul.f32 %v2836_v21, %v1226_v13  ;;  %v2244_v13 = vadd.f32 %v4555_v32, %v2242_v9 }
 0x1e1   : > { %v2838_v23 = vpop.eup %2837  ;;  %2849 = vrcp.f32 %v1962_v51  ;;  %v1961_v6 = vadd.f32 %v1960_v61, %v1959_v16 }
 0x1e2   : > { %2557 = vst [vmem:[%s4399_s24 + $0x20] sm:$0xff] %v1229_v56  ;;  %v847_v63 = vmul.f32 %v2838_v23, %v844_v26  ;;  %v2341_v62 = vmul.f32 %v2828_v4, %v2244_v13 }
 0x1e4   : > { %v2840_v29 = vpop.eup %2839  ;;  %848 = vst [vmem:[%s4399_s24] sm:$0xff] %v847_v63  ;;  %v2343_v3 = vadd.f32 %v2342_v31, %v2341_v62 }
 0x1e5   : > { %v1421_v26 = vmul.f32 %v2840_v29, %v1418_v34 }
 0x1e6   : > { %v2842_v33 = vpop.eup %2841 }
 0x1e7   : > { %2570 = vst [vmem:[%s4399_s24 + $0x30] sm:$0xff] %v1421_v26  ;;  %v2155_v48 = vmul.f32 %v2842_v33, %v2152_v43 }
 0x1e8   : > { %v2844_v2 = vpop.eup %2843 }
 0x1e9   : > { %2618 = vst [vmem:[%s4399_s24 + $0x28] sm:$0xff] %v2155_v48  ;;  %v1037_v1 = vmul.f32 %v2844_v2, %v1034_v0 }
 0x1ea   : > { %v2846_v34 = vpop.eup %2845 }
 0x1eb   : > { %2544 = vst [vmem:[%s4399_s24 + $0x10] sm:$0xff] %v1037_v1  ;;  %v1774_v5 = vmul.f32 %v2846_v34, %v1771_v37 }
 0x1ec   : > { %v2848_v19 = vpop.eup %2847 }
 0x1ed   : > { %1775 = vst [vmem:[%s4399_s24 + $0x8] sm:$0xff] %v1774_v5  ;;  %v2346_v25 = vmul.f32 %v2848_v19, %v2343_v3 }
 0x1ee   : > { %v2850_v22 = vpop.eup %2849 }
 0x1ef   : > { %2631 = vst [vmem:[%s4399_s24 + $0x38] sm:$0xff] %v2346_v25  ;;  %v1964_v28 = vmul.f32 %v2850_v22, %v1961_v6 }
 0x1f1   : > { %2605 = vst [vmem:[%s4399_s24 + $0x18] sm:$0xff] %v1964_v28 }
 0x1f2 PF: > { %s17_s20 = sadd.s32 1, %s2918_s20   ;;  %s4558_s18 = smov %s2914_s19 }
 0x1f3   : > { %p14_p4 = scmp.ge.s32.totalorder %s17_s20, 4   ;;  %s4559_s19 = smov %s4561_s22 }
 0x1f5   :  { %16 = sbr.rel (!%p14_p4) target bundleno = 3 (0x3), region = 89 }
 0x1fa   :  { %2379 = vsyncpa [#allocation3], 1 }
 0x1fb   :  { %2381 = vsyncpa [#allocation3 + $0x1], 1 }
 0x1fc   :  { %2382 = vsyncpa [#allocation5], 1 }

</bundles_post_ra>
